<compile_context>
chip_gen: v7x
topology: tpu7x:2x2x1
jax: 0.10.0
libtpu: 0.0.40
codegen_flags: <defaults>
</compile_context>

<pallas_src>
import jax
import jax.numpy as jnp
from jax import lax
from jax.experimental import pallas as pl
from jax.experimental.pallas import tpu as pltpu


# ------------------------------ Pallas kernel ------------------------------ #

def _cnn_fused_kernel(x_ref, t1_ref, b1_ref, t2_ref, b2_ref, wfc_ref, bfc_ref,
                      o_ref):
    """Fused conv1->pool->relu->conv2->pool->relu->fc for one batch tile.

    x_ref  : (24, TB, 140) bf16  kh-stacked image rows: [h_out, n, kh*28 + w_in]
    t1_ref : (140, 256)    bf16  conv1 Toeplitz; out lane = par*128 + 10*w_p + co
    b1_ref : (1, 128)      f32   conv1 bias on pooled lanes (10*w_p + co)
    t2_ref : (640, 256)    bf16  conv2 Toeplitz; K = kh*128 + (10*w1p + ci)
    b2_ref : (1, 128)      f32   conv2 bias on pooled lanes (20*w2p + co)
    wfc_ref: (512, 128)    bf16  FC weight; K = h2p*128 + (20*w2p + co); out padded
    bfc_ref: (1, 128)      f32
    o_ref  : (TB, 128)     f32   lanes [10,128) are zero padding
    """
    f32 = jnp.float32
    tb = x_ref.shape[1]

    # ---- layer 1: conv1 (single K=140 matmul) + 2x2 maxpool + bias + relu ---
    xv = x_ref[...]                                          # (24, TB, 140)
    acc1 = jnp.dot(xv.reshape(24 * tb, 140), t1_ref[...],
                   preferred_element_type=f32)               # (24*TB, 256)
    c1 = acc1.reshape(12, 2, tb, 256)
    c1 = jnp.maximum(c1[:, 0], c1[:, 1])                     # H-pool -> (12,TB,256)
    c1 = jnp.maximum(c1[:, :, :128], c1[:, :, 128:])         # W-pool (vreg-aligned)
    h1 = jnp.maximum(c1 + b1_ref[...], 0.0).astype(jnp.bfloat16)   # (12,TB,128)
    # valid lanes of h1: 10*w1p + ci (w1p in [0,12), ci in [0,10)); [120,128)=0.

    # ---- layer 2: conv2 via in-kernel kh lane-stack, single K=640 matmul ----
    h1s = jnp.concatenate([h1[kh:kh + 8] for kh in range(5)], axis=-1)
    acc2 = jnp.dot(h1s.reshape(8 * tb, 640), t2_ref[...],
                   preferred_element_type=f32)               # (8*TB, 256)
    c2 = acc2.reshape(4, 2, tb, 256)
    c2 = jnp.maximum(c2[:, 0], c2[:, 1])                     # H-pool -> (4,TB,256)
    c2 = jnp.maximum(c2[:, :, :128], c2[:, :, 128:])         # W-pool (vreg-aligned)
    h2 = jnp.maximum(c2 + b2_ref[...], 0.0).astype(jnp.bfloat16)   # (4,TB,128)
    # valid lanes of h2: 20*w2p + co (w2p in [0,4), co in [0,20)); [80,128)=0.

    # --------------------------- FC (320 -> 10, padded) ----------------------
    h2f = jnp.concatenate([h2[hp] for hp in range(4)], axis=-1)      # (TB, 512)
    out = jnp.dot(h2f, wfc_ref[...], preferred_element_type=f32) + bfc_ref[...]
    o_ref[...] = out.astype(o_ref.dtype)


# ----------------------------- kernel wrapper ------------------------------ #

def _tensorcores_per_chip():
    """2 TensorCores on v7x-class chips, otherwise 1 (v5e / v6e)."""
    try:
        kind = jax.devices()[0].device_kind.lower()
    except Exception:  # pragma: no cover
        return 1
    return 2 if ("v7" in kind or "7x" in kind) else 1


def cnn_forward(x, kparams, *, tile_b=None):
    """x: (B, 1, 28, 28) f32; kparams: output of prepare_params -> (B, 10) f32."""
    b, cin, h, w = x.shape
    assert (cin, h, w) == (1, 28, 28), (cin, h, w)

    if tile_b is None:
        n_tc = _tensorcores_per_chip()
        # grid=(1,) on single-TC chips; one batch tile per TC on v7x.
        if n_tc > 1 and b % (16 * n_tc) == 0:
            tile_b = b // n_tc
        else:
            tile_b = b
        while tile_b > 256 and tile_b % 32 == 0:   # keep per-tile VMEM modest
            tile_b //= 2
    assert b % tile_b == 0 and tile_b % 16 == 0, (
        f"batch {b} must be a multiple of 16")
    grid = (b // tile_b,)

    # Host-side kh im2col: xs[h_out, n, kh*28 + w_in] = x[n, 0, h_out+kh, w_in]
    img = x.reshape(b, 28, 28)
    win = jnp.arange(24)[:, None] + jnp.arange(5)[None, :]          # (24, 5)
    xs = img[:, win, :]                                             # (B,24,5,28)
    xs = xs.transpose(1, 0, 2, 3).reshape(24, b, 140).astype(jnp.bfloat16)

    flops = b * 2 * (24 * 140 * 256 + 8 * 640 * 256 + 512 * 128)
    bytes_accessed = (24 * b * 140 * 2 + b * 128 * 4 +
                      (140 * 256 + 640 * 256 + 512 * 128) * 2 + 3 * 128 * 4)

    out = pl.pallas_call(
        _cnn_fused_kernel,
        out_shape=jax.ShapeDtypeStruct((b, 128), jnp.float32),
        grid=grid,
        in_specs=[
            pl.BlockSpec((24, tile_b, 140), lambda i: (0, i, 0)),
            pl.BlockSpec((140, 256), lambda i: (0, 0)),
            pl.BlockSpec((1, 128), lambda i: (0, 0)),
            pl.BlockSpec((640, 256), lambda i: (0, 0)),
            pl.BlockSpec((1, 128), lambda i: (0, 0)),
            pl.BlockSpec((512, 128), lambda i: (0, 0)),
            pl.BlockSpec((1, 128), lambda i: (0, 0)),
        ],
        out_specs=pl.BlockSpec((tile_b, 128), lambda i: (i, 0)),
        compiler_params=pltpu.CompilerParams(
            dimension_semantics=("parallel",)),
        cost_estimate=pl.CostEstimate(
            flops=flops, transcendentals=0, bytes_accessed=bytes_accessed),
    )(xs, kparams["t1"], kparams["b1"], kparams["t2"], kparams["b2"],
      kparams["wfc"], kparams["bfc"])
    return out[:, :10]


# ------------------------- host-side weight prep --------------------------- #

def prepare_params(params, dtype=jnp.bfloat16):
    """Expand PyTorch-layout weights into the pool-aligned Toeplitz form."""
    w1, b1 = params["w1"], params["b1"]        # (10,1,5,5), (10,)
    w2, b2 = params["w2"], params["b2"]        # (20,10,5,5), (20,)
    wfc, bfc = params["wfc"], params["bfc"]    # (10,320), (10,)

    lp = jnp.arange(128)

    # ---- conv1: rows r = kh*28 + w_in, cols = parity*128 + 10*w_p + co ------
    r = jnp.arange(140)
    r_kh, r_wi = r // 28, r % 28
    l1 = jnp.arange(256)
    par1, rem1 = l1 // 128, l1 % 128
    w_p, co1 = rem1 // 10, rem1 % 10
    w_out = 2 * w_p + par1                                   # conv1 w_out
    kw1 = r_wi[:, None] - w_out[None, :]                     # (140, 256)
    valid1 = (kw1 >= 0) & (kw1 < 5) & (rem1 < 120)[None, :]
    t1 = w1[co1[None, :], 0, r_kh[:, None], jnp.clip(kw1, 0, 4)]
    t1 = jnp.where(valid1, t1, 0.0)                          # (140, 256)
    b1v = jnp.where(lp < 120, b1[lp % 10], 0.0).reshape(1, 128)

    # ---- conv2: rows r = kh*128 + (10*w1p + ci), cols = par*128 + 20*w2p + co
    r = jnp.arange(640)
    r_kh2, r_l1 = r // 128, r % 128
    r_w1p, r_ci = r_l1 // 10, r_l1 % 10
    r_ok = r_l1 < 120
    l2 = jnp.arange(256)
    par2, rem2 = l2 // 128, l2 % 128
    w2p, co2 = rem2 // 20, rem2 % 20
    l_ok = rem2 < 80
    w_out2 = 2 * w2p + par2
    kw2 = r_w1p[:, None] - w_out2[None, :]                   # (640, 256)
    valid2 = (kw2 >= 0) & (kw2 < 5) & r_ok[:, None] & l_ok[None, :]
    t2 = w2[co2[None, :], r_ci[:, None], r_kh2[:, None], jnp.clip(kw2, 0, 4)]
    t2 = jnp.where(valid2, t2, 0.0)                          # (640, 256)
    b2v = jnp.where(lp < 80, b2[lp % 20], 0.0).reshape(1, 128)

    # ---- FC: rows r = h2p*128 + (20*w2p + co); torch flat = co*16 + h2p*4 + w2p
    rf = jnp.arange(512)
    f_h, f_l2 = rf // 128, rf % 128
    f_w2p, f_co = f_l2 // 20, f_l2 % 20
    f_ok = f_l2 < 80
    flat = jnp.clip(f_co, 0, 19) * 16 + f_h * 4 + jnp.clip(f_w2p, 0, 3)
    wfc_k = jnp.where(f_ok[:, None], wfc.T[flat], 0.0)       # (512, 10)
    wfc_k = jnp.pad(wfc_k, ((0, 0), (0, 118)))               # (512, 128)
    bfc_v = jnp.zeros((1, 128), jnp.float32).at[0, :10].set(bfc)

    return {
        "t1": t1.astype(dtype),
        "b1": b1v.astype(jnp.float32),
        "t2": t2.astype(dtype),
        "b2": b2v.astype(jnp.float32),
        "wfc": wfc_k.astype(dtype),
        "bfc": bfc_v.astype(jnp.float32),
    }


# ------------------------------ reference ---------------------------------- #

def cnn_reference(x, params):
    """Pure-JAX f32 reference for validation."""
    def conv(x, w, b):
        y = lax.conv_general_dilated(
            x, w, (1, 1), "VALID", dimension_numbers=("NCHW", "OIHW", "NCHW"))
        return y + b.reshape(1, -1, 1, 1)

    def pool(x):
        return lax.reduce_window(x, -jnp.inf, lax.max,
                                 (1, 1, 2, 2), (1, 1, 2, 2), "VALID")

    h = jax.nn.relu(pool(conv(x, params["w1"], params["b1"])))
    h = jax.nn.relu(pool(conv(h, params["w2"], params["b2"])))
    h = h.reshape(x.shape[0], -1)
    return h @ params["wfc"].T + params["bfc"]


def init_params(key):
    ks = jax.random.split(key, 6)

    def u(k, shape, fan_in):
        bound = 1.0 / jnp.sqrt(float(fan_in))
        return jax.random.uniform(k, shape, jnp.float32, -bound, bound)

    return {
        "w1": u(ks[0], (10, 1, 5, 5), 1 * 25),
        "b1": u(ks[1], (10,), 1 * 25),
        "w2": u(ks[2], (20, 10, 5, 5), 10 * 25),
        "b2": u(ks[3], (20,), 10 * 25),
        "wfc": u(ks[4], (10, 320), 320),
        "bfc": u(ks[5], (10,), 320),
    }


if __name__ == "__main__":
    key = jax.random.PRNGKey(0)
    k_param, k_x = jax.random.split(key)
    params = init_params(k_param)
    kparams = prepare_params(params)

    B = 64  # matches the module's hard-coded batch_size used in x.view(64, -1)
    x = jax.random.normal(k_x, (B, 1, 28, 28), jnp.float32)

    out = jax.jit(cnn_forward)(x, kparams)
    out = jax.block_until_ready(out)
    assert out.shape == (B, 10), out.shape

    ref = jax.block_until_ready(jax.jit(cnn_reference)(x, params))
    max_err = float(jnp.max(jnp.abs(out - ref)))
    assert max_err < 2e-2, f"max abs error {max_err}"

    print("KERNEL_OK")
</pallas_src>

<mosaic_0001>
module attributes {stable_mosaic.version = 11 : i64} {
  func.func @_cnn_fused_kernel(%arg0: i32, %arg1: memref<24x64x140xbf16, #tpu.memory_space<vmem>>, %arg2: memref<140x256xbf16, #tpu.memory_space<vmem>>, %arg3: memref<1x128xf32, #tpu.memory_space<vmem>>, %arg4: memref<640x256xbf16, #tpu.memory_space<vmem>>, %arg5: memref<1x128xf32, #tpu.memory_space<vmem>>, %arg6: memref<512x128xbf16, #tpu.memory_space<vmem>>, %arg7: memref<1x128xf32, #tpu.memory_space<vmem>>, %arg8: memref<64x128xf32, #tpu.memory_space<vmem>>) attributes {dimension_semantics = [#tpu.dimension_semantics<parallel>], iteration_bounds = array<i64: 1>, scalar_prefetch = 0 : i64, scratch_operands = 0 : i64, tpu.core_type = #tpu.core_type<tc>, window_params = [{transform_indices = @transform_0, window_bounds = array<i64: 24, 64, 140>}, {pipeline_mode = #tpu.pipeline_mode<synchronous>, transform_indices = @transform_1, window_bounds = array<i64: 140, 256>}, {pipeline_mode = #tpu.pipeline_mode<synchronous>, transform_indices = @transform_2, window_bounds = array<i64: 1, 128>}, {pipeline_mode = #tpu.pipeline_mode<synchronous>, transform_indices = @transform_3, window_bounds = array<i64: 640, 256>}, {pipeline_mode = #tpu.pipeline_mode<synchronous>, transform_indices = @transform_4, window_bounds = array<i64: 1, 128>}, {pipeline_mode = #tpu.pipeline_mode<synchronous>, transform_indices = @transform_5, window_bounds = array<i64: 512, 128>}, {pipeline_mode = #tpu.pipeline_mode<synchronous>, transform_indices = @transform_6, window_bounds = array<i64: 1, 128>}, {transform_indices = @transform_7, window_bounds = array<i64: 64, 128>}]} {
    %c0 = arith.constant 0 : index
    %c0_0 = arith.constant 0 : index
    %c0_1 = arith.constant 0 : index
    %0 = vector.load %arg1[%c0, %c0_0, %c0_1] : memref<24x64x140xbf16, #tpu.memory_space<vmem>>, vector<24x64x140xbf16>
    %1 = vector.shape_cast %0 : vector<24x64x140xbf16> to vector<1536x140xbf16>
    %c0_2 = arith.constant 0 : index
    %c0_3 = arith.constant 0 : index
    %2 = vector.load %arg2[%c0_2, %c0_3] : memref<140x256xbf16, #tpu.memory_space<vmem>>, vector<140x256xbf16>
    %cst = arith.constant dense<0.000000e+00> : vector<1536x256xf32>
    %3 = tpu.matmul %1, %2, %cst {dimension_numbers = #tpu.dot_dimension_numbers<[1], [0], [0], [1], [0, 0, 1, 1], [], []>} : vector<1536x140xbf16>, vector<140x256xbf16>, vector<1536x256xf32> -> vector<1536x256xf32>
    %4 = vector.shape_cast %3 : vector<1536x256xf32> to vector<12x2x64x256xf32>
    %5 = vector.extract_strided_slice %4 {offsets = [0, 0, 0, 0], sizes = [12, 1, 64, 256], strides = [1, 1, 1, 1]} : vector<12x2x64x256xf32> to vector<12x1x64x256xf32>
    %6 = vector.shape_cast %5 : vector<12x1x64x256xf32> to vector<12x64x256xf32>
    %7 = vector.extract_strided_slice %4 {offsets = [0, 1, 0, 0], sizes = [12, 1, 64, 256], strides = [1, 1, 1, 1]} : vector<12x2x64x256xf32> to vector<12x1x64x256xf32>
    %8 = vector.shape_cast %7 : vector<12x1x64x256xf32> to vector<12x64x256xf32>
    %9 = arith.maximumf %6, %8 : vector<12x64x256xf32>
    %10 = vector.extract_strided_slice %9 {offsets = [0, 0, 0], sizes = [12, 64, 128], strides = [1, 1, 1]} : vector<12x64x256xf32> to vector<12x64x128xf32>
    %11 = vector.extract_strided_slice %9 {offsets = [0, 0, 128], sizes = [12, 64, 128], strides = [1, 1, 1]} : vector<12x64x256xf32> to vector<12x64x128xf32>
    %12 = arith.maximumf %10, %11 : vector<12x64x128xf32>
    %c0_4 = arith.constant 0 : index
    %c0_5 = arith.constant 0 : index
    %13 = vector.load %arg3[%c0_4, %c0_5] : memref<1x128xf32, #tpu.memory_space<vmem>>, vector<1x128xf32>
    %14 = vector.shape_cast %13 : vector<1x128xf32> to vector<1x1x128xf32>
    %15 = vector.broadcast %14 : vector<1x1x128xf32> to vector<12x64x128xf32>
    %16 = arith.addf %12, %15 : vector<12x64x128xf32>
    %cst_6 = arith.constant 0.000000e+00 : f32
    %17 = vector.broadcast %cst_6 : f32 to vector<12x64x128xf32>
    %18 = arith.maximumf %16, %17 : vector<12x64x128xf32>
    %19 = arith.truncf %18 : vector<12x64x128xf32> to vector<12x64x128xbf16>
    %20 = vector.extract_strided_slice %19 {offsets = [0, 0, 0], sizes = [8, 64, 128], strides = [1, 1, 1]} : vector<12x64x128xbf16> to vector<8x64x128xbf16>
    %21 = vector.extract_strided_slice %19 {offsets = [1, 0, 0], sizes = [8, 64, 128], strides = [1, 1, 1]} : vector<12x64x128xbf16> to vector<8x64x128xbf16>
    %22 = vector.extract_strided_slice %19 {offsets = [2, 0, 0], sizes = [8, 64, 128], strides = [1, 1, 1]} : vector<12x64x128xbf16> to vector<8x64x128xbf16>
    %23 = vector.extract_strided_slice %19 {offsets = [3, 0, 0], sizes = [8, 64, 128], strides = [1, 1, 1]} : vector<12x64x128xbf16> to vector<8x64x128xbf16>
    %24 = vector.extract_strided_slice %19 {offsets = [4, 0, 0], sizes = [8, 64, 128], strides = [1, 1, 1]} : vector<12x64x128xbf16> to vector<8x64x128xbf16>
    %25 = tpu.concatenate %20, %21, %22, %23, %24 in 2 : vector<8x64x128xbf16>, vector<8x64x128xbf16>, vector<8x64x128xbf16>, vector<8x64x128xbf16>, vector<8x64x128xbf16> -> vector<8x64x640xbf16>
    %26 = vector.shape_cast %25 : vector<8x64x640xbf16> to vector<512x640xbf16>
    %c0_7 = arith.constant 0 : index
    %c0_8 = arith.constant 0 : index
    %27 = vector.load %arg4[%c0_7, %c0_8] : memref<640x256xbf16, #tpu.memory_space<vmem>>, vector<640x256xbf16>
    %cst_9 = arith.constant dense<0.000000e+00> : vector<512x256xf32>
    %28 = tpu.matmul %26, %27, %cst_9 {dimension_numbers = #tpu.dot_dimension_numbers<[1], [0], [0], [1], [0, 0, 1, 1], [], []>} : vector<512x640xbf16>, vector<640x256xbf16>, vector<512x256xf32> -> vector<512x256xf32>
    %29 = vector.shape_cast %28 : vector<512x256xf32> to vector<4x2x64x256xf32>
    %30 = vector.extract_strided_slice %29 {offsets = [0, 0, 0, 0], sizes = [4, 1, 64, 256], strides = [1, 1, 1, 1]} : vector<4x2x64x256xf32> to vector<4x1x64x256xf32>
    %31 = vector.shape_cast %30 : vector<4x1x64x256xf32> to vector<4x64x256xf32>
    %32 = vector.extract_strided_slice %29 {offsets = [0, 1, 0, 0], sizes = [4, 1, 64, 256], strides = [1, 1, 1, 1]} : vector<4x2x64x256xf32> to vector<4x1x64x256xf32>
    %33 = vector.shape_cast %32 : vector<4x1x64x256xf32> to vector<4x64x256xf32>
    %34 = arith.maximumf %31, %33 : vector<4x64x256xf32>
    %35 = vector.extract_strided_slice %34 {offsets = [0, 0, 0], sizes = [4, 64, 128], strides = [1, 1, 1]} : vector<4x64x256xf32> to vector<4x64x128xf32>
    %36 = vector.extract_strided_slice %34 {offsets = [0, 0, 128], sizes = [4, 64, 128], strides = [1, 1, 1]} : vector<4x64x256xf32> to vector<4x64x128xf32>
    %37 = arith.maximumf %35, %36 : vector<4x64x128xf32>
    %c0_10 = arith.constant 0 : index
    %c0_11 = arith.constant 0 : index
    %38 = vector.load %arg5[%c0_10, %c0_11] : memref<1x128xf32, #tpu.memory_space<vmem>>, vector<1x128xf32>
    %39 = vector.shape_cast %38 : vector<1x128xf32> to vector<1x1x128xf32>
    %40 = vector.broadcast %39 : vector<1x1x128xf32> to vector<4x64x128xf32>
    %41 = arith.addf %37, %40 : vector<4x64x128xf32>
    %cst_12 = arith.constant 0.000000e+00 : f32
    %42 = vector.broadcast %cst_12 : f32 to vector<4x64x128xf32>
    %43 = arith.maximumf %41, %42 : vector<4x64x128xf32>
    %44 = arith.truncf %43 : vector<4x64x128xf32> to vector<4x64x128xbf16>
    %45 = vector.extract_strided_slice %44 {offsets = [0, 0, 0], sizes = [1, 64, 128], strides = [1, 1, 1]} : vector<4x64x128xbf16> to vector<1x64x128xbf16>
    %46 = vector.shape_cast %45 : vector<1x64x128xbf16> to vector<64x128xbf16>
    %47 = vector.extract_strided_slice %44 {offsets = [1, 0, 0], sizes = [1, 64, 128], strides = [1, 1, 1]} : vector<4x64x128xbf16> to vector<1x64x128xbf16>
    %48 = vector.shape_cast %47 : vector<1x64x128xbf16> to vector<64x128xbf16>
    %49 = vector.extract_strided_slice %44 {offsets = [2, 0, 0], sizes = [1, 64, 128], strides = [1, 1, 1]} : vector<4x64x128xbf16> to vector<1x64x128xbf16>
    %50 = vector.shape_cast %49 : vector<1x64x128xbf16> to vector<64x128xbf16>
    %51 = vector.extract_strided_slice %44 {offsets = [3, 0, 0], sizes = [1, 64, 128], strides = [1, 1, 1]} : vector<4x64x128xbf16> to vector<1x64x128xbf16>
    %52 = vector.shape_cast %51 : vector<1x64x128xbf16> to vector<64x128xbf16>
    %53 = tpu.concatenate %46, %48, %50, %52 in 1 : vector<64x128xbf16>, vector<64x128xbf16>, vector<64x128xbf16>, vector<64x128xbf16> -> vector<64x512xbf16>
    %c0_13 = arith.constant 0 : index
    %c0_14 = arith.constant 0 : index
    %54 = vector.load %arg6[%c0_13, %c0_14] : memref<512x128xbf16, #tpu.memory_space<vmem>>, vector<512x128xbf16>
    %cst_15 = arith.constant dense<0.000000e+00> : vector<64x128xf32>
    %55 = tpu.matmul %53, %54, %cst_15 {dimension_numbers = #tpu.dot_dimension_numbers<[1], [0], [0], [1], [0, 0, 1, 1], [], []>} : vector<64x512xbf16>, vector<512x128xbf16>, vector<64x128xf32> -> vector<64x128xf32>
    %c0_16 = arith.constant 0 : index
    %c0_17 = arith.constant 0 : index
    %56 = vector.load %arg7[%c0_16, %c0_17] : memref<1x128xf32, #tpu.memory_space<vmem>>, vector<1x128xf32>
    %57 = vector.broadcast %56 : vector<1x128xf32> to vector<64x128xf32>
    %58 = arith.addf %55, %57 : vector<64x128xf32>
    %c0_18 = arith.constant 0 : index
    %c0_19 = arith.constant 0 : index
    %59 = vector.load %arg8[%c0_18, %c0_19] : memref<64x128xf32, #tpu.memory_space<vmem>>, vector<64x128xf32>
    tpu.vector_store %arg8[%c0_18, %c0_19], %58 {strides = array<i32>} : memref<64x128xf32, #tpu.memory_space<vmem>>, vector<64x128xf32>,
    return
  }
  func.func @transform_0(%arg0: i32) -> (i32, i32, i32) {
    %c0_i32 = arith.constant 0 : i32
    %c0_i32_0 = arith.constant 0 : i32
    %c0_i32_1 = arith.constant 0 : i32
    return %c0_i32, %arg0, %c0_i32_0 : i32, i32, i32
  }
  func.func @transform_1(%arg0: i32) -> (i32, i32) {
    %c0_i32 = arith.constant 0 : i32
    %c0_i32_0 = arith.constant 0 : i32
    %c0_i32_1 = arith.constant 0 : i32
    return %c0_i32, %c0_i32_0 : i32, i32
  }
  func.func @transform_2(%arg0: i32) -> (i32, i32) {
    %c0_i32 = arith.constant 0 : i32
    %c0_i32_0 = arith.constant 0 : i32
    %c0_i32_1 = arith.constant 0 : i32
    return %c0_i32, %c0_i32_0 : i32, i32
  }
  func.func @transform_3(%arg0: i32) -> (i32, i32) {
    %c0_i32 = arith.constant 0 : i32
    %c0_i32_0 = arith.constant 0 : i32
    %c0_i32_1 = arith.constant 0 : i32
    return %c0_i32, %c0_i32_0 : i32, i32
  }
  func.func @transform_4(%arg0: i32) -> (i32, i32) {
    %c0_i32 = arith.constant 0 : i32
    %c0_i32_0 = arith.constant 0 : i32
    %c0_i32_1 = arith.constant 0 : i32
    return %c0_i32, %c0_i32_0 : i32, i32
  }
  func.func @transform_5(%arg0: i32) -> (i32, i32) {
    %c0_i32 = arith.constant 0 : i32
    %c0_i32_0 = arith.constant 0 : i32
    %c0_i32_1 = arith.constant 0 : i32
    return %c0_i32, %c0_i32_0 : i32, i32
  }
  func.func @transform_6(%arg0: i32) -> (i32, i32) {
    %c0_i32 = arith.constant 0 : i32
    %c0_i32_0 = arith.constant 0 : i32
    %c0_i32_1 = arith.constant 0 : i32
    return %c0_i32, %c0_i32_0 : i32, i32
  }
  func.func @transform_7(%arg0: i32) -> (i32, i32) {
    %c0_i32 = arith.constant 0 : i32
    %c0_i32_0 = arith.constant 0 : i32
    return %arg0, %c0_i32 : i32, i32
  }
}

</mosaic_0001>

<bundles_post_ra>
// kernel: cnn_forward.1
= control target key start
LH: loop header
LB: loop body
LE: loop exit
PB: predicated region body
PF: predicated region fallthrough
CT: control target
= control target key end

     0   :  { %vm1189_vm0 = vcmask 97280   ;;  %vm1478_vm1 = vcmask 1045504   ;;  %s8344_s1 = inlined_call_operand.vmem [shape: bf16[140,256], index: 1, kind: input, shape index: {}]   ;;  %s8345_s0 = inlined_call_operand.vmem [shape: bf16[24,64,140], index: 0, kind: input, shape index: {}]   ;;  %s8346_s3 = inlined_call_operand.vmem [shape: bf16[640,256], index: 3, kind: input, shape index: {}]   ;;  %s8347_s2 = inlined_call_operand.vmem [shape: f32[1,128], index: 2, kind: input, shape index: {}]   ;;  %s8348_s5 = inlined_call_operand.vmem [shape: bf16[512,128], index: 5, kind: input, shape index: {}]   ;;  %s8349_s4 = inlined_call_operand.vmem [shape: f32[1,128], index: 4, kind: input, shape index: {}]   ;;  %s8350_s6 = inlined_call_operand.vmem [shape: f32[1,128], index: 6, kind: input, shape index: {}]   ;;  %s8351_s7 = inlined_call_operand.vmem [shape: f32[64,128], index: 7, kind: output, shape index: {}]  }
   0x1   :  { %v5915_v0 = vld [vmem:[%s8344_s1 + $0x4] ss:$8 sps:$4 sm:$0xff]   ;;  %v5917_v1 = vld [vmem:[%s8344_s1] ss:$8 sps:$4 sm:$0xff]   ;;  %v5918_v2 = vld [vmem:[%s8344_s1 + $0x14] ss:$8 sps:$4 sm:$0xff]  }
   0x2   :  { %1485 = vmatprep.subr.bf16.mxu0 %v5915_v0  ;;  %v5920_v3 = vld [vmem:[%s8344_s1 + $0x10] ss:$8 sps:$4 sm:$0xff]   ;;  %v5921_v4 = vld [vmem:[%s8344_s1 + $0x24] ss:$8 sps:$4 sm:$0xff]   ;;  %v5923_v5 = vld [vmem:[%s8344_s1 + $0x20] ss:$8 sps:$4 sm:$0xff]  }
   0x3   :  { %1486 = vmatpush1.bf16.msra.mxu0 %v5917_v1  ;;  %v5924_v6 = vld [vmem:[%s8344_s1 + $0x34] ss:$8 sps:$4 sm:$0xff]   ;;  %v5926_v7 = vld [vmem:[%s8344_s1 + $0x30] ss:$8 sps:$4 sm:$0xff]   ;;  %v5927_v8 = vld [vmem:[%s8344_s1 + $0x44] ss:$8 sps:$4 sm:$0xff]  }
   0x4   :  { %1487 = vmatprep.subr.bf16.mxu0 %v5918_v2  ;;  %v5944_v9 = vld [vmem:[%s8345_s0 + $0x4] ss:$8 sps:$4 sm:$0xff]   ;;  %v5929_v10 = vld [vmem:[%s8344_s1 + $0x40] ss:$8 sps:$4 sm:$0xff]   ;;  %v5930_v11 = vld [vmem:[%s8344_s1 + $0x54] ss:$8 sps:$4 sm:$0xff]  }
   0x5   :  { %5351 = vmatprep.mubr.msk.bf16.mxu0 %vm1189_vm0, %v5944_v9  ;;  %v5932_v12 = vld [vmem:[%s8344_s1 + $0x50] ss:$8 sps:$4 sm:$0xff]   ;;  %v5933_v13 = vld [vmem:[%s8344_s1 + $0x64] ss:$8 sps:$4 sm:$0xff]   ;;  %v5935_v14 = vld [vmem:[%s8344_s1 + $0x60] ss:$8 sps:$4 sm:$0xff]  }
   0x6   :  { %v5936_v15 = vld [vmem:[%s8344_s1 + $0x74] ss:$8 sps:$4 sm:$0xff]   ;;  %v5938_v16 = vld [vmem:[%s8344_s1 + $0x70] ss:$8 sps:$4 sm:$0xff]   ;;  %v5942_v20 = vld [vmem:[%s8345_s0] ss:$8 sps:$4 sm:$0xff]  }
   0x7   :  { %1488 = vmatpush1.bf16.msra.mxu0 %v5920_v3  ;;  %v5939_v17 = vld [vmem:[%s8344_s1 + $0x84] ss:$8 sps:$4 sm:$0x3f]   ;;  %v5941_v18 = vld [vmem:[%s8344_s1 + $0x80] ss:$8 sps:$4 sm:$0x3f]  }
   0x8   :  { %1489 = vmatprep.subr.bf16.mxu0 %v5921_v4  ;;  %v1480_v19 = vsel %vm1478_vm1, %v5941_v18, 0  ;;  %v5945_v21 = vld [vmem:[%s8345_s0 + $0x14] ss:$8 sps:$4 sm:$0xff]   ;;  %v5947_v22 = vld [vmem:[%s8345_s0 + $0x10] ss:$8 sps:$4 sm:$0xff]  }
   0x9   :  { %v5948_v23 = vld [vmem:[%s8345_s0 + $0x24] ss:$8 sps:$4 sm:$0xff]   ;;  %v5950_v24 = vld [vmem:[%s8345_s0 + $0x20] ss:$8 sps:$4 sm:$0xff]   ;;  %v5951_v25 = vld [vmem:[%s8345_s0 + $0x34] ss:$8 sps:$4 sm:$0xff]  }
   0xa   :  { %v5953_v26 = vld [vmem:[%s8345_s0 + $0x30] ss:$8 sps:$4 sm:$0xff]   ;;  %v5954_v27 = vld [vmem:[%s8345_s0 + $0x44] ss:$8 sps:$4 sm:$0xff]   ;;  %v5956_v28 = vld [vmem:[%s8345_s0 + $0x40] ss:$8 sps:$4 sm:$0xff]  }
   0xb   :  { %1490 = vmatpush1.bf16.msra.mxu0 %v5923_v5  ;;  %v5957_v29 = vld [vmem:[%s8345_s0 + $0x54] ss:$8 sps:$4 sm:$0xff]   ;;  %v5959_v30 = vld [vmem:[%s8345_s0 + $0x50] ss:$8 sps:$4 sm:$0xff]   ;;  %v5960_v31 = vld [vmem:[%s8345_s0 + $0x64] ss:$8 sps:$4 sm:$0xff]  }
   0xc   :  { %1491 = vmatprep.subr.bf16.mxu0 %v5924_v6  ;;  %v5962_v32 = vld [vmem:[%s8345_s0 + $0x60] ss:$8 sps:$4 sm:$0xff]   ;;  %v5963_v33 = vld [vmem:[%s8345_s0 + $0x74] ss:$8 sps:$4 sm:$0xff]   ;;  %v5965_v34 = vld [vmem:[%s8345_s0 + $0x70] ss:$8 sps:$4 sm:$0xff]  }
   0xd   :  { %v5966_v35 = vld [vmem:[%s8345_s0 + $0x84] ss:$8 sps:$4 sm:$0xff]   ;;  %v5968_v36 = vld [vmem:[%s8345_s0 + $0x80] ss:$8 sps:$4 sm:$0xff]   ;;  %v5969_v37 = vld [vmem:[%s8345_s0 + $0x94] ss:$8 sps:$4 sm:$0xff]  }
   0xe   :  { %v5971_v38 = vld [vmem:[%s8345_s0 + $0x90] ss:$8 sps:$4 sm:$0xff]   ;;  %v5972_v39 = vld [vmem:[%s8345_s0 + $0xa4] ss:$8 sps:$4 sm:$0xff]   ;;  %v5974_v40 = vld [vmem:[%s8345_s0 + $0xa0] ss:$8 sps:$4 sm:$0xff]  }
   0xf   :  { %1492 = vmatpush1.bf16.msra.mxu0 %v5926_v7  ;;  %v5975_v41 = vld [vmem:[%s8345_s0 + $0xb4] ss:$8 sps:$4 sm:$0xff]   ;;  %v5977_v42 = vld [vmem:[%s8345_s0 + $0xb0] ss:$8 sps:$4 sm:$0xff]   ;;  %v5978_v43 = vld [vmem:[%s8345_s0 + $0xc4] ss:$8 sps:$4 sm:$0xff]  }
  0x10   :  { %1493 = vmatprep.subr.bf16.mxu0 %v5927_v8  ;;  %v5980_v44 = vld [vmem:[%s8345_s0 + $0xc0] ss:$8 sps:$4 sm:$0xff]   ;;  %v5981_v45 = vld [vmem:[%s8345_s0 + $0xd4] ss:$8 sps:$4 sm:$0xff]   ;;  %v5983_v46 = vld [vmem:[%s8345_s0 + $0xd0] ss:$8 sps:$4 sm:$0xff]  }
  0x11   :  { %v5984_v47 = vld [vmem:[%s8345_s0 + $0xe4] ss:$8 sps:$4 sm:$0xff]   ;;  %v5986_v48 = vld [vmem:[%s8345_s0 + $0xe0] ss:$8 sps:$4 sm:$0xff]   ;;  %v5987_v49 = vld [vmem:[%s8345_s0 + $0xf4] ss:$8 sps:$4 sm:$0xff]  }
  0x12   :  { %v5989_v50 = vld [vmem:[%s8345_s0 + $0xf0] ss:$8 sps:$4 sm:$0xff]   ;;  %v5990_v51 = vld [vmem:[%s8345_s0 + $0x104] ss:$8 sps:$4 sm:$0xff]   ;;  %v5992_v52 = vld [vmem:[%s8345_s0 + $0x100] ss:$8 sps:$4 sm:$0xff]  }
  0x13   :  { %1494 = vmatpush1.bf16.msra.mxu0 %v5929_v10  ;;  %v5993_v53 = vld [vmem:[%s8345_s0 + $0x114] ss:$8 sps:$4 sm:$0xff]   ;;  %v6041_v54 = vld [vmem:[%s8346_s3 + $0x4] ss:$8 sps:$4 sm:$0xff]   ;;  %v6043_v55 = vld [vmem:[%s8346_s3] ss:$8 sps:$4 sm:$0xff]  }
  0x14   :  { %1495 = vmatprep.subr.bf16.mxu0 %v5930_v11  ;;  %v5995_v56 = vld [vmem:[%s8345_s0 + $0x110] ss:$8 sps:$4 sm:$0xff]   ;;  %3493 = vmatprep.subr.bf16.mxu1 %v6041_v54  ;;  %v6044_v57 = vld [vmem:[%s8346_s3 + $0x14] ss:$8 sps:$4 sm:$0xff]   ;;  %v5996_v58 = vld [vmem:[%s8345_s0 + $0x124] ss:$8 sps:$4 sm:$0xff]  }
  0x15   :  { %3494 = vmatpush1.bf16.msra.mxu1 %v6043_v55  ;;  %v6048_v59 = vld [vmem:[%s8346_s3 + $0x10] ss:$8 sps:$4 sm:$0xff]   ;;  %v6050_v60 = vld [vmem:[%s8346_s3 + $0x24] ss:$8 sps:$4 sm:$0xff]   ;;  %v6052_v61 = vld [vmem:[%s8346_s3 + $0x20] ss:$8 sps:$4 sm:$0xff]  }
  0x16   :  { %3495 = vmatprep.subr.bf16.mxu1 %v6044_v57  ;;  %v5998_v62 = vld [vmem:[%s8345_s0 + $0x120] ss:$8 sps:$4 sm:$0xff]   ;;  %v6053_v63 = vld [vmem:[%s8346_s3 + $0x34] ss:$8 sps:$4 sm:$0xff]   ;;  %v6057_v1 = vld [vmem:[%s8346_s3 + $0x30] ss:$8 sps:$4 sm:$0xff]  }
  0x17   :  { %1496 = vmatpush1.bf16.msra.mxu0 %v5932_v12  ;;  %v5999_v0 = vld [vmem:[%s8345_s0 + $0x134] ss:$8 sps:$4 sm:$0xff]   ;;  %v6059_v2 = vld [vmem:[%s8346_s3 + $0x44] ss:$8 sps:$4 sm:$0xff]   ;;  %v6061_v3 = vld [vmem:[%s8346_s3 + $0x40] ss:$8 sps:$4 sm:$0xff]  }
  0x18   :  { %1497 = vmatprep.subr.bf16.mxu0 %v5933_v13  ;;  %v6001_v4 = vld [vmem:[%s8345_s0 + $0x130] ss:$8 sps:$4 sm:$0xff]   ;;  %v6062_v5 = vld [vmem:[%s8346_s3 + $0x54] ss:$8 sps:$4 sm:$0xff]   ;;  %v6002_v6 = vld [vmem:[%s8345_s0 + $0x144] ss:$8 sps:$4 sm:$0xff]  }
  0x19   :  { %3496 = vmatpush1.bf16.msra.mxu1 %v6048_v59  ;;  %v6066_v7 = vld [vmem:[%s8346_s3 + $0x50] ss:$8 sps:$4 sm:$0xff]   ;;  %v6068_v8 = vld [vmem:[%s8346_s3 + $0x64] ss:$8 sps:$4 sm:$0xff]   ;;  %v6070_v9 = vld [vmem:[%s8346_s3 + $0x60] ss:$8 sps:$4 sm:$0xff]  }
  0x1a   :  { %3497 = vmatprep.subr.bf16.mxu1 %v6050_v60  ;;  %v6004_v10 = vld [vmem:[%s8345_s0 + $0x140] ss:$8 sps:$4 sm:$0xff]   ;;  %v6071_v11 = vld [vmem:[%s8346_s3 + $0x74] ss:$8 sps:$4 sm:$0xff]   ;;  %v6075_v13 = vld [vmem:[%s8346_s3 + $0x70] ss:$8 sps:$4 sm:$0xff]  }
  0x1b   :  { %1498 = vmatpush1.bf16.msra.mxu0 %v5935_v14  ;;  %v6005_v12 = vld [vmem:[%s8345_s0 + $0x154] ss:$8 sps:$4 sm:$0xff]   ;;  %v6077_v14 = vld [vmem:[%s8346_s3 + $0x84] ss:$8 sps:$4 sm:$0xff]  }
  0x1c   :  { %1499 = vmatprep.subr.bf16.mxu0 %v5936_v15  ;;  %v6079_v15 = vld [vmem:[%s8346_s3 + $0x80] ss:$8 sps:$4 sm:$0xff]   ;;  %v6008_v18 = vld [vmem:[%s8345_s0 + $0x164] ss:$8 sps:$4 sm:$0xff]  }
  0x1d   :  { %3498 = vmatpush1.bf16.msra.mxu1 %v6052_v61 }
  0x1e   :  { %3499 = vmatprep.subr.bf16.mxu1 %v6053_v63 }
  0x1f   :  { %1500 = vmatpush1.bf16.msra.mxu0 %v5938_v16  ;;  %v6007_v16 = vld [vmem:[%s8345_s0 + $0x150] ss:$8 sps:$4 sm:$0xff]  }
  0x20   :  { %5350 = vmatprep.subr.msk.bf16.mxu0 %vm1478_vm1, %v5939_v17  ;;  %v6080_v17 = vld [vmem:[%s8346_s3 + $0x94] ss:$8 sps:$4 sm:$0xff]  }
  0x21   :  { %3500 = vmatpush1.bf16.msra.mxu1 %v6057_v1 }
  0x22   :  { %3501 = vmatprep.subr.bf16.mxu1 %v6059_v2 }
  0x23   :  { %1502 = vmatpush1.bf16.msra.mxu0 %v1480_v19  ;;  %v6084_v19 = vld [vmem:[%s8346_s3 + $0x90] ss:$8 sps:$4 sm:$0xff]  }
  0x25   :  { %3502 = vmatpush1.bf16.msra.mxu1 %v6061_v3 }
  0x26   :  { %1518 = vmatmul.mubr.bf16.vlgmr.msra.gmra.mrb[0].mxu0 %v5942_v20  ;;  %3503 = vmatprep.subr.bf16.mxu1 %v6062_v5  ;;  %v6086_v20 = vld [vmem:[%s8346_s3 + $0xa4] ss:$8 sps:$4 sm:$0xff]   ;;  %v6037_v5 = vld [vmem:[%s8345_s0 + $0x1f0] ss:$8 sps:$4 sm:$0xff]  }
  0x27   :  { %5352 = vmatprep.mubr.msk.bf16.mxu0 %vm1189_vm0, %v5945_v21  ;;  %v6088_v21 = vld [vmem:[%s8346_s3 + $0xa0] ss:$8 sps:$4 sm:$0xff]  }
  0x29   :  { %3504 = vmatpush1.bf16.msra.mxu1 %v6066_v7 }
  0x2a   :  { %3505 = vmatprep.subr.bf16.mxu1 %v6068_v8  ;;  %v6038_v8 = vld [vmem:[%s8345_s0 + $0x204] ss:$8 sps:$4 sm:$0xff]  }
  0x2d   :  { %3506 = vmatpush1.bf16.msra.mxu1 %v6070_v9 }
  0x2e   :  { %1528 = vmatmul.mubr.bf16.gmra.mrb[4].mxu0 %v5947_v22  ;;  %3507 = vmatprep.subr.bf16.mxu1 %v6071_v11  ;;  %v6010_v22 = vld [vmem:[%s8345_s0 + $0x160] ss:$8 sps:$4 sm:$0xff]  }
  0x2f   :  { %5353 = vmatprep.mubr.msk.bf16.mxu0 %vm1189_vm0, %v5948_v23  ;;  %v6089_v23 = vld [vmem:[%s8346_s3 + $0xb4] ss:$8 sps:$4 sm:$0xff]   ;;  %v6821_v11 = vld [vmem:[%s8347_s2] ss:$0 sm:$0xff] }
  0x31   :  { %3508 = vmatpush1.bf16.msra.mxu1 %v6075_v13 }
  0x32   :  { %3509 = vmatprep.subr.bf16.mxu1 %v6077_v14 }
  0x35   :  { %3510 = vmatpush1.bf16.msra.mxu1 %v6079_v15 }
  0x36   :  { %1538 = vmatmul.mubr.bf16.gmra.mrb[8].mxu0 %v5950_v24  ;;  %3511 = vmatprep.subr.bf16.mxu1 %v6080_v17  ;;  %v6011_v24 = vld [vmem:[%s8345_s0 + $0x174] ss:$8 sps:$4 sm:$0xff]  }
  0x37   :  { %5354 = vmatprep.mubr.msk.bf16.mxu0 %vm1189_vm0, %v5951_v25  ;;  %v6093_v25 = vld [vmem:[%s8346_s3 + $0xb0] ss:$8 sps:$4 sm:$0xff]  }
  0x39   :  { %3512 = vmatpush1.bf16.msra.mxu1 %v6084_v19 }
  0x3a   :  { %3513 = vmatprep.subr.bf16.mxu1 %v6086_v20  ;;  %v6040_v20 = vld [vmem:[%s8345_s0 + $0x200] ss:$8 sps:$4 sm:$0xff]  }
  0x3d   :  { %3514 = vmatpush1.bf16.msra.mxu1 %v6088_v21 }
  0x3e   :  { %1548 = vmatmul.mubr.bf16.gmra.mrb[12].mxu0 %v5953_v26  ;;  %3515 = vmatprep.subr.bf16.mxu1 %v6089_v23  ;;  %v6095_v26 = vld [vmem:[%s8346_s3 + $0xc4] ss:$8 sps:$4 sm:$0xff]   ;;  %v6046_v23 = vld [vmem:[%s8345_s0 + $0x214] ss:$8 sps:$4 sm:$0xff]  }
  0x3f   :  { %5355 = vmatprep.mubr.msk.bf16.mxu0 %vm1189_vm0, %v5954_v27  ;;  %v6097_v27 = vld [vmem:[%s8346_s3 + $0xc0] ss:$8 sps:$4 sm:$0xff]  }
  0x41   :  { %3516 = vmatpush1.bf16.msra.mxu1 %v6093_v25 }
  0x42   :  { %3517 = vmatprep.subr.bf16.mxu1 %v6095_v26 }
  0x45   :  { %3518 = vmatpush1.bf16.msra.mxu1 %v6097_v27 }
  0x46   :  { %1558 = vmatmul.mubr.bf16.gmra.mrb[16].mxu0 %v5956_v28  ;;  %v6013_v28 = vld [vmem:[%s8345_s0 + $0x170] ss:$8 sps:$4 sm:$0xff]  }
  0x47   :  { %5356 = vmatprep.mubr.msk.bf16.mxu0 %vm1189_vm0, %v5957_v29  ;;  %v6098_v29 = vld [vmem:[%s8346_s3 + $0xd4] ss:$8 sps:$4 sm:$0xff]  }
  0x48   :  { %3519 = vmatprep.subr.bf16.mxu1 %v6098_v29 }
  0x4e   :  { %1568 = vmatmul.mubr.bf16.gmra.mrb[20].mxu0 %v5959_v30  ;;  %v6014_v30 = vld [vmem:[%s8345_s0 + $0x184] ss:$8 sps:$4 sm:$0xff]  }
  0x4f   :  { %5357 = vmatprep.mubr.msk.bf16.mxu0 %vm1189_vm0, %v5960_v31  ;;  %v6102_v31 = vld [vmem:[%s8346_s3 + $0xd0] ss:$8 sps:$4 sm:$0xff]  }
  0x50   :  { %3520 = vmatpush1.bf16.msra.mxu1 %v6102_v31 }
  0x56   :  { %1578 = vmatmul.mubr.bf16.gmra.mrb[24].mxu0 %v5962_v32  ;;  %v6104_v32 = vld [vmem:[%s8346_s3 + $0xe4] ss:$8 sps:$4 sm:$0xff]  }
  0x57   :  { %5358 = vmatprep.mubr.msk.bf16.mxu0 %vm1189_vm0, %v5963_v33  ;;  %v6106_v33 = vld [vmem:[%s8346_s3 + $0xe0] ss:$8 sps:$4 sm:$0xff]   ;;  %3521 = vmatprep.subr.bf16.mxu1 %v6104_v32 }
  0x58   :  { %3522 = vmatpush1.bf16.msra.mxu1 %v6106_v33 }
  0x5e   :  { %1588 = vmatmul.mubr.bf16.gmra.mrb[28].mxu0 %v5965_v34  ;;  %v6016_v34 = vld [vmem:[%s8345_s0 + $0x180] ss:$8 sps:$4 sm:$0xff]  }
  0x5f   :  { %5359 = vmatprep.mubr.msk.bf16.mxu0 %vm1189_vm0, %v5966_v35  ;;  %v6107_v35 = vld [vmem:[%s8346_s3 + $0xf4] ss:$8 sps:$4 sm:$0xff]  }
  0x60   :  { %3523 = vmatprep.subr.bf16.mxu1 %v6107_v35 }
  0x66   :  { %1598 = vmatmul.mubr.bf16.gmra.mrb[32].mxu0 %v5968_v36  ;;  %v6017_v36 = vld [vmem:[%s8345_s0 + $0x194] ss:$8 sps:$4 sm:$0xff]  }
  0x67   :  { %5360 = vmatprep.mubr.msk.bf16.mxu0 %vm1189_vm0, %v5969_v37  ;;  %v6111_v37 = vld [vmem:[%s8346_s3 + $0xf0] ss:$8 sps:$4 sm:$0xff]  }
  0x68   :  { %3524 = vmatpush1.bf16.msra.mxu1 %v6111_v37  ;;  %v6049_v37 = vld [vmem:[%s8345_s0 + $0x210] ss:$8 sps:$4 sm:$0xff]  }
  0x6e   :  { %1608 = vmatmul.mubr.bf16.gmra.mrb[36].mxu0 %v5971_v38  ;;  %v6019_v38 = vld [vmem:[%s8345_s0 + $0x190] ss:$8 sps:$4 sm:$0xff]  }
  0x6f   :  { %5361 = vmatprep.mubr.msk.bf16.mxu0 %vm1189_vm0, %v5972_v39  ;;  %v6020_v39 = vld [vmem:[%s8345_s0 + $0x1a4] ss:$8 sps:$4 sm:$0xff]  }
  0x76   :  { %1618 = vmatmul.mubr.bf16.gmra.mrb[40].mxu0 %v5974_v40  ;;  %v6022_v40 = vld [vmem:[%s8345_s0 + $0x1a0] ss:$8 sps:$4 sm:$0xff]  }
  0x77   :  { %5362 = vmatprep.mubr.msk.bf16.mxu0 %vm1189_vm0, %v5975_v41  ;;  %v6023_v41 = vld [vmem:[%s8345_s0 + $0x1b4] ss:$8 sps:$4 sm:$0xff]  }
  0x7e   :  { %1628 = vmatmul.mubr.bf16.gmra.mrb[44].mxu0 %v5977_v42 }
  0x7f   :  { %5363 = vmatprep.mubr.msk.bf16.mxu0 %vm1189_vm0, %v5978_v43 }
  0x86   :  { %1638 = vmatmul.mubr.bf16.gmra.mrb[48].mxu0 %v5980_v44  ;;  %v6025_v44 = vld [vmem:[%s8345_s0 + $0x1b0] ss:$8 sps:$4 sm:$0xff]  }
  0x87   :  { %5364 = vmatprep.mubr.msk.bf16.mxu0 %vm1189_vm0, %v5981_v45 }
  0x8e   :  { %1648 = vmatmul.mubr.bf16.gmra.mrb[52].mxu0 %v5983_v46  ;;  %v6026_v46 = vld [vmem:[%s8345_s0 + $0x1c4] ss:$8 sps:$4 sm:$0xff]  }
  0x8f   :  { %5365 = vmatprep.mubr.msk.bf16.mxu0 %vm1189_vm0, %v5984_v47 }
  0x96   :  { %1658 = vmatmul.mubr.bf16.gmra.mrb[56].mxu0 %v5986_v48 }
  0x97   :  { %5366 = vmatprep.mubr.msk.bf16.mxu0 %vm1189_vm0, %v5987_v49 }
  0x9e   :  { %1668 = vmatmul.mubr.bf16.gmra.mrb[60].mxu0 %v5989_v50  ;;  %v6028_v50 = vld [vmem:[%s8345_s0 + $0x1c0] ss:$8 sps:$4 sm:$0xff]  }
  0x9f   :  { %5367 = vmatprep.mubr.msk.bf16.mxu0 %vm1189_vm0, %v5990_v51 }
  0xa6   :  { %1678 = vmatmul.mubr.bf16.gmra.mrb[64].mxu0 %v5992_v52  ;;  %v6029_v52 = vld [vmem:[%s8345_s0 + $0x1d4] ss:$8 sps:$4 sm:$0xff]  }
  0xa7   :  { %5368 = vmatprep.mubr.msk.bf16.mxu0 %vm1189_vm0, %v5993_v53 }
  0xae   :  { %1688 = vmatmul.mubr.bf16.gmra.mrb[68].mxu0 %v5995_v56  ;;  %v6031_v56 = vld [vmem:[%s8345_s0 + $0x1d0] ss:$8 sps:$4 sm:$0xff]  }
  0xaf   :  { %5369 = vmatprep.mubr.msk.bf16.mxu0 %vm1189_vm0, %v5996_v58  ;;  %v6032_v58 = vld [vmem:[%s8345_s0 + $0x1e4] ss:$8 sps:$4 sm:$0xff]  }
  0xb6   :  { %1698 = vmatmul.mubr.bf16.gmra.mrb[72].mxu0 %v5998_v62  ;;  %v6034_v62 = vld [vmem:[%s8345_s0 + $0x1e0] ss:$8 sps:$4 sm:$0xff]  }
  0xb7   :  { %5370 = vmatprep.mubr.msk.bf16.mxu0 %vm1189_vm0, %v5999_v0  ;;  %v6035_v0 = vld [vmem:[%s8345_s0 + $0x1f4] ss:$8 sps:$4 sm:$0xff]  }
  0xbe   :  { %1708 = vmatmul.mubr.bf16.gmra.mrb[76].mxu0 %v6001_v4 }
  0xbf   :  { %5371 = vmatprep.mubr.msk.bf16.mxu0 %vm1189_vm0, %v6002_v6 }
  0xc6   :  { %1718 = vmatmul.mubr.bf16.gmra.mrb[80].mxu0 %v6004_v10 }
  0xc7   :  { %5372 = vmatprep.mubr.msk.bf16.mxu0 %vm1189_vm0, %v6005_v12 }
  0xce   :  { %1728 = vmatmul.mubr.bf16.gmra.mrb[84].mxu0 %v6007_v16 }
  0xcf   :  { %5373 = vmatprep.mubr.msk.bf16.mxu0 %vm1189_vm0, %v6008_v18 }
  0xd6   :  { %1738 = vmatmul.mubr.bf16.gmra.mrb[88].mxu0 %v6010_v22 }
  0xd7   :  { %5374 = vmatprep.mubr.msk.bf16.mxu0 %vm1189_vm0, %v6011_v24 }
  0xde   :  { %1748 = vmatmul.mubr.bf16.gmra.mrb[92].mxu0 %v6013_v28 }
  0xdf   :  { %5375 = vmatprep.mubr.msk.bf16.mxu0 %vm1189_vm0, %v6014_v30 }
  0xe6   :  { %1758 = vmatmul.mubr.bf16.gmra.mrb[96].mxu0 %v6016_v34 }
  0xe7   :  { %5376 = vmatprep.mubr.msk.bf16.mxu0 %vm1189_vm0, %v6017_v36 }
  0xee   :  { %1768 = vmatmul.mubr.bf16.gmra.mrb[100].mxu0 %v6019_v38 }
  0xef   :  { %5377 = vmatprep.mubr.msk.bf16.mxu0 %vm1189_vm0, %v6020_v39 }
  0xf6   :  { %1778 = vmatmul.mubr.bf16.gmra.mrb[104].mxu0 %v6022_v40  ;;  %v6055_v40 = vld [vmem:[%s8345_s0 + $0x224] ss:$8 sps:$4 sm:$0xff]  }
  0xf7   :  { %5378 = vmatprep.mubr.msk.bf16.mxu0 %vm1189_vm0, %v6023_v41 }
  0xf9   :  { %v1519_v42 = vpop.f32.mrb[0].mxu0 }
  0xfa   :  { %v1521_v43 = vpop.f32.mrb[1].mxu0 }
  0xfb   :  { %v1523_v45 = vpop.f32.mrb[2].mxu0 }
  0xfc   :  { %v1525_v47 = vpop.f32.mrb[3].mxu0 }
  0xfe   :  { %1788 = vmatmul.mubr.bf16.gmra.mrb[108].mxu0 %v6025_v44 }
  0xff   :  { %5379 = vmatprep.mubr.msk.bf16.mxu0 %vm1189_vm0, %v6026_v46 }
 0x101   :  { %v1529_v48 = vpop.f32.mrb[4].mxu0 }
 0x102   :  { %v1531_v49 = vpop.f32.mrb[5].mxu0 }
 0x103   :  { %v1533_v51 = vpop.f32.mrb[6].mxu0 }
 0x104   :  { %v1535_v53 = vpop.f32.mrb[7].mxu0 }
 0x106   :  { %1798 = vmatmul.mubr.bf16.gmra.mrb[112].mxu0 %v6028_v50 }
 0x107   :  { %5380 = vmatprep.mubr.msk.bf16.mxu0 %vm1189_vm0, %v6029_v52 }
 0x109   :  { %v6782_v54 = vpop.f32.mrb[8].mxu0 }
 0x10a   :  { %v6784_v55 = vpop.f32.mrb[9].mxu0 }
 0x10b   :  { %v6789_v57 = vpop.f32.mrb[10].mxu0 }
 0x10c   :  { %v6794_v59 = vpop.f32.mrb[11].mxu0 }
 0x10e   :  { %1808 = vmatmul.mubr.bf16.gmra.mrb[116].mxu0 %v6031_v56 }
 0x10f   :  { %5381 = vmatprep.mubr.msk.bf16.mxu0 %vm1189_vm0, %v6032_v58 }
 0x111   :  { %v6797_v60 = vpop.f32.mrb[12].mxu0 }
 0x112   :  { %v6799_v61 = vpop.f32.mrb[13].mxu0 }
 0x113   :  { %v6804_v63 = vpop.f32.mrb[14].mxu0 }
 0x114   :  { %v6809_v1 = vpop.f32.mrb[15].mxu0 }
 0x116   :  { %1818 = vmatmul.mubr.bf16.gmra.mrb[120].mxu0 %v6034_v62 }
 0x117   :  { %5382 = vmatprep.mubr.msk.bf16.mxu0 %vm1189_vm0, %v6035_v0 }
 0x119   :  { %v1559_v2 = vpop.f32.mrb[16].mxu0 }
 0x11a   :  { %v2478_v3 = vmax.f32 %v1519_v42, %v1559_v2  ;;  %v1561_v4 = vpop.f32.mrb[17].mxu0 }
 0x11b   :  { %v2479_v6 = vmax.f32 %v1521_v43, %v1561_v4  ;;  %v1563_v7 = vpop.f32.mrb[18].mxu0 }
 0x11c   :  { %v2480_v9 = vmax.f32 %v1523_v45, %v1563_v7  ;;  %v1565_v10 = vpop.f32.mrb[19].mxu0 }
 0x11d   :  { %v2670_v12 = vmax.f32 %v2478_v3, %v2479_v6  ;;  %v2481_v13 = vmax.f32 %v1525_v47, %v1565_v10 }
 0x11e   :  { %1828 = vmatmul.mubr.bf16.gmra.mrb[124].mxu0 %v6037_v5 }
 0x11f   :  { %v2671_v14 = vmax.f32 %v2480_v9, %v2481_v13  ;;  %5383 = vmatprep.mubr.msk.bf16.mxu0 %vm1189_vm0, %v6038_v8  ;;  %v2773_v15 = vadd.f32 %v6821_v11, %v2670_v12 }
 0x121   :  { %v1569_v16 = vpop.f32.mrb[20].mxu0  ;;  %v2774_v17 = vadd.f32 %v6821_v11, %v2671_v14  ;;  %v2869_v24 = vmax.f32 %v2773_v15, 0.0 }
 0x122   :  { %v2482_v18 = vmax.f32 %v1529_v48, %v1569_v16  ;;  %v1571_v19 = vpop.f32.mrb[21].mxu0  ;;  %v6076_v16 = vld [vmem:[%s8345_s0 + $0x240] ss:$8 sps:$4 sm:$0xff]  }
 0x123   :  { %v2483_v21 = vmax.f32 %v1531_v49, %v1571_v19  ;;  %v1573_v22 = vpop.f32.mrb[22].mxu0  ;;  %v2870_v25 = vmax.f32 %v2774_v17, 0.0 }
 0x124   :  { %v2484_v26 = vmax.f32 %v1533_v51, %v1573_v22  ;;  %v1575_v27 = vpop.f32.mrb[23].mxu0  ;;  %v6085_v22 = vld [vmem:[%s8345_s0 + $0x250] ss:$8 sps:$4 sm:$0xff]  }
 0x125   :  { %v2672_v28 = vmax.f32 %v2482_v18, %v2483_v21  ;;  %v2485_v29 = vmax.f32 %v1535_v53, %v1575_v27  ;;  %v6832_v30 = vpack.c.bf16 %v2870_v25, %v2869_v24  ;;  %v6082_v18 = vld [vmem:[%s8345_s0 + $0x254] ss:$8 sps:$4 sm:$0xff]   ;;  %v6091_v24 = vld [vmem:[%s8345_s0 + $0x264] ss:$8 sps:$4 sm:$0xff]  }
 0x126   :  { %1838 = vmatmul.mubr.bf16.gmra.mrb[128].mxu0 %v6040_v20 }
 0x127   :  { %v2673_v31 = vmax.f32 %v2484_v26, %v2485_v29  ;;  %5384 = vmatprep.mubr.msk.bf16.mxu0 %vm1189_vm0, %v6046_v23  ;;  %v2775_v32 = vadd.f32 %v6821_v11, %v2672_v28  ;;  %v6094_v28 = vld [vmem:[%s8345_s0 + $0x260] ss:$8 sps:$4 sm:$0xff]  }
 0x129   :  { %v1579_v33 = vpop.f32.mrb[24].mxu0  ;;  %v2776_v34 = vadd.f32 %v6821_v11, %v2673_v31  ;;  %v2871_v41 = vmax.f32 %v2775_v32, 0.0  ;;  %v6100_v31 = vld [vmem:[%s8345_s0 + $0x274] ss:$8 sps:$4 sm:$0xff]  }
 0x12a   :  { %v2486_v35 = vmax.f32 %v6782_v54, %v1579_v33  ;;  %v1581_v36 = vpop.f32.mrb[25].mxu0  ;;  %v6058_v54 = vld [vmem:[%s8345_s0 + $0x220] ss:$8 sps:$4 sm:$0xff]  }
 0x12b   :  { %v2487_v38 = vmax.f32 %v6784_v55, %v1581_v36  ;;  %v1583_v39 = vpop.f32.mrb[26].mxu0  ;;  %v2872_v42 = vmax.f32 %v2776_v34, 0.0  ;;  %v6103_v36 = vld [vmem:[%s8345_s0 + $0x270] ss:$8 sps:$4 sm:$0xff]  }
 0x12c   :  { %v2488_v43 = vmax.f32 %v6789_v57, %v1583_v39  ;;  %v1585_v44 = vpop.f32.mrb[27].mxu0  ;;  %v6064_v57 = vld [vmem:[%s8345_s0 + $0x234] ss:$8 sps:$4 sm:$0xff]   ;;  %v6109_v39 = vld [vmem:[%s8345_s0 + $0x284] ss:$8 sps:$4 sm:$0xff]  }
 0x12d   :  { %v2674_v45 = vmax.f32 %v2486_v35, %v2487_v38  ;;  %v2489_v46 = vmax.f32 %v6794_v59, %v1585_v44  ;;  %v6847_v47 = vpack.c.bf16 %v2872_v42, %v2871_v41 }
 0x12e   :  { %1848 = vmatmul.mubr.bf16.gmra.mrb[132].mxu0 %v6049_v37 }
 0x12f   :  { %v2675_v48 = vmax.f32 %v2488_v43, %v2489_v46  ;;  %5385 = vmatprep.mubr.msk.bf16.mxu0 %vm1189_vm0, %v6055_v40  ;;  %v2777_v49 = vadd.f32 %v6821_v11, %v2674_v45 }
 0x131   :  { %v1589_v50 = vpop.f32.mrb[28].mxu0  ;;  %v2778_v51 = vadd.f32 %v6821_v11, %v2675_v48  ;;  %v2873_v58 = vmax.f32 %v2777_v49, 0.0 }
 0x132   :  { %v2490_v52 = vmax.f32 %v6797_v60, %v1589_v50  ;;  %v1591_v53 = vpop.f32.mrb[29].mxu0 }
 0x133   :  { %v2491_v55 = vmax.f32 %v6799_v61, %v1591_v53  ;;  %v1593_v56 = vpop.f32.mrb[30].mxu0  ;;  %v2874_v59 = vmax.f32 %v2778_v51, 0.0  ;;  %v6112_v51 = vld [vmem:[%s8345_s0 + $0x280] ss:$8 sps:$4 sm:$0xff]  }
 0x134   :  { %v2492_v62 = vmax.f32 %v6804_v63, %v1593_v56  ;;  %v1595_v0 = vpop.f32.mrb[31].mxu0  ;;  %v6067_v63 = vld [vmem:[%s8345_s0 + $0x230] ss:$8 sps:$4 sm:$0xff]   ;;  %v6113_v56 = vld [vmem:[%s8345_s0 + $0x294] ss:$8 sps:$4 sm:$0xff]  }
 0x135   :  { %v2676_v2 = vmax.f32 %v2490_v52, %v2491_v55  ;;  %v2493_v60 = vmax.f32 %v6809_v1, %v1595_v0  ;;  %v6862_v3 = vpack.c.bf16 %v2874_v59, %v2873_v58  ;;  %v6073_v1 = vld [vmem:[%s8345_s0 + $0x244] ss:$8 sps:$4 sm:$0xff]  }
 0x136   :  { %1858 = vmatmul.mubr.bf16.gmra.mrb[136].mxu0 %v6058_v54 }
 0x137   :  { %v2677_v4 = vmax.f32 %v2492_v62, %v2493_v60  ;;  %5386 = vmatprep.mubr.msk.bf16.mxu0 %vm1189_vm0, %v6064_v57  ;;  %v2779_v61 = vadd.f32 %v6821_v11, %v2676_v2 }
 0x139   :  { %v1599_v5 = vpop.f32.mrb[32].mxu0  ;;  %v2780_v6 = vadd.f32 %v6821_v11, %v2677_v4  ;;  %v2875_v9 = vmax.f32 %v2779_v61, 0.0 }
 0x13a   :  { %v1601_v7 = vpop.f32.mrb[33].mxu0 }
 0x13b   :  { %v1603_v8 = vpop.f32.mrb[34].mxu0  ;;  %v2876_v10 = vmax.f32 %v2780_v6, 0.0 }
 0x13c   :  { %v1605_v12 = vpop.f32.mrb[35].mxu0 }
 0x13d   :  { %v6873_v13 = vpack.c.bf16 %v2876_v10, %v2875_v9  ;;  %v6116_v10 = vld [vmem:[%s8345_s0 + $0x2a4] ss:$8 sps:$4 sm:$0xff]  }
 0x13e   :  { %1868 = vmatmul.mubr.bf16.gmra.mrb[140].mxu0 %v6067_v63 }
 0x13f   :  { %5387 = vmatprep.mubr.msk.bf16.mxu0 %vm1189_vm0, %v6073_v1 }
 0x141   :  { %v1609_v14 = vpop.f32.mrb[36].mxu0 }
 0x142   :  { %v1611_v15 = vpop.f32.mrb[37].mxu0 }
 0x143   :  { %v1613_v17 = vpop.f32.mrb[38].mxu0 }
 0x144   :  { %v1615_v19 = vpop.f32.mrb[39].mxu0 }
 0x146   :  { %1878 = vmatmul.mubr.bf16.gmra.mrb[144].mxu0 %v6076_v16 }
 0x147   :  { %5388 = vmatprep.mubr.msk.bf16.mxu0 %vm1189_vm0, %v6082_v18 }
 0x149   :  { %v6883_v20 = vpop.f32.mrb[40].mxu0 }
 0x14a   :  { %v6885_v21 = vpop.f32.mrb[41].mxu0 }
 0x14b   :  { %v6890_v23 = vpop.f32.mrb[42].mxu0 }
 0x14c   :  { %v6895_v25 = vpop.f32.mrb[43].mxu0 }
 0x14e   :  { %1888 = vmatmul.mubr.bf16.gmra.mrb[148].mxu0 %v6085_v22 }
 0x14f   :  { %5389 = vmatprep.mubr.msk.bf16.mxu0 %vm1189_vm0, %v6091_v24 }
 0x151   :  { %v6898_v26 = vpop.f32.mrb[44].mxu0 }
 0x152   :  { %v6900_v27 = vpop.f32.mrb[45].mxu0 }
 0x153   :  { %v6905_v29 = vpop.f32.mrb[46].mxu0 }
 0x154   :  { %v6910_v32 = vpop.f32.mrb[47].mxu0 }
 0x156   :  { %1898 = vmatmul.mubr.bf16.gmra.mrb[152].mxu0 %v6094_v28 }
 0x157   :  { %5390 = vmatprep.mubr.msk.bf16.mxu0 %vm1189_vm0, %v6100_v31 }
 0x159   :  { %v1639_v33 = vpop.f32.mrb[48].mxu0 }
 0x15a   :  { %v2494_v34 = vmax.f32 %v1599_v5, %v1639_v33  ;;  %v1641_v35 = vpop.f32.mrb[49].mxu0  ;;  %v6119_v33 = vld [vmem:[%s8345_s0 + $0x2b4] ss:$8 sps:$4 sm:$0xff]  }
 0x15b   :  { %v2495_v37 = vmax.f32 %v1601_v7, %v1641_v35  ;;  %v1643_v38 = vpop.f32.mrb[50].mxu0  ;;  %v6115_v7 = vld [vmem:[%s8345_s0 + $0x290] ss:$8 sps:$4 sm:$0xff]  }
 0x15c   :  { %v2496_v40 = vmax.f32 %v1603_v8, %v1643_v38  ;;  %v1645_v41 = vpop.f32.mrb[51].mxu0 }
 0x15d   :  { %v2678_v42 = vmax.f32 %v2494_v34, %v2495_v37  ;;  %v2497_v43 = vmax.f32 %v1605_v12, %v1645_v41 }
 0x15e   :  { %1908 = vmatmul.mubr.bf16.gmra.mrb[156].mxu0 %v6103_v36 }
 0x15f   :  { %v2679_v44 = vmax.f32 %v2496_v40, %v2497_v43  ;;  %5391 = vmatprep.mubr.msk.bf16.mxu0 %vm1189_vm0, %v6109_v39  ;;  %v2781_v45 = vadd.f32 %v6821_v11, %v2678_v42  ;;  %v6122_v43 = vld [vmem:[%s8345_s0 + $0x2c4] ss:$8 sps:$4 sm:$0xff]  }
 0x161   :  { %v1649_v46 = vpop.f32.mrb[52].mxu0  ;;  %v2782_v48 = vadd.f32 %v6821_v11, %v2679_v44  ;;  %v2877_v54 = vmax.f32 %v2781_v45, 0.0 }
 0x162   :  { %v2498_v49 = vmax.f32 %v1609_v14, %v1649_v46  ;;  %v1651_v50 = vpop.f32.mrb[53].mxu0 }
 0x163   :  { %v2499_v52 = vmax.f32 %v1611_v15, %v1651_v50  ;;  %v1653_v53 = vpop.f32.mrb[54].mxu0  ;;  %v2878_v55 = vmax.f32 %v2782_v48, 0.0  ;;  %v6124_v48 = vld [vmem:[%s8345_s0 + $0x2c0] ss:$8 sps:$4 sm:$0xff]   ;;  %v6125_v50 = vld [vmem:[%s8345_s0 + $0x2d4] ss:$8 sps:$4 sm:$0xff]  }
 0x164   :  { %v2500_v57 = vmax.f32 %v1613_v17, %v1653_v53  ;;  %v1655_v58 = vpop.f32.mrb[55].mxu0 }
 0x165   :  { %v2680_v59 = vmax.f32 %v2498_v49, %v2499_v52  ;;  %v2501_v62 = vmax.f32 %v1615_v19, %v1655_v58  ;;  %v6928_v0 = vpack.c.bf16 %v2878_v55, %v2877_v54  ;;  %v6128_v55 = vld [vmem:[%s8345_s0 + $0x2e4] ss:$8 sps:$4 sm:$0xff]  }
 0x166   :  { %1918 = vmatmul.mubr.bf16.gmra.mrb[160].mxu0 %v6112_v51 }
 0x167   :  { %v2681_v2 = vmax.f32 %v2500_v57, %v2501_v62  ;;  %3525 = vmatprep.mubr.bf16.mxu1 %v6928_v0  ;;  %5392 = vmatprep.mubr.msk.bf16.mxu0 %vm1189_vm0, %v6113_v56  ;;  %v2783_v60 = vadd.f32 %v6821_v11, %v2680_v59  ;;  %v6130_v59 = vld [vmem:[%s8345_s0 + $0x2e0] ss:$8 sps:$4 sm:$0xff]  }
 0x168   :  { %3526 = vmatmul.mubr.bf16.vlgmr.msra.gmra.mrb[0].mxu1 %v6832_v30 }
 0x169   :  { %v1659_v4 = vpop.f32.mrb[56].mxu0  ;;  %v2784_v61 = vadd.f32 %v6821_v11, %v2681_v2  ;;  %v2879_v1 = vmax.f32 %v2783_v60, 0.0  ;;  %v6131_v2 = vld [vmem:[%s8345_s0 + $0x2f4] ss:$8 sps:$4 sm:$0xff]  }
 0x16a   :  { %v2502_v5 = vmax.f32 %v6883_v20, %v1659_v4  ;;  %v1661_v6 = vpop.f32.mrb[57].mxu0 }
 0x16b   :  { %v2503_v63 = vmax.f32 %v6885_v21, %v1661_v6  ;;  %v1663_v8 = vpop.f32.mrb[58].mxu0  ;;  %v2880_v9 = vmax.f32 %v2784_v61, 0.0  ;;  %v6133_v6 = vld [vmem:[%s8345_s0 + $0x2f0] ss:$8 sps:$4 sm:$0xff]  }
 0x16c   :  { %v2504_v30 = vmax.f32 %v6890_v23, %v1663_v8  ;;  %v1665_v12 = vpop.f32.mrb[59].mxu0  ;;  %v6118_v23 = vld [vmem:[%s8345_s0 + $0x2a0] ss:$8 sps:$4 sm:$0xff]   ;;  %v6134_v8 = vld [vmem:[%s8345_s0 + $0x304] ss:$8 sps:$4 sm:$0xff]  }
 0x16d   :  { %v2682_v14 = vmax.f32 %v2502_v5, %v2503_v63  ;;  %v2505_v15 = vmax.f32 %v6895_v25, %v1665_v12  ;;  %v6945_v16 = vpack.c.bf16 %v2880_v9, %v2879_v1 }
 0x16e   :  { %1928 = vmatmul.mubr.bf16.gmra.mrb[164].mxu0 %v6115_v7 }
 0x16f   :  { %v2683_v17 = vmax.f32 %v2504_v30, %v2505_v15  ;;  %3535 = vmatprep.mubr.bf16.mxu1 %v6945_v16  ;;  %5393 = vmatprep.mubr.msk.bf16.mxu0 %vm1189_vm0, %v6116_v10  ;;  %v2785_v18 = vadd.f32 %v6821_v11, %v2682_v14 }
 0x170   :  { %3536 = vmatmul.mubr.bf16.gmra.mrb[4].mxu1 %v6847_v47 }
 0x171   :  { %v1669_v19 = vpop.f32.mrb[60].mxu0  ;;  %v2786_v20 = vadd.f32 %v6821_v11, %v2683_v17  ;;  %v2881_v28 = vmax.f32 %v2785_v18, 0.0 }
 0x172   :  { %v2506_v21 = vmax.f32 %v6898_v26, %v1669_v19  ;;  %v1671_v22 = vpop.f32.mrb[61].mxu0 }
 0x173   :  { %v2507_v24 = vmax.f32 %v6900_v27, %v1671_v22  ;;  %v1673_v25 = vpop.f32.mrb[62].mxu0  ;;  %v2882_v31 = vmax.f32 %v2786_v20, 0.0  ;;  %v6136_v20 = vld [vmem:[%s8345_s0 + $0x300] ss:$8 sps:$4 sm:$0xff]  }
 0x174   :  { %v2508_v47 = vmax.f32 %v6905_v29, %v1673_v25  ;;  %v1675_v34 = vpop.f32.mrb[63].mxu0  ;;  %v6137_v25 = vld [vmem:[%s8345_s0 + $0x314] ss:$8 sps:$4 sm:$0xff]  }
 0x175   :  { %v2684_v35 = vmax.f32 %v2506_v21, %v2507_v24  ;;  %v2509_v26 = vmax.f32 %v6910_v32, %v1675_v34  ;;  %v6962_v36 = vpack.c.bf16 %v2882_v31, %v2881_v28  ;;  %v6121_v32 = vld [vmem:[%s8345_s0 + $0x2b0] ss:$8 sps:$4 sm:$0xff]  }
 0x176   :  { %1938 = vmatmul.mubr.bf16.gmra.mrb[168].mxu0 %v6118_v23 }
 0x177   :  { %v2685_v37 = vmax.f32 %v2508_v47, %v2509_v26  ;;  %3545 = vmatprep.mubr.bf16.mxu1 %v6962_v36  ;;  %5394 = vmatprep.mubr.msk.bf16.mxu0 %vm1189_vm0, %v6119_v33  ;;  %v2787_v27 = vadd.f32 %v6821_v11, %v2684_v35 }
 0x178   :  { %3546 = vmatmul.mubr.bf16.gmra.mrb[8].mxu1 %v6862_v3 }
 0x179   :  { %v1679_v38 = vpop.f32.mrb[64].mxu0  ;;  %v2788_v39 = vadd.f32 %v6821_v11, %v2685_v37  ;;  %v2883_v41 = vmax.f32 %v2787_v27, 0.0 }
 0x17a   :  { %v1681_v29 = vpop.f32.mrb[65].mxu0 }
 0x17b   :  { %v1683_v40 = vpop.f32.mrb[66].mxu0  ;;  %v2884_v42 = vmax.f32 %v2788_v39, 0.0 }
 0x17c   :  { %v1685_v44 = vpop.f32.mrb[67].mxu0 }
 0x17d   :  { %v6975_v45 = vpack.c.bf16 %v2884_v42, %v2883_v41 }
 0x17e   :  { %1948 = vmatmul.mubr.bf16.gmra.mrb[172].mxu0 %v6121_v32 }
 0x17f   :  { %3555 = vmatprep.mubr.bf16.mxu1 %v6975_v45  ;;  %5395 = vmatprep.mubr.msk.bf16.mxu0 %vm1189_vm0, %v6122_v43  ;;  %v6140_v43 = vld [vmem:[%s8345_s0 + $0x324] ss:$8 sps:$4 sm:$0xff]  }
 0x180   :  { %3556 = vmatmul.mubr.bf16.gmra.mrb[12].mxu1 %v6873_v13  ;;  %v6127_v13 = vld [vmem:[%s8345_s0 + $0x2d0] ss:$8 sps:$4 sm:$0xff]  }
 0x181   :  { %v1689_v3 = vpop.f32.mrb[68].mxu0 }
 0x182   :  { %v1691_v46 = vpop.f32.mrb[69].mxu0 }
 0x183   :  { %v1693_v49 = vpop.f32.mrb[70].mxu0 }
 0x184   :  { %v1695_v51 = vpop.f32.mrb[71].mxu0 }
 0x186   :  { %1958 = vmatmul.mubr.bf16.gmra.mrb[176].mxu0 %v6124_v48 }
 0x187   :  { %5396 = vmatprep.mubr.msk.bf16.mxu0 %vm1189_vm0, %v6125_v50 }
 0x189   :  { %v6987_v52 = vpop.f32.mrb[72].mxu0 }
 0x18a   :  { %v6989_v53 = vpop.f32.mrb[73].mxu0 }
 0x18b   :  { %v6994_v54 = vpop.f32.mrb[74].mxu0 }
 0x18c   :  { %v6999_v56 = vpop.f32.mrb[75].mxu0 }
 0x18e   :  { %1968 = vmatmul.mubr.bf16.gmra.mrb[180].mxu0 %v6127_v13 }
 0x18f   :  { %5397 = vmatprep.mubr.msk.bf16.mxu0 %vm1189_vm0, %v6128_v55 }
 0x191   :  { %v7002_v57 = vpop.f32.mrb[76].mxu0 }
 0x192   :  { %v7004_v58 = vpop.f32.mrb[77].mxu0 }
 0x193   :  { %v7009_v62 = vpop.f32.mrb[78].mxu0 }
 0x194   :  { %v7014_v60 = vpop.f32.mrb[79].mxu0 }
 0x196   :  { %1978 = vmatmul.mubr.bf16.gmra.mrb[184].mxu0 %v6130_v59 }
 0x197   :  { %5398 = vmatprep.mubr.msk.bf16.mxu0 %vm1189_vm0, %v6131_v2 }
 0x199   :  { %v1719_v4 = vpop.f32.mrb[80].mxu0 }
 0x19a   :  { %v2510_v61 = vmax.f32 %v1679_v38, %v1719_v4  ;;  %v1721_v5 = vpop.f32.mrb[81].mxu0  ;;  %v6143_v4 = vld [vmem:[%s8345_s0 + $0x334] ss:$8 sps:$4 sm:$0xff]  }
 0x19b   :  { %v2511_v7 = vmax.f32 %v1681_v29, %v1721_v5  ;;  %v1723_v63 = vpop.f32.mrb[82].mxu0  ;;  %v6139_v29 = vld [vmem:[%s8345_s0 + $0x310] ss:$8 sps:$4 sm:$0xff]  }
 0x19c   :  { %v2512_v1 = vmax.f32 %v1683_v40, %v1723_v63  ;;  %v1725_v9 = vpop.f32.mrb[83].mxu0 }
 0x19d   :  { %v2686_v10 = vmax.f32 %v2510_v61, %v2511_v7  ;;  %v2513_v30 = vmax.f32 %v1685_v44, %v1725_v9 }
 0x19e   :  { %1988 = vmatmul.mubr.bf16.gmra.mrb[188].mxu0 %v6133_v6 }
 0x19f   :  { %v2687_v12 = vmax.f32 %v2512_v1, %v2513_v30  ;;  %5399 = vmatprep.mubr.msk.bf16.mxu0 %vm1189_vm0, %v6134_v8  ;;  %v2789_v14 = vadd.f32 %v6821_v11, %v2686_v10  ;;  %v6146_v30 = vld [vmem:[%s8345_s0 + $0x344] ss:$8 sps:$4 sm:$0xff]  }
 0x1a1   :  { %v1729_v15 = vpop.f32.mrb[84].mxu0  ;;  %v2790_v17 = vadd.f32 %v6821_v11, %v2687_v12  ;;  %v2885_v23 = vmax.f32 %v2789_v14, 0.0 }
 0x1a2   :  { %v2514_v18 = vmax.f32 %v1689_v3, %v1729_v15  ;;  %v1731_v19 = vpop.f32.mrb[85].mxu0 }
 0x1a3   :  { %v2515_v21 = vmax.f32 %v1691_v46, %v1731_v19  ;;  %v1733_v22 = vpop.f32.mrb[86].mxu0  ;;  %v2886_v24 = vmax.f32 %v2790_v17, 0.0  ;;  %v6148_v17 = vld [vmem:[%s8345_s0 + $0x340] ss:$8 sps:$4 sm:$0xff]   ;;  %v6149_v19 = vld [vmem:[%s8345_s0 + $0x354] ss:$8 sps:$4 sm:$0xff]  }
 0x1a4   :  { %v2516_v28 = vmax.f32 %v1693_v49, %v1733_v22  ;;  %v1735_v31 = vpop.f32.mrb[87].mxu0 }
 0x1a5   :  { %v2688_v33 = vmax.f32 %v2514_v18, %v2515_v21  ;;  %v2517_v47 = vmax.f32 %v1695_v51, %v1735_v31  ;;  %v7032_v34 = vpack.c.bf16 %v2886_v24, %v2885_v23  ;;  %v6197_v21 = vld [vmem:[%s8346_s3 + $0x100] ss:$8 sps:$4 sm:$0xff]   ;;  %v6151_v24 = vld [vmem:[%s8345_s0 + $0x350] ss:$8 sps:$4 sm:$0xff]  }
 0x1a6   :  { %1998 = vmatmul.mubr.bf16.gmra.mrb[192].mxu0 %v6136_v20 }
 0x1a7   :  { %v2689_v35 = vmax.f32 %v2516_v28, %v2517_v47  ;;  %3565 = vmatprep.mubr.bf16.mxu1 %v7032_v34  ;;  %5400 = vmatprep.mubr.msk.bf16.mxu0 %vm1189_vm0, %v6137_v25  ;;  %v2791_v26 = vadd.f32 %v6821_v11, %v2688_v33  ;;  %v6152_v28 = vld [vmem:[%s8345_s0 + $0x364] ss:$8 sps:$4 sm:$0xff]  }
 0x1a8   :  { %3566 = vmatmul.mubr.bf16.gmra.mrb[16].mxu1 %v6928_v0 }
 0x1a9   :  { %v1739_v37 = vpop.f32.mrb[88].mxu0  ;;  %v2792_v27 = vadd.f32 %v6821_v11, %v2689_v35  ;;  %v2887_v41 = vmax.f32 %v2791_v26, 0.0  ;;  %v6154_v35 = vld [vmem:[%s8345_s0 + $0x360] ss:$8 sps:$4 sm:$0xff]  }
 0x1aa   :  { %v2518_v38 = vmax.f32 %v6987_v52, %v1739_v37  ;;  %v1741_v39 = vpop.f32.mrb[89].mxu0  ;;  %v6155_v37 = vld [vmem:[%s8345_s0 + $0x374] ss:$8 sps:$4 sm:$0xff]  }
 0x1ab   :  { %v2519_v32 = vmax.f32 %v6989_v53, %v1741_v39  ;;  %v1743_v40 = vpop.f32.mrb[90].mxu0  ;;  %v2888_v42 = vmax.f32 %v2792_v27, 0.0  ;;  %v6208_v39 = vld [vmem:[%s8346_s3 + $0x114] ss:$8 sps:$4 sm:$0xff]  }
 0x1ac   :  { %v2520_v0 = vmax.f32 %v6994_v54, %v1743_v40  ;;  %v1745_v44 = vpop.f32.mrb[91].mxu0  ;;  %v6142_v54 = vld [vmem:[%s8345_s0 + $0x320] ss:$8 sps:$4 sm:$0xff]  }
 0x1ad   :  { %v2690_v3 = vmax.f32 %v2518_v38, %v2519_v32  ;;  %v2521_v46 = vmax.f32 %v6999_v56, %v1745_v44  ;;  %v7049_v48 = vpack.c.bf16 %v2888_v42, %v2887_v41  ;;  %v6206_v38 = vld [vmem:[%s8346_s3 + $0x110] ss:$8 sps:$4 sm:$0xff]  }
 0x1ae   :  { %2008 = vmatmul.mubr.bf16.gmra.mrb[196].mxu0 %v6139_v29  ;;  %v6157_v41 = vld [vmem:[%s8345_s0 + $0x370] ss:$8 sps:$4 sm:$0xff]  }
 0x1af   :  { %v2691_v49 = vmax.f32 %v2520_v0, %v2521_v46  ;;  %3575 = vmatprep.mubr.bf16.mxu1 %v7049_v48  ;;  %5401 = vmatprep.mubr.msk.bf16.mxu0 %vm1189_vm0, %v6140_v43  ;;  %v2793_v50 = vadd.f32 %v6821_v11, %v2690_v3  ;;  %v6158_v0 = vld [vmem:[%s8345_s0 + $0x384] ss:$8 sps:$4 sm:$0xff]  }
 0x1b0   :  { %3576 = vmatmul.mubr.bf16.gmra.mrb[20].mxu1 %v6945_v16 }
 0x1b1   :  { %v1749_v51 = vpop.f32.mrb[92].mxu0  ;;  %v2794_v52 = vadd.f32 %v6821_v11, %v2691_v49  ;;  %v2889_v59 = vmax.f32 %v2793_v50, 0.0 }
 0x1b2   :  { %v2522_v53 = vmax.f32 %v7002_v57, %v1749_v51  ;;  %v1751_v13 = vpop.f32.mrb[93].mxu0 }
 0x1b3   :  { %v2523_v55 = vmax.f32 %v7004_v58, %v1751_v13  ;;  %v1753_v56 = vpop.f32.mrb[94].mxu0  ;;  %v2890_v2 = vmax.f32 %v2794_v52, 0.0 }
 0x1b4   :  { %v2524_v16 = vmax.f32 %v7009_v62, %v1753_v56  ;;  %v1755_v61 = vpop.f32.mrb[95].mxu0 }
 0x1b5   :  { %v2692_v5 = vmax.f32 %v2522_v53, %v2523_v55  ;;  %v2525_v57 = vmax.f32 %v7014_v60, %v1755_v61  ;;  %v7066_v6 = vpack.c.bf16 %v2890_v2, %v2889_v59  ;;  %v6145_v60 = vld [vmem:[%s8345_s0 + $0x330] ss:$8 sps:$4 sm:$0xff]   ;;  %v6160_v55 = vld [vmem:[%s8345_s0 + $0x380] ss:$8 sps:$4 sm:$0xff]  }
 0x1b6   :  { %2018 = vmatmul.mubr.bf16.gmra.mrb[200].mxu0 %v6142_v54 }
 0x1b7   :  { %v2693_v7 = vmax.f32 %v2524_v16, %v2525_v57  ;;  %3585 = vmatprep.mubr.bf16.mxu1 %v7066_v6  ;;  %5402 = vmatprep.mubr.msk.bf16.mxu0 %vm1189_vm0, %v6143_v4  ;;  %v2795_v58 = vadd.f32 %v6821_v11, %v2692_v5  ;;  %v6161_v16 = vld [vmem:[%s8345_s0 + $0x394] ss:$8 sps:$4 sm:$0xff]  }
 0x1b8   :  { %3586 = vmatmul.mubr.bf16.gmra.mrb[24].mxu1 %v6962_v36 }
 0x1b9   :  { %v1759_v63 = vpop.f32.mrb[96].mxu0  ;;  %v2796_v8 = vadd.f32 %v6821_v11, %v2693_v7  ;;  %v2891_v9 = vmax.f32 %v2795_v58, 0.0 }
 0x1ba   :  { %v1761_v62 = vpop.f32.mrb[97].mxu0 }
 0x1bb   :  { %v1763_v1 = vpop.f32.mrb[98].mxu0  ;;  %v2892_v10 = vmax.f32 %v2796_v8, 0.0 }
 0x1bc   :  { %v1765_v12 = vpop.f32.mrb[99].mxu0 }
 0x1bd   :  { %v7079_v14 = vpack.c.bf16 %v2892_v10, %v2891_v9  ;;  %v6163_v10 = vld [vmem:[%s8345_s0 + $0x390] ss:$8 sps:$4 sm:$0xff]  }
 0x1be   :  { %2028 = vmatmul.mubr.bf16.gmra.mrb[204].mxu0 %v6145_v60 }
 0x1bf   :  { %3595 = vmatprep.mubr.bf16.mxu1 %v7079_v14  ;;  %5403 = vmatprep.mubr.msk.bf16.mxu0 %vm1189_vm0, %v6146_v30 }
 0x1c0   :  { %3596 = vmatmul.mubr.bf16.gmra.mrb[28].mxu1 %v6975_v45  ;;  %v6199_v45 = vld [vmem:[%s8346_s3 + $0x104] ss:$8 sps:$4 sm:$0xff]  }
 0x1c1   :  { %v1769_v36 = vpop.f32.mrb[100].mxu0  ;;  %3846 = vmatprep.subr.bf16.mxu1 %v6199_v45 }
 0x1c2   :  { %v1771_v15 = vpop.f32.mrb[101].mxu0  ;;  %3847 = vmatpush1.bf16.msra.mxu1 %v6197_v21 }
 0x1c3   :  { %v1773_v18 = vpop.f32.mrb[102].mxu0  ;;  %3848 = vmatprep.subr.bf16.mxu1 %v6208_v39 }
 0x1c4   :  { %v1775_v20 = vpop.f32.mrb[103].mxu0 }
 0x1c6   :  { %2038 = vmatmul.mubr.bf16.gmra.mrb[208].mxu0 %v6148_v17  ;;  %3849 = vmatpush1.bf16.msra.mxu1 %v6206_v38  ;;  %v6164_v17 = vld [vmem:[%s8345_s0 + $0x3a4] ss:$8 sps:$4 sm:$0xff]   ;;  %v6166_v38 = vld [vmem:[%s8345_s0 + $0x3a0] ss:$8 sps:$4 sm:$0xff]  }
 0x1c7   :  { %5404 = vmatprep.mubr.msk.bf16.mxu0 %vm1189_vm0, %v6149_v19 }
 0x1c9   :  { %v7097_v22 = vpop.f32.mrb[104].mxu0 }
 0x1ca   :  { %v7099_v23 = vpop.f32.mrb[105].mxu0 }
 0x1cb   :  { %v7104_v25 = vpop.f32.mrb[106].mxu0 }
 0x1cc   :  { %v7109_v31 = vpop.f32.mrb[107].mxu0 }
 0x1ce   :  { %2048 = vmatmul.mubr.bf16.gmra.mrb[212].mxu0 %v6151_v24 }
 0x1cf   :  { %5405 = vmatprep.mubr.msk.bf16.mxu0 %vm1189_vm0, %v6152_v28 }
 0x1d1   :  { %v7112_v33 = vpop.f32.mrb[108].mxu0 }
 0x1d2   :  { %v7114_v47 = vpop.f32.mrb[109].mxu0 }
 0x1d3   :  { %v7119_v26 = vpop.f32.mrb[110].mxu0 }
 0x1d4   :  { %v7124_v27 = vpop.f32.mrb[111].mxu0 }
 0x1d6   :  { %2058 = vmatmul.mubr.bf16.gmra.mrb[216].mxu0 %v6154_v35 }
 0x1d7   :  { %5406 = vmatprep.mubr.msk.bf16.mxu0 %vm1189_vm0, %v6155_v37 }
 0x1d9   :  { %v1799_v29 = vpop.f32.mrb[112].mxu0 }
 0x1da   :  { %v2526_v32 = vmax.f32 %v1759_v63, %v1799_v29  ;;  %v1801_v40 = vpop.f32.mrb[113].mxu0 }
 0x1db   :  { %v2527_v42 = vmax.f32 %v1761_v62, %v1801_v40  ;;  %v1803_v43 = vpop.f32.mrb[114].mxu0 }
 0x1dc   :  { %v2528_v44 = vmax.f32 %v1763_v1, %v1803_v43  ;;  %v1805_v3 = vpop.f32.mrb[115].mxu0 }
 0x1dd   :  { %v2694_v46 = vmax.f32 %v2526_v32, %v2527_v42  ;;  %v2529_v49 = vmax.f32 %v1765_v12, %v1805_v3 }
 0x1de   :  { %2068 = vmatmul.mubr.bf16.gmra.mrb[220].mxu0 %v6157_v41  ;;  %v6167_v41 = vld [vmem:[%s8345_s0 + $0x3b4] ss:$8 sps:$4 sm:$0xff]  }
 0x1df   :  { %v2797_v50 = vadd.f32 %v6821_v11, %v2694_v46  ;;  %v2695_v51 = vmax.f32 %v2528_v44, %v2529_v49  ;;  %5407 = vmatprep.mubr.msk.bf16.mxu0 %vm1189_vm0, %v6158_v0 }
 0x1e1   :  { %v2798_v52 = vadd.f32 %v6821_v11, %v2695_v51  ;;  %v1809_v53 = vpop.f32.mrb[116].mxu0  ;;  %v2893_v56 = vmax.f32 %v2797_v50, 0.0 }
 0x1e2   :  { %v2530_v13 = vmax.f32 %v1769_v36, %v1809_v53  ;;  %v1811_v54 = vpop.f32.mrb[117].mxu0  ;;  %v6170_v53 = vld [vmem:[%s8345_s0 + $0x3c4] ss:$8 sps:$4 sm:$0xff]  }
 0x1e3   :  { %v2894_v59 = vmax.f32 %v2798_v52, 0.0  ;;  %v2531_v2 = vmax.f32 %v1771_v15, %v1811_v54  ;;  %v1813_v4 = vpop.f32.mrb[118].mxu0 }
 0x1e4   :  { %v2532_v61 = vmax.f32 %v1773_v18, %v1813_v4  ;;  %v1815_v5 = vpop.f32.mrb[119].mxu0  ;;  %v6172_v4 = vld [vmem:[%s8345_s0 + $0x3c0] ss:$8 sps:$4 sm:$0xff]  }
 0x1e5   :  { %v2696_v57 = vmax.f32 %v2530_v13, %v2531_v2  ;;  %v2533_v7 = vmax.f32 %v1775_v20, %v1815_v5  ;;  %v7148_v58 = vpack.c.bf16 %v2894_v59, %v2893_v56  ;;  %v6217_v56 = vld [vmem:[%s8346_s3 + $0x134] ss:$8 sps:$4 sm:$0xff]  }
 0x1e6   :  { %2078 = vmatmul.mubr.bf16.gmra.mrb[224].mxu0 %v6160_v55  ;;  %v6215_v55 = vld [vmem:[%s8346_s3 + $0x130] ss:$8 sps:$4 sm:$0xff]  }
 0x1e7   :  { %v2799_v63 = vadd.f32 %v6821_v11, %v2696_v57  ;;  %v2697_v8 = vmax.f32 %v2532_v61, %v2533_v7  ;;  %3605 = vmatprep.mubr.bf16.mxu1 %v7148_v58  ;;  %5408 = vmatprep.mubr.msk.bf16.mxu0 %vm1189_vm0, %v6161_v16  ;;  %v6173_v61 = vld [vmem:[%s8345_s0 + $0x3d4] ss:$8 sps:$4 sm:$0xff]   ;;  %v6218_v57 = vld [vmem:[%s8346_s3 + $0x140] ss:$8 sps:$4 sm:$0xff]   ;;  %v6220_v7 = vld [vmem:[%s8346_s3 + $0x144] ss:$8 sps:$4 sm:$0xff]  }
 0x1e8   :  { %3606 = vmatmul.mubr.bf16.gmra.mrb[32].mxu1 %v7032_v34 }
 0x1e9   :  { %v2800_v62 = vadd.f32 %v6821_v11, %v2697_v8  ;;  %v1819_v60 = vpop.f32.mrb[120].mxu0  ;;  %v2895_v30 = vmax.f32 %v2799_v63, 0.0 }
 0x1ea   :  { %v2534_v1 = vmax.f32 %v7097_v22, %v1819_v60  ;;  %v1821_v9 = vpop.f32.mrb[121].mxu0  ;;  %v6212_v22 = vld [vmem:[%s8346_s3 + $0x120] ss:$8 sps:$4 sm:$0xff]  }
 0x1eb   :  { %v2896_v12 = vmax.f32 %v2800_v62, 0.0  ;;  %v2535_v36 = vmax.f32 %v7099_v23, %v1821_v9  ;;  %v1823_v15 = vpop.f32.mrb[122].mxu0  ;;  %v6214_v23 = vld [vmem:[%s8346_s3 + $0x124] ss:$8 sps:$4 sm:$0xff]   ;;  %v6175_v62 = vld [vmem:[%s8345_s0 + $0x3d0] ss:$8 sps:$4 sm:$0xff]  }
 0x1ec   :  { %v2536_v18 = vmax.f32 %v7104_v25, %v1823_v15  ;;  %v1825_v19 = vpop.f32.mrb[123].mxu0  ;;  %3850 = vmatprep.subr.bf16.mxu1 %v6214_v23  ;;  %v6179_v15 = vld [vmem:[%s8345_s0 + $0x3f4] ss:$8 sps:$4 sm:$0xff]   ;;  %v6181_v23 = vld [vmem:[%s8345_s0 + $0x3f0] ss:$8 sps:$4 sm:$0xff]  }
 0x1ed   :  { %v2698_v20 = vmax.f32 %v2534_v1, %v2535_v36  ;;  %v2537_v21 = vmax.f32 %v7109_v31, %v1825_v19  ;;  %v7165_v45 = vpack.c.bf16 %v2896_v12, %v2895_v30  ;;  %3851 = vmatpush1.bf16.msra.mxu1 %v6212_v22  ;;  %v6176_v1 = vld [vmem:[%s8345_s0 + $0x3e4] ss:$8 sps:$4 sm:$0xff]   ;;  %v6178_v12 = vld [vmem:[%s8345_s0 + $0x3e0] ss:$8 sps:$4 sm:$0xff]   ;;  %v6223_v19 = vld [vmem:[%s8346_s3 + $0x154] ss:$8 sps:$4 sm:$0xff]  }
 0x1ee   :  { %2088 = vmatmul.mubr.bf16.gmra.mrb[228].mxu0 %v6163_v10  ;;  %3852 = vmatprep.subr.bf16.mxu1 %v6217_v56 }
 0x1ef   :  { %v2801_v24 = vadd.f32 %v6821_v11, %v2698_v20  ;;  %v2699_v28 = vmax.f32 %v2536_v18, %v2537_v21  ;;  %3615 = vmatprep.mubr.bf16.mxu1 %v7165_v45  ;;  %5409 = vmatprep.mubr.msk.bf16.mxu0 %vm1189_vm0, %v6164_v17  ;;  %v6221_v18 = vld [vmem:[%s8346_s3 + $0x150] ss:$8 sps:$4 sm:$0xff]  }
 0x1f0   :  { %3616 = vmatmul.mubr.bf16.gmra.mrb[36].mxu1 %v7049_v48 }
 0x1f1   :  { %v2802_v25 = vadd.f32 %v6821_v11, %v2699_v28  ;;  %v1829_v31 = vpop.f32.mrb[124].mxu0  ;;  %v2897_v39 = vmax.f32 %v2801_v24, 0.0  ;;  %3853 = vmatpush1.bf16.msra.mxu1 %v6215_v55 }
 0x1f2   :  { %v2538_v35 = vmax.f32 %v7112_v33, %v1829_v31  ;;  %v1831_v37 = vpop.f32.mrb[125].mxu0  ;;  %3854 = vmatprep.subr.bf16.mxu1 %v6220_v7 }
 0x1f3   :  { %v2898_v29 = vmax.f32 %v2802_v25, 0.0  ;;  %v2539_v32 = vmax.f32 %v7114_v47, %v1831_v37  ;;  %v1833_v40 = vpop.f32.mrb[126].mxu0  ;;  %v6184_v25 = vld [vmem:[%s8345_s0 + $0x404] ss:$8 sps:$4 sm:$0xff]  }
 0x1f4   :  { %v2540_v42 = vmax.f32 %v7119_v26, %v1833_v40  ;;  %v1835_v43 = vpop.f32.mrb[127].mxu0 }
 0x1f5   :  { %v2700_v0 = vmax.f32 %v2538_v35, %v2539_v32  ;;  %v2541_v33 = vmax.f32 %v7124_v27, %v1835_v43  ;;  %v7188_v44 = vpack.c.bf16 %v2898_v29, %v2897_v39  ;;  %v6169_v27 = vld [vmem:[%s8345_s0 + $0x3b0] ss:$8 sps:$4 sm:$0xff]   ;;  %3855 = vmatpush1.bf16.msra.mxu1 %v6218_v57  ;;  %v6182_v43 = vld [vmem:[%s8345_s0 + $0x400] ss:$8 sps:$4 sm:$0xff]   ;;  %v6190_v57 = vld [vmem:[%s8345_s0 + $0x424] ss:$8 sps:$4 sm:$0xff]  }
 0x1f6   :  { %2098 = vmatmul.mubr.bf16.gmra.mrb[232].mxu0 %v6166_v38  ;;  %3856 = vmatprep.subr.bf16.mxu1 %v6223_v19 }
 0x1f7   :  { %v2803_v3 = vadd.f32 %v6821_v11, %v2700_v0  ;;  %v2701_v46 = vmax.f32 %v2540_v42, %v2541_v33  ;;  %3625 = vmatprep.mubr.bf16.mxu1 %v7188_v44  ;;  %5410 = vmatprep.mubr.msk.bf16.mxu0 %vm1189_vm0, %v6167_v41 }
 0x1f8   :  { %3626 = vmatmul.mubr.bf16.gmra.mrb[40].mxu1 %v7066_v6 }
 0x1f9   :  { %v2804_v47 = vadd.f32 %v6821_v11, %v2701_v46  ;;  %v1839_v49 = vpop.f32.mrb[128].mxu0  ;;  %v2899_v50 = vmax.f32 %v2803_v3, 0.0  ;;  %3857 = vmatpush1.bf16.msra.mxu1 %v6221_v18 }
 0x1fa   :  { %v1841_v26 = vpop.f32.mrb[129].mxu0 }
 0x1fb   :  { %v2900_v51 = vmax.f32 %v2804_v47, 0.0  ;;  %v1843_v52 = vpop.f32.mrb[130].mxu0  ;;  %v6187_v47 = vld [vmem:[%s8345_s0 + $0x414] ss:$8 sps:$4 sm:$0xff]  }
 0x1fc   :  { %v1845_v13 = vpop.f32.mrb[131].mxu0 }
 0x1fd   :  { %v7201_v54 = vpack.c.bf16 %v2900_v51, %v2899_v50 }
 0x1fe   :  { %2108 = vmatmul.mubr.bf16.gmra.mrb[236].mxu0 %v6169_v27 }
 0x1ff   :  { %3635 = vmatprep.mubr.bf16.mxu1 %v7201_v54  ;;  %5411 = vmatprep.mubr.msk.bf16.mxu0 %vm1189_vm0, %v6170_v53 }
 0x200   :  { %3636 = vmatmul.mubr.bf16.gmra.mrb[44].mxu1 %v7079_v14 }
 0x201   :  { %v1849_v59 = vpop.f32.mrb[132].mxu0 }
 0x202   :  { %v1851_v2 = vpop.f32.mrb[133].mxu0 }
 0x203   :  { %v1853_v16 = vpop.f32.mrb[134].mxu0 }
 0x204   :  { %v1855_v5 = vpop.f32.mrb[135].mxu0 }
 0x206   :  { %2118 = vmatmul.mubr.bf16.gmra.mrb[240].mxu0 %v6172_v4 }
 0x207   :  { %5412 = vmatprep.mubr.msk.bf16.mxu0 %vm1189_vm0, %v6173_v61 }
 0x209   :  { %v7225_v63 = vpop.f32.mrb[136].mxu0 }
 0x20a   :  { %v7227_v8 = vpop.f32.mrb[137].mxu0 }
 0x20b   :  { %v7232_v60 = vpop.f32.mrb[138].mxu0 }
 0x20c   :  { %v7237_v9 = vpop.f32.mrb[139].mxu0 }
 0x20e   :  { %2128 = vmatmul.mubr.bf16.gmra.mrb[244].mxu0 %v6175_v62 }
 0x20f   :  { %5413 = vmatprep.mubr.msk.bf16.mxu0 %vm1189_vm0, %v6176_v1 }
 0x211   :  { %v7240_v10 = vpop.f32.mrb[140].mxu0 }
 0x212   :  { %v7242_v30 = vpop.f32.mrb[141].mxu0 }
 0x213   :  { %v7247_v36 = vpop.f32.mrb[142].mxu0 }
 0x214   :  { %v7252_v17 = vpop.f32.mrb[143].mxu0 }
 0x216   :  { %2138 = vmatmul.mubr.bf16.gmra.mrb[248].mxu0 %v6178_v12  ;;  %v6224_v12 = vld [vmem:[%s8346_s3 + $0x160] ss:$8 sps:$4 sm:$0xff]  }
 0x217   :  { %5414 = vmatprep.mubr.msk.bf16.mxu0 %vm1189_vm0, %v6179_v15  ;;  %v7304_v15 = vld [vmem:[%s8347_s2] ss:$0 sm:$0xff] }
 0x219   :  { %v1879_v20 = vpop.f32.mrb[144].mxu0 }
 0x21a   :  { %v2542_v21 = vmax.f32 %v1839_v49, %v1879_v20  ;;  %v1881_v22 = vpop.f32.mrb[145].mxu0 }
 0x21b   :  { %v2543_v24 = vmax.f32 %v1841_v26, %v1881_v22  ;;  %v1883_v28 = vpop.f32.mrb[146].mxu0  ;;  %v6188_v22 = vld [vmem:[%s8345_s0 + $0x420] ss:$8 sps:$4 sm:$0xff]  }
 0x21c   :  { %v2544_v31 = vmax.f32 %v1843_v52, %v1883_v28  ;;  %v1885_v35 = vpop.f32.mrb[147].mxu0 }
 0x21d   :  { %v2702_v37 = vmax.f32 %v2542_v21, %v2543_v24  ;;  %v2545_v38 = vmax.f32 %v1845_v13, %v1885_v35 }
 0x21e   :  { %2148 = vmatmul.mubr.bf16.gmra.mrb[252].mxu0 %v6181_v23 }
 0x21f   :  { %v2805_v39 = vadd.f32 %v6821_v11, %v2702_v37  ;;  %v2703_v29 = vmax.f32 %v2544_v31, %v2545_v38  ;;  %5415 = vmatprep.mubr.msk.bf16.mxu0 %vm1189_vm0, %v6184_v25  ;;  %v6193_v31 = vld [vmem:[%s8345_s0 + $0x434] ss:$8 sps:$4 sm:$0xff]  }
 0x221   :  { %v2806_v32 = vadd.f32 %v6821_v11, %v2703_v29  ;;  %v1889_v40 = vpop.f32.mrb[148].mxu0  ;;  %v2901_v0 = vmax.f32 %v2805_v39, 0.0 }
 0x222   :  { %v2546_v41 = vmax.f32 %v1849_v59, %v1889_v40  ;;  %v1891_v42 = vpop.f32.mrb[149].mxu0 }
 0x223   :  { %v2902_v33 = vmax.f32 %v2806_v32, 0.0  ;;  %v2547_v3 = vmax.f32 %v1851_v2, %v1891_v42  ;;  %v1893_v46 = vpop.f32.mrb[150].mxu0  ;;  %v6185_v2 = vld [vmem:[%s8345_s0 + $0x410] ss:$8 sps:$4 sm:$0xff]  }
 0x224   :  { %v2548_v49 = vmax.f32 %v1853_v16, %v1893_v46  ;;  %v1895_v26 = vpop.f32.mrb[151].mxu0  ;;  %v6227_v46 = vld [vmem:[%s8346_s3 + $0x170] ss:$8 sps:$4 sm:$0xff]  }
 0x225   :  { %v7276_v27 = vpack.c.bf16 %v2902_v33, %v2901_v0  ;;  %v2704_v50 = vmax.f32 %v2546_v41, %v2547_v3  ;;  %v2549_v51 = vmax.f32 %v1855_v5, %v1895_v26  ;;  %v6191_v41 = vld [vmem:[%s8345_s0 + $0x430] ss:$8 sps:$4 sm:$0xff]   ;;  %v6196_v0 = vld [vmem:[%s8345_s0 + $0x444] ss:$8 sps:$4 sm:$0xff]  }
 0x226   :  { %2158 = vmatmul.mubr.bf16.gmra.mrb[0].mxu0 %v6182_v43 }
 0x227   :  { %v2807_v52 = vadd.f32 %v6821_v11, %v2704_v50  ;;  %v2705_v53 = vmax.f32 %v2548_v49, %v2549_v51  ;;  %3645 = vmatprep.mubr.bf16.mxu1 %v7276_v27  ;;  %5416 = vmatprep.mubr.msk.bf16.mxu0 %vm1189_vm0, %v6187_v47  ;;  %v6229_v47 = vld [vmem:[%s8346_s3 + $0x174] ss:$8 sps:$4 sm:$0xff]   ;;  %v6194_v50 = vld [vmem:[%s8345_s0 + $0x440] ss:$8 sps:$4 sm:$0xff]  }
 0x228   :  { %3646 = vmatmul.mubr.bf16.gmra.mrb[48].mxu1 %v7148_v58 }
 0x229   :  { %v2808_v13 = vadd.f32 %v6821_v11, %v2705_v53  ;;  %v1899_v55 = vpop.f32.mrb[152].mxu0  ;;  %v2903_v4 = vmax.f32 %v2807_v52, 0.0  ;;  %v6202_v52 = vld [vmem:[%s8345_s0 + $0x454] ss:$8 sps:$4 sm:$0xff]  }
 0x22a   :  { %v2550_v56 = vmax.f32 %v7225_v63, %v1899_v55  ;;  %v1901_v59 = vpop.f32.mrb[153].mxu0  ;;  %v6235_v55 = vld [vmem:[%s8346_s3 + $0x184] ss:$8 sps:$4 sm:$0xff]  }
 0x22b   :  { %v2904_v16 = vmax.f32 %v2808_v13, 0.0  ;;  %v2551_v61 = vmax.f32 %v7227_v8, %v1901_v59  ;;  %v1903_v5 = vpop.f32.mrb[154].mxu0  ;;  %v6226_v8 = vld [vmem:[%s8346_s3 + $0x164] ss:$8 sps:$4 sm:$0xff]   ;;  %v6233_v13 = vld [vmem:[%s8346_s3 + $0x180] ss:$8 sps:$4 sm:$0xff]  }
 0x22c   :  { %v2552_v7 = vmax.f32 %v7232_v60, %v1903_v5  ;;  %v1905_v11 = vpop.f32.mrb[155].mxu0  ;;  %3858 = vmatprep.subr.bf16.mxu1 %v6226_v8  ;;  %v6244_v8 = vld [vmem:[%s8346_s3 + $0x194] ss:$8 sps:$4 sm:$0xff]  }
 0x22d   :  { %v7292_v62 = vpack.c.bf16 %v2904_v16, %v2903_v4  ;;  %v2706_v63 = vmax.f32 %v2550_v56, %v2551_v61  ;;  %v2553_v1 = vmax.f32 %v7237_v9, %v1905_v11  ;;  %3859 = vmatpush1.bf16.msra.mxu1 %v6224_v12  ;;  %v6205_v16 = vld [vmem:[%s8345_s0 + $0x464] ss:$8 sps:$4 sm:$0xff]   ;;  %v6242_v12 = vld [vmem:[%s8346_s3 + $0x190] ss:$8 sps:$4 sm:$0xff]  }
 0x22e   :  { %2168 = vmatmul.mubr.bf16.gmra.mrb[4].mxu0 %v6185_v2  ;;  %3860 = vmatprep.subr.bf16.mxu1 %v6229_v47  ;;  %v6200_v2 = vld [vmem:[%s8345_s0 + $0x450] ss:$8 sps:$4 sm:$0xff]  }
 0x22f   :  { %v2809_v60 = vadd.f32 %v7304_v15, %v2706_v63  ;;  %v2707_v18 = vmax.f32 %v2552_v7, %v2553_v1  ;;  %3655 = vmatprep.mubr.bf16.mxu1 %v7292_v62  ;;  %5417 = vmatprep.mubr.msk.bf16.mxu0 %vm1189_vm0, %v6190_v57  ;;  %v6203_v7 = vld [vmem:[%s8345_s0 + $0x460] ss:$8 sps:$4 sm:$0xff]   ;;  %v6211_v63 = vld [vmem:[%s8345_s0 + $0x474] ss:$8 sps:$4 sm:$0xff]  }
 0x230   :  { %3656 = vmatmul.mubr.bf16.gmra.mrb[52].mxu1 %v7165_v45 }
 0x231   :  { %v2810_v9 = vadd.f32 %v7304_v15, %v2707_v18  ;;  %v1909_v19 = vpop.f32.mrb[156].mxu0  ;;  %v2905_v23 = vmax.f32 %v2809_v60, 0.0  ;;  %3861 = vmatpush1.bf16.msra.mxu1 %v6227_v46 }
 0x232   :  { %v2554_v20 = vmax.f32 %v7240_v10, %v1909_v19  ;;  %v1911_v21 = vpop.f32.mrb[157].mxu0  ;;  %3862 = vmatprep.subr.bf16.mxu1 %v6235_v55  ;;  %v6209_v19 = vld [vmem:[%s8345_s0 + $0x470] ss:$8 sps:$4 sm:$0xff]  }
 0x233   :  { %v2906_v24 = vmax.f32 %v2810_v9, 0.0  ;;  %v2555_v28 = vmax.f32 %v7242_v30, %v1911_v21  ;;  %v1913_v25 = vpop.f32.mrb[158].mxu0 }
 0x234   :  { %v2556_v35 = vmax.f32 %v7247_v36, %v1913_v25  ;;  %v1915_v37 = vpop.f32.mrb[159].mxu0 }
 0x235   :  { %v7320_v38 = vpack.c.bf16 %v2906_v24, %v2905_v23  ;;  %v2708_v10 = vmax.f32 %v2554_v20, %v2555_v28  ;;  %v2557_v39 = vmax.f32 %v7252_v17, %v1915_v37  ;;  %3863 = vmatpush1.bf16.msra.mxu1 %v6233_v13 }
 0x236   :  { %2178 = vmatmul.mubr.bf16.gmra.mrb[8].mxu0 %v6188_v22  ;;  %3864 = vmatprep.subr.bf16.mxu1 %v6244_v8  ;;  %v6232_v22 = vld [vmem:[%s8345_s0 + $0x484] ss:$8 sps:$4 sm:$0xff]  }
 0x237   :  { %v2811_v29 = vadd.f32 %v7304_v15, %v2708_v10  ;;  %v2709_v32 = vmax.f32 %v2556_v35, %v2557_v39  ;;  %3665 = vmatprep.mubr.bf16.mxu1 %v7320_v38  ;;  %5418 = vmatprep.mubr.msk.bf16.mxu0 %vm1189_vm0, %v6193_v31 }
 0x238   :  { %3666 = vmatmul.mubr.bf16.gmra.mrb[56].mxu1 %v7188_v44 }
 0x239   :  { %v2812_v30 = vadd.f32 %v7304_v15, %v2709_v32  ;;  %v1919_v40 = vpop.f32.mrb[160].mxu0  ;;  %v2907_v42 = vmax.f32 %v2811_v29, 0.0  ;;  %3865 = vmatpush1.bf16.msra.mxu1 %v6242_v12  ;;  %v6230_v32 = vld [vmem:[%s8345_s0 + $0x480] ss:$8 sps:$4 sm:$0xff]  }
 0x23a   :  { %v1921_v36 = vpop.f32.mrb[161].mxu0 }
 0x23b   :  { %v2908_v17 = vmax.f32 %v2812_v30, 0.0  ;;  %v1923_v43 = vpop.f32.mrb[162].mxu0 }
 0x23c   :  { %v1925_v33 = vpop.f32.mrb[163].mxu0 }
 0x23d   :  { %v7334_v3 = vpack.c.bf16 %v2908_v17, %v2907_v42  ;;  %v6238_v42 = vld [vmem:[%s8345_s0 + $0x494] ss:$8 sps:$4 sm:$0xff]  }
 0x23e   :  { %2188 = vmatmul.mubr.bf16.gmra.mrb[12].mxu0 %v6191_v41 }
 0x23f   :  { %3675 = vmatprep.mubr.bf16.mxu1 %v7334_v3  ;;  %5419 = vmatprep.mubr.msk.bf16.mxu0 %vm1189_vm0, %v6196_v0 }
 0x240   :  { %3676 = vmatmul.mubr.bf16.gmra.mrb[60].mxu1 %v7201_v54 }
 0x241   :  { %v1929_v49 = vpop.f32.mrb[164].mxu0 }
 0x242   :  { %v1931_v26 = vpop.f32.mrb[165].mxu0 }
 0x243   :  { %v1933_v51 = vpop.f32.mrb[166].mxu0 }
 0x244   :  { %v1935_v53 = vpop.f32.mrb[167].mxu0 }
 0x246   :  { %2198 = vmatmul.mubr.bf16.gmra.mrb[16].mxu0 %v6194_v50 }
 0x247   :  { %5420 = vmatprep.mubr.msk.bf16.mxu0 %vm1189_vm0, %v6202_v52 }
 0x249   :  { %v7358_v56 = vpop.f32.mrb[168].mxu0 }
 0x24a   :  { %v7360_v59 = vpop.f32.mrb[169].mxu0 }
 0x24b   :  { %v7365_v4 = vpop.f32.mrb[170].mxu0 }
 0x24c   :  { %v7370_v61 = vpop.f32.mrb[171].mxu0 }
 0x24e   :  { %2208 = vmatmul.mubr.bf16.gmra.mrb[20].mxu0 %v6200_v2 }
 0x24f   :  { %5421 = vmatprep.mubr.msk.bf16.mxu0 %vm1189_vm0, %v6205_v16 }
 0x251   :  { %v7373_v5 = vpop.f32.mrb[172].mxu0 }
 0x252   :  { %v7375_v57 = vpop.f32.mrb[173].mxu0 }
 0x253   :  { %v7380_v11 = vpop.f32.mrb[174].mxu0 }
 0x254   :  { %v7385_v1 = vpop.f32.mrb[175].mxu0 }
 0x256   :  { %2218 = vmatmul.mubr.bf16.gmra.mrb[24].mxu0 %v6203_v7  ;;  %v6241_v7 = vld [vmem:[%s8345_s0 + $0x4a4] ss:$8 sps:$4 sm:$0xff]  }
 0x257   :  { %5422 = vmatprep.mubr.msk.bf16.mxu0 %vm1189_vm0, %v6211_v63 }
 0x259   :  { %v1959_v60 = vpop.f32.mrb[176].mxu0 }
 0x25a   :  { %v2558_v18 = vmax.f32 %v1919_v40, %v1959_v60  ;;  %v1961_v9 = vpop.f32.mrb[177].mxu0 }
 0x25b   :  { %v2559_v20 = vmax.f32 %v1921_v36, %v1961_v9  ;;  %v1963_v21 = vpop.f32.mrb[178].mxu0 }
 0x25c   :  { %v2560_v23 = vmax.f32 %v1923_v43, %v1963_v21  ;;  %v1965_v24 = vpop.f32.mrb[179].mxu0 }
 0x25d   :  { %v2710_v28 = vmax.f32 %v2558_v18, %v2559_v20  ;;  %v2561_v25 = vmax.f32 %v1925_v33, %v1965_v24  ;;  %v6251_v18 = vld [vmem:[%s8346_s3 + $0x1a0] ss:$8 sps:$4 sm:$0xff]  }
 0x25e   :  { %2228 = vmatmul.mubr.bf16.gmra.mrb[28].mxu0 %v6209_v19 }
 0x25f   :  { %v2813_v31 = vadd.f32 %v7304_v15, %v2710_v28  ;;  %v2711_v35 = vmax.f32 %v2560_v23, %v2561_v25  ;;  %5423 = vmatprep.mubr.msk.bf16.mxu0 %vm1189_vm0, %v6232_v22  ;;  %v6239_v22 = vld [vmem:[%s8345_s0 + $0x4a0] ss:$8 sps:$4 sm:$0xff]  }
 0x261   :  { %v2814_v37 = vadd.f32 %v7304_v15, %v2711_v35  ;;  %v1969_v10 = vpop.f32.mrb[180].mxu0  ;;  %v2909_v30 = vmax.f32 %v2813_v31, 0.0  ;;  %v6247_v31 = vld [vmem:[%s8345_s0 + $0x4b4] ss:$8 sps:$4 sm:$0xff]  }
 0x262   :  { %v2562_v39 = vmax.f32 %v1929_v49, %v1969_v10  ;;  %v1971_v29 = vpop.f32.mrb[181].mxu0 }
 0x263   :  { %v2910_v40 = vmax.f32 %v2814_v37, 0.0  ;;  %v2563_v36 = vmax.f32 %v1931_v26, %v1971_v29  ;;  %v1973_v41 = vpop.f32.mrb[182].mxu0 }
 0x264   :  { %v2564_v17 = vmax.f32 %v1933_v51, %v1973_v41  ;;  %v1975_v43 = vpop.f32.mrb[183].mxu0 }
 0x265   :  { %v7409_v0 = vpack.c.bf16 %v2910_v40, %v2909_v30  ;;  %v2712_v33 = vmax.f32 %v2562_v39, %v2563_v36  ;;  %v2565_v46 = vmax.f32 %v1935_v53, %v1975_v43  ;;  %v6236_v53 = vld [vmem:[%s8345_s0 + $0x490] ss:$8 sps:$4 sm:$0xff]  }
 0x266   :  { %2238 = vmatmul.mubr.bf16.gmra.mrb[32].mxu0 %v6230_v32 }
 0x267   :  { %v2815_v47 = vadd.f32 %v7304_v15, %v2712_v33  ;;  %v2713_v49 = vmax.f32 %v2564_v17, %v2565_v46  ;;  %3685 = vmatprep.mubr.bf16.mxu1 %v7409_v0  ;;  %5424 = vmatprep.mubr.msk.bf16.mxu0 %vm1189_vm0, %v6238_v42  ;;  %v6250_v42 = vld [vmem:[%s8345_s0 + $0x4c4] ss:$8 sps:$4 sm:$0xff]   ;;  %v6260_v33 = vld [vmem:[%s8346_s3 + $0x1b0] ss:$8 sps:$4 sm:$0xff]   ;;  %v6262_v46 = vld [vmem:[%s8346_s3 + $0x1b4] ss:$8 sps:$4 sm:$0xff]  }
 0x268   :  { %3686 = vmatmul.mubr.bf16.gmra.mrb[64].mxu1 %v7276_v27 }
 0x269   :  { %v2816_v26 = vadd.f32 %v7304_v15, %v2713_v49  ;;  %v1979_v50 = vpop.f32.mrb[184].mxu0  ;;  %v2911_v13 = vmax.f32 %v2815_v47, 0.0  ;;  %v6248_v49 = vld [vmem:[%s8345_s0 + $0x4c0] ss:$8 sps:$4 sm:$0xff]  }
 0x26a   :  { %v2566_v51 = vmax.f32 %v7358_v56, %v1979_v50  ;;  %v1981_v52 = vpop.f32.mrb[185].mxu0 }
 0x26b   :  { %v2912_v55 = vmax.f32 %v2816_v26, 0.0  ;;  %v2567_v2 = vmax.f32 %v7360_v59, %v1981_v52  ;;  %v1983_v16 = vpop.f32.mrb[186].mxu0  ;;  %v6253_v59 = vld [vmem:[%s8346_s3 + $0x1a4] ss:$8 sps:$4 sm:$0xff]   ;;  %v6256_v26 = vld [vmem:[%s8345_s0 + $0x4d4] ss:$8 sps:$4 sm:$0xff]  }
 0x26c   :  { %v2568_v63 = vmax.f32 %v7365_v4, %v1983_v16  ;;  %v1985_v12 = vpop.f32.mrb[187].mxu0  ;;  %3866 = vmatprep.subr.bf16.mxu1 %v6253_v59  ;;  %v6254_v16 = vld [vmem:[%s8345_s0 + $0x4d0] ss:$8 sps:$4 sm:$0xff]  }
 0x26d   :  { %v7425_v8 = vpack.c.bf16 %v2912_v55, %v2911_v13  ;;  %v2714_v56 = vmax.f32 %v2566_v51, %v2567_v2  ;;  %v2569_v60 = vmax.f32 %v7370_v61, %v1985_v12  ;;  %3867 = vmatpush1.bf16.msra.mxu1 %v6251_v18  ;;  %v6266_v51 = vld [vmem:[%s8348_s5 + $0x40] sm:$0xff]  }
 0x26e   :  { %2248 = vmatmul.mubr.bf16.gmra.mrb[36].mxu0 %v6236_v53  ;;  %3868 = vmatprep.subr.bf16.mxu1 %v6262_v46  ;;  %v6270_v53 = vld [vmem:[%s8348_s5] sm:$0xff]   ;;  %v6276_v46 = vld [vmem:[%s8345_s0 + $0x514] ss:$8 sps:$4 sm:$0xff]  }
 0x26f   :  { %v2817_v9 = vadd.f32 %v7304_v15, %v2714_v56  ;;  %v2715_v19 = vmax.f32 %v2568_v63, %v2569_v60  ;;  %3695 = vmatprep.mubr.bf16.mxu1 %v7425_v8  ;;  %5425 = vmatprep.mubr.msk.bf16.mxu0 %vm1189_vm0, %v6241_v7  ;;  %v6271_v55 = vld [vmem:[%s8346_s3 + $0x1c0] ss:$8 sps:$4 sm:$0xff]   ;;  %v6273_v2 = vld [vmem:[%s8346_s3 + $0x1c4] ss:$8 sps:$4 sm:$0xff]  }
 0x270   :  { %3696 = vmatmul.mubr.bf16.gmra.mrb[68].mxu1 %v7292_v62  ;;  %5562 = vmatprep.subr.bf16.mxu0 %v6266_v51  ;;  %v6259_v63 = vld [vmem:[%s8345_s0 + $0x4e4] ss:$8 sps:$4 sm:$0xff]   ;;  %v6257_v18 = vld [vmem:[%s8345_s0 + $0x4e0] ss:$8 sps:$4 sm:$0xff]  }
 0x271   :  { %v2818_v4 = vadd.f32 %v7304_v15, %v2715_v19  ;;  %v1989_v61 = vpop.f32.mrb[188].mxu0  ;;  %v2913_v23 = vmax.f32 %v2817_v9, 0.0  ;;  %3869 = vmatpush1.bf16.msra.mxu1 %v6260_v33  ;;  %5563 = vmatpush3.bf16.msra.mxu0 %v6270_v53  ;;  %v6265_v9 = vld [vmem:[%s8345_s0 + $0x4f4] ss:$8 sps:$4 sm:$0xff]  }
 0x272   :  { %v2570_v20 = vmax.f32 %v7373_v5, %v1989_v61  ;;  %v1991_v21 = vpop.f32.mrb[189].mxu0  ;;  %3870 = vmatprep.subr.bf16.mxu1 %v6273_v2 }
 0x273   :  { %v2914_v24 = vmax.f32 %v2818_v4, 0.0  ;;  %v2571_v28 = vmax.f32 %v7375_v57, %v1991_v21  ;;  %v1993_v25 = vpop.f32.mrb[190].mxu0  ;;  %v6282_v21 = vld [vmem:[%s8346_s3 + $0x1d4] ss:$8 sps:$4 sm:$0xff]  }
 0x274   :  { %v2572_v35 = vmax.f32 %v7380_v11, %v1993_v25  ;;  %v1995_v37 = vpop.f32.mrb[191].mxu0 }
 0x275   :  { %v7448_v10 = vpack.c.bf16 %v2914_v24, %v2913_v23  ;;  %v2716_v5 = vmax.f32 %v2570_v20, %v2571_v28  ;;  %v2573_v39 = vmax.f32 %v7385_v1, %v1995_v37  ;;  %v6245_v1 = vld [vmem:[%s8345_s0 + $0x4b0] ss:$8 sps:$4 sm:$0xff]   ;;  %3871 = vmatpush1.bf16.msra.mxu1 %v6271_v55  ;;  %v6269_v24 = vld [vmem:[%s8345_s0 + $0x504] ss:$8 sps:$4 sm:$0xff]  }
 0x276   :  { %2258 = vmatmul.mubr.bf16.gmra.mrb[40].mxu0 %v6239_v22  ;;  %v6280_v20 = vld [vmem:[%s8346_s3 + $0x1d0] ss:$8 sps:$4 sm:$0xff]   ;;  %3872 = vmatprep.subr.bf16.mxu1 %v6282_v21 }
 0x277   :  { %v2819_v29 = vadd.f32 %v7304_v15, %v2716_v5  ;;  %v2717_v32 = vmax.f32 %v2572_v35, %v2573_v39  ;;  %3705 = vmatprep.mubr.bf16.mxu1 %v7448_v10  ;;  %5426 = vmatprep.mubr.msk.bf16.mxu0 %vm1189_vm0, %v6247_v31  ;;  %v6263_v22 = vld [vmem:[%s8345_s0 + $0x4f0] ss:$8 sps:$4 sm:$0xff]  }
 0x278   :  { %3706 = vmatmul.mubr.bf16.gmra.mrb[72].mxu1 %v7320_v38 }
 0x279   :  { %v2820_v57 = vadd.f32 %v7304_v15, %v2717_v32  ;;  %v7456_v30 = vpop.f32.mrb[192].mxu0  ;;  %v2915_v40 = vmax.f32 %v2819_v29, 0.0  ;;  %3873 = vmatpush1.bf16.msra.mxu1 %v6280_v20 }
 0x27a   :  { %v7458_v11 = vpop.f32.mrb[193].mxu0 }
 0x27b   :  { %v2916_v36 = vmax.f32 %v2820_v57, 0.0  ;;  %v7463_v41 = vpop.f32.mrb[194].mxu0 }
 0x27c   :  { %v2005_v17 = vpop.f32.mrb[195].mxu0 }
 0x27d   :  { %v7468_v43 = vpack.c.bf16 %v2916_v36, %v2915_v40 }
 0x27e   :  { %2268 = vmatmul.mubr.bf16.gmra.mrb[44].mxu0 %v6245_v1 }
 0x27f   :  { %3715 = vmatprep.mubr.bf16.mxu1 %v7468_v43  ;;  %5427 = vmatprep.mubr.msk.bf16.mxu0 %vm1189_vm0, %v6250_v42 }
 0x280   :  { %3716 = vmatmul.mubr.bf16.gmra.mrb[76].mxu1 %v7334_v3 }
 0x281   :  { %v7479_v47 = vpop.f32.mrb[196].mxu0 }
 0x282   :  { %v2011_v50 = vpop.f32.mrb[197].mxu0 }
 0x283   :  { %v7490_v52 = vpop.f32.mrb[198].mxu0 }
 0x284   :  { %v2015_v13 = vpop.f32.mrb[199].mxu0 }
 0x286   :  { %2278 = vmatmul.mubr.bf16.gmra.mrb[48].mxu0 %v6248_v49 }
 0x287   :  { %5428 = vmatprep.mubr.msk.bf16.mxu0 %vm1189_vm0, %v6256_v26 }
 0x289   :  { %v7505_v7 = vpop.f32.mrb[200].mxu0 }
 0x28a   :  { %v7510_v12 = vpop.f32.mrb[201].mxu0 }
 0x28b   :  { %v7512_v56 = vpop.f32.mrb[202].mxu0 }
 0x28c   :  { %v7514_v60 = vpop.f32.mrb[203].mxu0 }
 0x28e   :  { %2288 = vmatmul.mubr.bf16.gmra.mrb[52].mxu0 %v6254_v16 }
 0x28f   :  { %5429 = vmatprep.mubr.msk.bf16.mxu0 %vm1189_vm0, %v6259_v63 }
 0x291   :  { %v7520_v59 = vpop.f32.mrb[204].mxu0 }
 0x292   :  { %v7525_v19 = vpop.f32.mrb[205].mxu0 }
 0x293   :  { %v7527_v4 = vpop.f32.mrb[206].mxu0 }
 0x294   :  { %v7529_v61 = vpop.f32.mrb[207].mxu0 }
 0x296   :  { %2298 = vmatmul.mubr.bf16.gmra.mrb[56].mxu0 %v6257_v18 }
 0x297   :  { %5430 = vmatprep.mubr.msk.bf16.mxu0 %vm1189_vm0, %v6265_v9 }
 0x299   :  { %v2039_v23 = vpop.f32.mrb[208].mxu0 }
 0x29a   :  { %v2574_v28 = vmax.f32 %v7456_v30, %v2039_v23  ;;  %v2041_v25 = vpop.f32.mrb[209].mxu0 }
 0x29b   :  { %v2575_v31 = vmax.f32 %v7458_v11, %v2041_v25  ;;  %v2043_v35 = vpop.f32.mrb[210].mxu0  ;;  %v6267_v11 = vld [vmem:[%s8345_s0 + $0x500] ss:$8 sps:$4 sm:$0xff]  }
 0x29c   :  { %v2576_v37 = vmax.f32 %v7463_v41, %v2043_v35  ;;  %v2045_v5 = vpop.f32.mrb[211].mxu0 }
 0x29d   :  { %v2718_v39 = vmax.f32 %v2574_v28, %v2575_v31  ;;  %v2577_v29 = vmax.f32 %v2005_v17, %v2045_v5  ;;  %v6289_v31 = vld [vmem:[%s8346_s3 + $0x1e0] ss:$8 sps:$4 sm:$0xff]  }
 0x29e   :  { %2308 = vmatmul.mubr.bf16.gmra.mrb[60].mxu0 %v6263_v22  ;;  %v6279_v22 = vld [vmem:[%s8345_s0 + $0x524] ss:$8 sps:$4 sm:$0xff]  }
 0x29f   :  { %v2821_v32 = vadd.f32 %v7304_v15, %v2718_v39  ;;  %v2719_v57 = vmax.f32 %v2576_v37, %v2577_v29  ;;  %5431 = vmatprep.mubr.msk.bf16.mxu0 %vm1189_vm0, %v6269_v24  ;;  %v6277_v29 = vld [vmem:[%s8345_s0 + $0x520] ss:$8 sps:$4 sm:$0xff]  }
 0x2a1   :  { %v2822_v1 = vadd.f32 %v7304_v15, %v2719_v57  ;;  %v2049_v40 = vpop.f32.mrb[212].mxu0  ;;  %v2917_v41 = vmax.f32 %v2821_v32, 0.0 }
 0x2a2   :  { %v2578_v30 = vmax.f32 %v7479_v47, %v2049_v40  ;;  %v2051_v36 = vpop.f32.mrb[213].mxu0 }
 0x2a3   :  { %v2918_v42 = vmax.f32 %v2822_v1, 0.0  ;;  %v2579_v33 = vmax.f32 %v2011_v50, %v2051_v36  ;;  %v2053_v17 = vpop.f32.mrb[214].mxu0 }
 0x2a4   :  { %v2580_v49 = vmax.f32 %v7490_v52, %v2053_v17  ;;  %v2055_v26 = vpop.f32.mrb[215].mxu0 }
 0x2a5   :  { %v7558_v51 = vpack.c.bf16 %v2918_v42, %v2917_v41  ;;  %v2720_v53 = vmax.f32 %v2578_v30, %v2579_v33  ;;  %v2581_v47 = vmax.f32 %v2015_v13, %v2055_v26  ;;  %v6274_v13 = vld [vmem:[%s8345_s0 + $0x510] ss:$8 sps:$4 sm:$0xff]   ;;  %v6285_v30 = vld [vmem:[%s8345_s0 + $0x534] ss:$8 sps:$4 sm:$0xff]  }
 0x2a6   :  { %2318 = vmatmul.mubr.bf16.gmra.mrb[64].mxu0 %v6267_v11 }
 0x2a7   :  { %v2823_v55 = vadd.f32 %v7304_v15, %v2720_v53  ;;  %v2721_v2 = vmax.f32 %v2580_v49, %v2581_v47  ;;  %3725 = vmatprep.mubr.bf16.mxu1 %v7558_v51  ;;  %5432 = vmatprep.mubr.msk.bf16.mxu0 %vm1189_vm0, %v6276_v46  ;;  %v6283_v49 = vld [vmem:[%s8345_s0 + $0x530] ss:$8 sps:$4 sm:$0xff]   ;;  %v6288_v47 = vld [vmem:[%s8345_s0 + $0x544] ss:$8 sps:$4 sm:$0xff]  }
 0x2a8   :  { %3726 = vmatmul.mubr.bf16.gmra.mrb[80].mxu1 %v7409_v0 }
 0x2a9   :  { %v2824_v50 = vadd.f32 %v7304_v15, %v2721_v2  ;;  %v2059_v16 = vpop.f32.mrb[216].mxu0  ;;  %v2919_v18 = vmax.f32 %v2823_v55, 0.0 }
 0x2aa   :  { %v2582_v52 = vmax.f32 %v7505_v7, %v2059_v16  ;;  %v2061_v63 = vpop.f32.mrb[217].mxu0  ;;  %v6300_v16 = vld [vmem:[%s8346_s3 + $0x1f4] ss:$8 sps:$4 sm:$0xff]  }
 0x2ab   :  { %v2920_v9 = vmax.f32 %v2824_v50, 0.0  ;;  %v2583_v20 = vmax.f32 %v7510_v12, %v2061_v63  ;;  %v2063_v21 = vpop.f32.mrb[218].mxu0  ;;  %v6291_v12 = vld [vmem:[%s8346_s3 + $0x1e4] ss:$8 sps:$4 sm:$0xff]   ;;  %v6298_v50 = vld [vmem:[%s8346_s3 + $0x1f0] ss:$8 sps:$4 sm:$0xff]  }
 0x2ac   :  { %v2584_v23 = vmax.f32 %v7512_v56, %v2063_v21  ;;  %v2065_v24 = vpop.f32.mrb[219].mxu0  ;;  %3874 = vmatprep.subr.bf16.mxu1 %v6291_v12  ;;  %v6306_v63 = vld [vmem:[%s8346_s3 + $0x204] ss:$8 sps:$4 sm:$0xff]  }
 0x2ad   :  { %v7574_v28 = vpack.c.bf16 %v2920_v9, %v2919_v18  ;;  %v2722_v7 = vmax.f32 %v2582_v52, %v2583_v20  ;;  %v2585_v25 = vmax.f32 %v7514_v60, %v2065_v24  ;;  %3875 = vmatpush1.bf16.msra.mxu1 %v6289_v31  ;;  %v6286_v18 = vld [vmem:[%s8345_s0 + $0x540] ss:$8 sps:$4 sm:$0xff]   ;;  %v6294_v20 = vld [vmem:[%s8345_s0 + $0x554] ss:$8 sps:$4 sm:$0xff]   ;;  %v6292_v24 = vld [vmem:[%s8345_s0 + $0x550] ss:$8 sps:$4 sm:$0xff]  }
 0x2ae   :  { %2328 = vmatmul.mubr.bf16.gmra.mrb[68].mxu0 %v6274_v13  ;;  %3876 = vmatprep.subr.bf16.mxu1 %v6300_v16 }
 0x2af   :  { %v2825_v35 = vadd.f32 %v7304_v15, %v2722_v7  ;;  %v2723_v37 = vmax.f32 %v2584_v23, %v2585_v25  ;;  %3735 = vmatprep.mubr.bf16.mxu1 %v7574_v28  ;;  %5433 = vmatprep.mubr.msk.bf16.mxu0 %vm1189_vm0, %v6279_v22  ;;  %v6297_v25 = vld [vmem:[%s8345_s0 + $0x564] ss:$8 sps:$4 sm:$0xff]  }
 0x2b0   :  { %3736 = vmatmul.mubr.bf16.gmra.mrb[84].mxu1 %v7425_v8 }
 0x2b1   :  { %v2826_v56 = vadd.f32 %v7304_v15, %v2723_v37  ;;  %v2069_v60 = vpop.f32.mrb[220].mxu0  ;;  %v2921_v32 = vmax.f32 %v2825_v35, 0.0  ;;  %3877 = vmatpush1.bf16.msra.mxu1 %v6298_v50  ;;  %v6295_v37 = vld [vmem:[%s8345_s0 + $0x560] ss:$8 sps:$4 sm:$0xff]  }
 0x2b2   :  { %v2586_v5 = vmax.f32 %v7520_v59, %v2069_v60  ;;  %v2071_v39 = vpop.f32.mrb[221].mxu0  ;;  %4199 = vmatprep.subr.bf16.mxu1 %v6306_v63  ;;  %v6303_v60 = vld [vmem:[%s8345_s0 + $0x574] ss:$8 sps:$4 sm:$0xff]  }
 0x2b3   :  { %v2922_v57 = vmax.f32 %v2826_v56, 0.0  ;;  %v2587_v1 = vmax.f32 %v7525_v19, %v2071_v39  ;;  %v2073_v40 = vpop.f32.mrb[222].mxu0 }
 0x2b4   :  { %v2588_v36 = vmax.f32 %v7527_v4, %v2073_v40  ;;  %v2075_v11 = vpop.f32.mrb[223].mxu0 }
 0x2b5   :  { %v7597_v41 = vpack.c.bf16 %v2922_v57, %v2921_v32  ;;  %v2724_v59 = vmax.f32 %v2586_v5, %v2587_v1  ;;  %v2589_v42 = vmax.f32 %v7529_v61, %v2075_v11  ;;  %v6301_v57 = vld [vmem:[%s8345_s0 + $0x570] ss:$8 sps:$4 sm:$0xff]  }
 0x2b6   :  { %2338 = vmatmul.mubr.bf16.gmra.mrb[72].mxu0 %v6277_v29 }
 0x2b7   :  { %v2827_v33 = vadd.f32 %v7304_v15, %v2724_v59  ;;  %v2725_v17 = vmax.f32 %v2588_v36, %v2589_v42  ;;  %3745 = vmatprep.mubr.bf16.mxu1 %v7597_v41  ;;  %5434 = vmatprep.mubr.msk.bf16.mxu0 %vm1189_vm0, %v6285_v30 }
 0x2b8   :  { %3746 = vmatmul.mubr.bf16.gmra.mrb[88].mxu1 %v7448_v10 }
 0x2b9   :  { %v2828_v19 = vadd.f32 %v7304_v15, %v2725_v17  ;;  %v2079_v46 = vpop.f32.mrb[224].mxu0  ;;  %v2923_v26 = vmax.f32 %v2827_v33, 0.0 }
 0x2ba   :  { %v2081_v4 = vpop.f32.mrb[225].mxu0 }
 0x2bb   :  { %v2924_v61 = vmax.f32 %v2828_v19, 0.0  ;;  %v2083_v53 = vpop.f32.mrb[226].mxu0 }
 0x2bc   :  { %v2085_v55 = vpop.f32.mrb[227].mxu0 }
 0x2bd   :  { %v7611_v2 = vpack.c.bf16 %v2924_v61, %v2923_v26 }
 0x2be   :  { %2348 = vmatmul.mubr.bf16.gmra.mrb[76].mxu0 %v6283_v49 }
 0x2bf   :  { %3755 = vmatprep.mubr.bf16.mxu1 %v7611_v2  ;;  %5435 = vmatprep.mubr.msk.bf16.mxu0 %vm1189_vm0, %v6288_v47 }
 0x2c0   :  { %3756 = vmatmul.mubr.bf16.gmra.mrb[92].mxu1 %v7468_v43 }
 0x2c1   :  { %v2089_v52 = vpop.f32.mrb[228].mxu0 }
 0x2c2   :  { %v2091_v13 = vpop.f32.mrb[229].mxu0 }
 0x2c3   :  { %v2093_v9 = vpop.f32.mrb[230].mxu0 }
 0x2c4   :  { %v2095_v21 = vpop.f32.mrb[231].mxu0 }
 0x2c6   :  { %2358 = vmatmul.mubr.bf16.gmra.mrb[80].mxu0 %v6286_v18 }
 0x2c7   :  { %5436 = vmatprep.mubr.msk.bf16.mxu0 %vm1189_vm0, %v6294_v20 }
 0x2c9   :  { %v2099_v22 = vpop.f32.mrb[232].mxu0 }
 0x2ca   :  { %v2101_v23 = vpop.f32.mrb[233].mxu0 }
 0x2cb   :  { %v2103_v7 = vpop.f32.mrb[234].mxu0 }
 0x2cc   :  { %v2105_v31 = vpop.f32.mrb[235].mxu0 }
 0x2ce   :  { %2368 = vmatmul.mubr.bf16.gmra.mrb[84].mxu0 %v6292_v24 }
 0x2cf   :  { %5437 = vmatprep.mubr.msk.bf16.mxu0 %vm1189_vm0, %v6297_v25 }
 0x2d1   :  { %v7639_v12 = vpop.f32.mrb[236].mxu0 }
 0x2d2   :  { %v7641_v35 = vpop.f32.mrb[237].mxu0 }
 0x2d3   :  { %v7646_v56 = vpop.f32.mrb[238].mxu0 }
 0x2d4   :  { %v7651_v5 = vpop.f32.mrb[239].mxu0 }
 0x2d6   :  { %2378 = vmatmul.mubr.bf16.gmra.mrb[88].mxu0 %v6295_v37 }
 0x2d7   :  { %5438 = vmatprep.mubr.msk.bf16.mxu0 %vm1189_vm0, %v6303_v60 }
 0x2d9   :  { %v2119_v39 = vpop.f32.mrb[240].mxu0 }
 0x2da   :  { %v2590_v29 = vmax.f32 %v2079_v46, %v2119_v39  ;;  %v2121_v32 = vpop.f32.mrb[241].mxu0  ;;  %v6307_v46 = vld [vmem:[%s8348_s5 + $0x48] sm:$0xff]  }
 0x2db   :  { %v2591_v1 = vmax.f32 %v2081_v4, %v2121_v32  ;;  %v2123_v40 = vpop.f32.mrb[242].mxu0  ;;  %v6308_v4 = vld [vmem:[%s8348_s5 + $0x8] sm:$0xff]   ;;  %5564 = vmatprep.subr.bf16.mxu0 %v6307_v46 }
 0x2dc   :  { %v2592_v30 = vmax.f32 %v2083_v53, %v2123_v40  ;;  %v2125_v36 = vpop.f32.mrb[243].mxu0  ;;  %5565 = vmatpush3.bf16.msra.mxu0 %v6308_v4 }
 0x2dd   :  { %v2726_v11 = vmax.f32 %v2590_v29, %v2591_v1  ;;  %v2593_v59 = vmax.f32 %v2085_v55, %v2125_v36 }
 0x2de   :  { %2388 = vmatmul.mubr.bf16.gmra.mrb[92].mxu0 %v6301_v57 }
 0x2df   :  { %v2829_v42 = vadd.f32 %v7304_v15, %v2726_v11  ;;  %v2727_v33 = vmax.f32 %v2592_v30, %v2593_v59 }
 0x2e1   :  { %v2830_v17 = vadd.f32 %v7304_v15, %v2727_v33  ;;  %v2129_v19 = vpop.f32.mrb[244].mxu0  ;;  %v2925_v61 = vmax.f32 %v2829_v42, 0.0 }
 0x2e2   :  { %v2594_v49 = vmax.f32 %v2089_v52, %v2129_v19  ;;  %v2131_v26 = vpop.f32.mrb[245].mxu0 }
 0x2e3   :  { %v2926_v53 = vmax.f32 %v2830_v17, 0.0  ;;  %v2595_v47 = vmax.f32 %v2091_v13, %v2131_v26  ;;  %v2133_v55 = vpop.f32.mrb[246].mxu0 }
 0x2e4   :  { %v2596_v50 = vmax.f32 %v2093_v9, %v2133_v55  ;;  %v2135_v16 = vpop.f32.mrb[247].mxu0 }
 0x2e5   :  { %v7665_v63 = vpack.c.bf16 %v2926_v53, %v2925_v61  ;;  %v2728_v18 = vmax.f32 %v2594_v49, %v2595_v47  ;;  %v2597_v20 = vmax.f32 %v2095_v21, %v2135_v16 }
 0x2e7   :  { %v2831_v24 = vadd.f32 %v7304_v15, %v2728_v18  ;;  %v2729_v25 = vmax.f32 %v2596_v50, %v2597_v20  ;;  %3765 = vmatprep.mubr.bf16.mxu1 %v7665_v63 }
 0x2e8   :  { %3766 = vmatmul.mubr.bf16.gmra.mrb[96].mxu1 %v7558_v51 }
 0x2e9   :  { %v2832_v52 = vadd.f32 %v7304_v15, %v2729_v25  ;;  %v2139_v37 = vpop.f32.mrb[248].mxu0  ;;  %v2927_v39 = vmax.f32 %v2831_v24, 0.0 }
 0x2ea   :  { %v2598_v13 = vmax.f32 %v2099_v22, %v2139_v37  ;;  %v2141_v60 = vpop.f32.mrb[249].mxu0 }
 0x2eb   :  { %v2928_v9 = vmax.f32 %v2832_v52, 0.0  ;;  %v2599_v29 = vmax.f32 %v2101_v23, %v2141_v60  ;;  %v2143_v32 = vpop.f32.mrb[250].mxu0 }
 0x2ec   :  { %v2600_v57 = vmax.f32 %v2103_v7, %v2143_v32  ;;  %v2145_v1 = vpop.f32.mrb[251].mxu0 }
 0x2ed   :  { %v7671_v40 = vpack.c.bf16 %v2928_v9, %v2927_v39  ;;  %v2730_v21 = vmax.f32 %v2598_v13, %v2599_v29  ;;  %v2601_v30 = vmax.f32 %v2105_v31, %v2145_v1 }
 0x2ef   :  { %v2833_v36 = vadd.f32 %v7304_v15, %v2730_v21  ;;  %v2731_v11 = vmax.f32 %v2600_v57, %v2601_v30  ;;  %3775 = vmatprep.mubr.bf16.mxu1 %v7671_v40 }
 0x2f0   :  { %3776 = vmatmul.mubr.bf16.gmra.mrb[100].mxu1 %v7574_v28 }
 0x2f1   :  { %v2834_v22 = vadd.f32 %v7304_v15, %v2731_v11  ;;  %v2149_v59 = vpop.f32.mrb[252].mxu0  ;;  %v2929_v33 = vmax.f32 %v2833_v36, 0.0 }
 0x2f2   :  { %v2602_v42 = vmax.f32 %v7639_v12, %v2149_v59  ;;  %v2151_v23 = vpop.f32.mrb[253].mxu0 }
 0x2f3   :  { %v2930_v7 = vmax.f32 %v2834_v22, 0.0  ;;  %v2603_v17 = vmax.f32 %v7641_v35, %v2151_v23  ;;  %v2153_v19 = vpop.f32.mrb[254].mxu0 }
 0x2f4   :  { %v2604_v31 = vmax.f32 %v7646_v56, %v2153_v19  ;;  %v2155_v46 = vpop.f32.mrb[255].mxu0 }
 0x2f5   :  { %v7680_v4 = vpack.c.bf16 %v2930_v7, %v2929_v33  ;;  %v2732_v49 = vmax.f32 %v2602_v42, %v2603_v17  ;;  %v2605_v26 = vmax.f32 %v7651_v5, %v2155_v46 }
 0x2f7   :  { %v2835_v61 = vadd.f32 %v7304_v15, %v2732_v49  ;;  %v2733_v53 = vmax.f32 %v2604_v31, %v2605_v26  ;;  %3785 = vmatprep.mubr.bf16.mxu1 %v7680_v4 }
 0x2f8   :  { %3786 = vmatmul.mubr.bf16.gmra.mrb[104].mxu1 %v7597_v41 }
 0x2f9   :  { %v2836_v12 = vadd.f32 %v7304_v15, %v2733_v53  ;;  %v2159_v47 = vpop.f32.mrb[0].mxu0  ;;  %v2931_v55 = vmax.f32 %v2835_v61, 0.0 }
 0x2fa   :  { %v2161_v35 = vpop.f32.mrb[1].mxu0 }
 0x2fb   :  { %v2932_v50 = vmax.f32 %v2836_v12, 0.0  ;;  %v2163_v56 = vpop.f32.mrb[2].mxu0 }
 0x2fc   :  { %v2165_v16 = vpop.f32.mrb[3].mxu0 }
 0x2fd   :  { %v7687_v18 = vpack.c.bf16 %v2932_v50, %v2931_v55  ;;  %v7700_v50 = vld [vmem:[%s8347_s2] ss:$0 sm:$0xff] }
 0x2ff   :  { %3795 = vmatprep.mubr.bf16.mxu1 %v7687_v18 }
 0x300   :  { %3796 = vmatmul.mubr.bf16.gmra.mrb[108].mxu1 %v7611_v2 }
 0x301   :  { %v2169_v5 = vpop.f32.mrb[4].mxu0 }
 0x302   :  { %v2171_v20 = vpop.f32.mrb[5].mxu0 }
 0x303   :  { %v2173_v24 = vpop.f32.mrb[6].mxu0 }
 0x304   :  { %v2175_v25 = vpop.f32.mrb[7].mxu0 }
 0x309   :  { %v2179_v52 = vpop.f32.mrb[8].mxu0 }
 0x30a   :  { %v2181_v37 = vpop.f32.mrb[9].mxu0 }
 0x30b   :  { %v2183_v13 = vpop.f32.mrb[10].mxu0 }
 0x30c   :  { %v2185_v60 = vpop.f32.mrb[11].mxu0 }
 0x311   :  { %v2189_v39 = vpop.f32.mrb[12].mxu0 }
 0x312   :  { %v2191_v9 = vpop.f32.mrb[13].mxu0 }
 0x313   :  { %v7691_v29 = vpop.f32.mrb[14].mxu0 }
 0x314   :  { %v2195_v32 = vpop.f32.mrb[15].mxu0 }
 0x319   :  { %v2199_v57 = vpop.f32.mrb[16].mxu0 }
 0x31a   :  { %v2606_v1 = vmax.f32 %v2159_v47, %v2199_v57  ;;  %v2201_v21 = vpop.f32.mrb[17].mxu0 }
 0x31b   :  { %v2607_v30 = vmax.f32 %v2161_v35, %v2201_v21  ;;  %v2203_v36 = vpop.f32.mrb[18].mxu0 }
 0x31c   :  { %v2608_v11 = vmax.f32 %v2163_v56, %v2203_v36  ;;  %v2205_v22 = vpop.f32.mrb[19].mxu0 }
 0x31d   :  { %v2734_v59 = vmax.f32 %v2606_v1, %v2607_v30  ;;  %v2609_v42 = vmax.f32 %v2165_v16, %v2205_v22 }
 0x31f   :  { %v2837_v23 = vadd.f32 %v7304_v15, %v2734_v59  ;;  %v2735_v33 = vmax.f32 %v2608_v11, %v2609_v42 }
 0x321   :  { %v2838_v7 = vadd.f32 %v7304_v15, %v2735_v33  ;;  %v2209_v17 = vpop.f32.mrb[20].mxu0  ;;  %v2933_v46 = vmax.f32 %v2837_v23, 0.0 }
 0x322   :  { %v2610_v19 = vmax.f32 %v2169_v5, %v2209_v17  ;;  %v2211_v31 = vpop.f32.mrb[21].mxu0 }
 0x323   :  { %v2934_v49 = vmax.f32 %v2838_v7, 0.0  ;;  %v2611_v26 = vmax.f32 %v2171_v20, %v2211_v31  ;;  %v2213_v61 = vpop.f32.mrb[22].mxu0 }
 0x324   :  { %v2612_v53 = vmax.f32 %v2173_v24, %v2213_v61  ;;  %v2215_v12 = vpop.f32.mrb[23].mxu0 }
 0x325   :  { %v7695_v47 = vpack.c.bf16 %v2934_v49, %v2933_v46  ;;  %v2736_v35 = vmax.f32 %v2610_v19, %v2611_v26  ;;  %v2613_v55 = vmax.f32 %v2175_v25, %v2215_v12 }
 0x327   :  { %v2839_v15 = vadd.f32 %v7700_v50, %v2736_v35  ;;  %v2737_v56 = vmax.f32 %v2612_v53, %v2613_v55  ;;  %3805 = vmatprep.mubr.bf16.mxu1 %v7695_v47 }
 0x328   :  { %3806 = vmatmul.mubr.bf16.gmra.mrb[112].mxu1 %v7665_v63 }
 0x329   :  { %v2840_v16 = vadd.f32 %v7700_v50, %v2737_v56  ;;  %v2219_v5 = vpop.f32.mrb[24].mxu0  ;;  %v2935_v57 = vmax.f32 %v2839_v15, 0.0 }
 0x32a   :  { %v2614_v20 = vmax.f32 %v2179_v52, %v2219_v5  ;;  %v2221_v24 = vpop.f32.mrb[25].mxu0  ;;  %v6318_v5 = vld [vmem:[%s8348_s5 + $0x50] sm:$0xff]  }
 0x32b   :  { %v2936_v1 = vmax.f32 %v2840_v16, 0.0  ;;  %v2615_v25 = vmax.f32 %v2181_v37, %v2221_v24  ;;  %v2223_v21 = vpop.f32.mrb[26].mxu0  ;;  %5566 = vmatprep.subr.bf16.mxu0 %v6318_v5 }
 0x32c   :  { %v2616_v30 = vmax.f32 %v2183_v13, %v2223_v21  ;;  %v2225_v36 = vpop.f32.mrb[27].mxu0  ;;  %v6311_v21 = vld [vmem:[%s8346_s3 + $0x214] ss:$8 sps:$4 sm:$0xff]  }
 0x32d   :  { %v7706_v11 = vpack.c.bf16 %v2936_v1, %v2935_v57  ;;  %v2738_v22 = vmax.f32 %v2614_v20, %v2615_v25  ;;  %v2617_v59 = vmax.f32 %v2185_v60, %v2225_v36  ;;  %v6319_v20 = vld [vmem:[%s8348_s5 + $0x10] sm:$0xff]   ;;  %v6304_v25 = vld [vmem:[%s8346_s3 + $0x200] ss:$8 sps:$4 sm:$0xff]  }
 0x32e   :  { %5567 = vmatpush3.bf16.msra.mxu0 %v6319_v20 }
 0x32f   :  { %v2841_v42 = vadd.f32 %v7700_v50, %v2738_v22  ;;  %v2739_v23 = vmax.f32 %v2616_v30, %v2617_v59  ;;  %3815 = vmatprep.mubr.bf16.mxu1 %v7706_v11  ;;  %v6309_v30 = vld [vmem:[%s8346_s3 + $0x210] ss:$8 sps:$4 sm:$0xff]   ;;  %v6314_v22 = vld [vmem:[%s8346_s3 + $0x224] ss:$8 sps:$4 sm:$0xff]  }
 0x330   :  { %3816 = vmatmul.mubr.bf16.gmra.mrb[116].mxu1 %v7671_v40 }
 0x331   :  { %v2842_v52 = vadd.f32 %v7700_v50, %v2739_v23  ;;  %v2229_v33 = vpop.f32.mrb[28].mxu0  ;;  %v2937_v37 = vmax.f32 %v2841_v42, 0.0 }
 0x332   :  { %v2618_v7 = vmax.f32 %v2189_v39, %v2229_v33  ;;  %v2231_v17 = vpop.f32.mrb[29].mxu0  ;;  %v6315_v33 = vld [vmem:[%s8346_s3 + $0x230] ss:$8 sps:$4 sm:$0xff]  }
 0x333   :  { %v2938_v19 = vmax.f32 %v2842_v52, 0.0  ;;  %v2619_v13 = vmax.f32 %v2191_v9, %v2231_v17  ;;  %v2233_v31 = vpop.f32.mrb[30].mxu0  ;;  %v6317_v52 = vld [vmem:[%s8346_s3 + $0x234] ss:$8 sps:$4 sm:$0xff]  }
 0x334   :  { %v2620_v46 = vmax.f32 %v7691_v29, %v2233_v31  ;;  %v2235_v49 = vpop.f32.mrb[31].mxu0 }
 0x335   :  { %v7713_v60 = vpack.c.bf16 %v2938_v19, %v2937_v37  ;;  %v2740_v26 = vmax.f32 %v2618_v7, %v2619_v13  ;;  %v2621_v61 = vmax.f32 %v2195_v32, %v2235_v49  ;;  %v6322_v37 = vld [vmem:[%s8346_s3 + $0x244] ss:$8 sps:$4 sm:$0xff]  }
 0x337   :  { %v2843_v53 = vadd.f32 %v7700_v50, %v2740_v26  ;;  %v2741_v12 = vmax.f32 %v2620_v46, %v2621_v61  ;;  %3825 = vmatprep.mubr.bf16.mxu1 %v7713_v60 }
 0x338   :  { %3826 = vmatmul.mubr.bf16.gmra.mrb[120].mxu1 %v7680_v4 }
 0x339   :  { %v2844_v39 = vadd.f32 %v7700_v50, %v2741_v12  ;;  %v2239_v35 = vpop.f32.mrb[32].mxu0  ;;  %v2939_v9 = vmax.f32 %v2843_v53, 0.0 }
 0x33a   :  { %v2241_v55 = vpop.f32.mrb[33].mxu0 }
 0x33b   :  { %v2940_v15 = vmax.f32 %v2844_v39, 0.0  ;;  %v2243_v56 = vpop.f32.mrb[34].mxu0 }
 0x33c   :  { %v2245_v29 = vpop.f32.mrb[35].mxu0 }
 0x33d   :  { %v7719_v16 = vpack.c.bf16 %v2940_v15, %v2939_v9 }
 0x33f   :  { %3835 = vmatprep.mubr.bf16.mxu1 %v7719_v16 }
 0x340   :  { %3836 = vmatmul.mubr.bf16.gmra.mrb[124].mxu1 %v7687_v18 }
 0x341   :  { %3878 = vmatprep.mubr.bf16.mxu1 %v7148_v58  ;;  %v7724_v32 = vpop.f32.mrb[36].mxu0 }
 0x342   :  { %v7732_v24 = vpop.f32.mrb[37].mxu0 }
 0x343   :  { %v7734_v57 = vpop.f32.mrb[38].mxu0 }
 0x344   :  { %v7736_v1 = vpop.f32.mrb[39].mxu0 }
 0x348   :  { %3879 = vmatmul.mubr.bf16.vlgmr.msra.gmra.mrb[0].mxu1 %v7032_v34  ;;  %v6312_v34 = vld [vmem:[%s8346_s3 + $0x220] ss:$8 sps:$4 sm:$0xff]  }
 0x349   :  { %4200 = vmatpush1.bf16.msra.mxu1 %v6304_v25  ;;  %3888 = vmatprep.mubr.bf16.mxu1 %v7165_v45  ;;  %v7749_v36 = vpop.f32.mrb[40].mxu0 }
 0x34a   :  { %4201 = vmatprep.subr.bf16.mxu1 %v6311_v21  ;;  %v7754_v59 = vpop.f32.mrb[41].mxu0 }
 0x34b   :  { %v7756_v42 = vpop.f32.mrb[42].mxu0 }
 0x34c   :  { %v7758_v23 = vpop.f32.mrb[43].mxu0 }
 0x34d   :  { %4202 = vmatpush1.bf16.msra.mxu1 %v6309_v30 }
 0x34e   :  { %4203 = vmatprep.subr.bf16.mxu1 %v6314_v22 }
 0x350   :  { %3889 = vmatmul.mubr.bf16.gmra.mrb[4].mxu1 %v7049_v48  ;;  %v6320_v48 = vld [vmem:[%s8346_s3 + $0x240] ss:$8 sps:$4 sm:$0xff]  }
 0x351   :  { %3898 = vmatprep.mubr.bf16.mxu1 %v7188_v44  ;;  %4204 = vmatpush1.bf16.msra.mxu1 %v6312_v34  ;;  %v7771_v7 = vpop.f32.mrb[44].mxu0 }
 0x352   :  { %4205 = vmatprep.subr.bf16.mxu1 %v6317_v52  ;;  %v7773_v17 = vpop.f32.mrb[45].mxu0 }
 0x353   :  { %v7778_v19 = vpop.f32.mrb[46].mxu0 }
 0x354   :  { %v7780_v13 = vpop.f32.mrb[47].mxu0 }
 0x355   :  { %4206 = vmatpush1.bf16.msra.mxu1 %v6315_v33 }
 0x356   :  { %4207 = vmatprep.subr.bf16.mxu1 %v6322_v37 }
 0x358   :  { %3899 = vmatmul.mubr.bf16.gmra.mrb[8].mxu1 %v7066_v6 }
 0x359   :  { %3908 = vmatprep.mubr.bf16.mxu1 %v7201_v54  ;;  %v2279_v31 = vpop.f32.mrb[48].mxu0  ;;  %4208 = vmatpush1.bf16.msra.mxu1 %v6320_v48 }
 0x35a   :  { %v2622_v46 = vmax.f32 %v2239_v35, %v2279_v31  ;;  %v2281_v49 = vpop.f32.mrb[49].mxu0  ;;  %v6323_v35 = vld [vmem:[%s8346_s3 + $0x250] ss:$8 sps:$4 sm:$0xff]  }
 0x35b   :  { %v2623_v26 = vmax.f32 %v2241_v55, %v2281_v49  ;;  %v2283_v61 = vpop.f32.mrb[50].mxu0  ;;  %v6325_v55 = vld [vmem:[%s8346_s3 + $0x254] ss:$8 sps:$4 sm:$0xff]  }
 0x35c   :  { %v2624_v53 = vmax.f32 %v2243_v56, %v2283_v61  ;;  %v2285_v12 = vpop.f32.mrb[51].mxu0  ;;  %4209 = vmatprep.subr.bf16.mxu1 %v6325_v55 }
 0x35d   :  { %v2742_v39 = vmax.f32 %v2622_v46, %v2623_v26  ;;  %v2625_v9 = vmax.f32 %v2245_v29, %v2285_v12  ;;  %4210 = vmatpush1.bf16.msra.mxu1 %v6323_v35 }
 0x35f   :  { %v2845_v15 = vadd.f32 %v7700_v50, %v2742_v39  ;;  %v2743_v5 = vmax.f32 %v2624_v53, %v2625_v9 }
 0x360   :  { %3909 = vmatmul.mubr.bf16.gmra.mrb[12].mxu1 %v7079_v14 }
 0x361   :  { %3918 = vmatprep.mubr.bf16.mxu1 %v7276_v27  ;;  %v2941_v6 = vmax.f32 %v2845_v15, 0.0  ;;  %v2846_v20 = vadd.f32 %v7700_v50, %v2743_v5  ;;  %v2289_v25 = vpop.f32.mrb[52].mxu0 }
 0x362   :  { %v2626_v56 = vmax.f32 %v7724_v32, %v2289_v25  ;;  %v2291_v29 = vpop.f32.mrb[53].mxu0 }
 0x363   :  { %v2942_v21 = vmax.f32 %v2846_v20, 0.0  ;;  %v2627_v14 = vmax.f32 %v7732_v24, %v2291_v29  ;;  %v2293_v30 = vpop.f32.mrb[54].mxu0 }
 0x364   :  { %v2628_v22 = vmax.f32 %v7734_v57, %v2293_v30  ;;  %v2295_v34 = vpop.f32.mrb[55].mxu0 }
 0x365   :  { %v2744_v52 = vmax.f32 %v2626_v56, %v2627_v14  ;;  %v2629_v33 = vmax.f32 %v7736_v1, %v2295_v34  ;;  %v7801_v37 = vpack.c.bf16 %v2942_v21, %v2941_v6 }
 0x367   :  { %v2847_v48 = vadd.f32 %v7700_v50, %v2744_v52  ;;  %v2745_v31 = vmax.f32 %v2628_v22, %v2629_v33 }
 0x368   :  { %3919 = vmatmul.mubr.bf16.gmra.mrb[16].mxu1 %v7148_v58 }
 0x369   :  { %3928 = vmatprep.mubr.bf16.mxu1 %v7292_v62  ;;  %v2943_v32 = vmax.f32 %v2847_v48, 0.0  ;;  %v2848_v24 = vadd.f32 %v7700_v50, %v2745_v31  ;;  %v2299_v46 = vpop.f32.mrb[56].mxu0  ;;  %v6328_v31 = vld [vmem:[%s8345_s0 + $0x584] ss:$8 sps:$4 sm:$0xff]  }
 0x36a   :  { %v2630_v57 = vmax.f32 %v7749_v36, %v2299_v46  ;;  %v2301_v49 = vpop.f32.mrb[57].mxu0  ;;  %5439 = vmatprep.mubr.msk.bf16.mxu0 %vm1189_vm0, %v6328_v31 }
 0x36b   :  { %v2944_v26 = vmax.f32 %v2848_v24, 0.0  ;;  %v2631_v61 = vmax.f32 %v7754_v59, %v2301_v49  ;;  %v2303_v1 = vpop.f32.mrb[58].mxu0  ;;  %v6329_v24 = vld [vmem:[%s8346_s3 + $0x260] ss:$8 sps:$4 sm:$0xff]  }
 0x36c   :  { %v2632_v53 = vmax.f32 %v7756_v42, %v2303_v1  ;;  %v2305_v12 = vpop.f32.mrb[59].mxu0 }
 0x36d   :  { %v2746_v39 = vmax.f32 %v2630_v57, %v2631_v61  ;;  %v2633_v9 = vmax.f32 %v7758_v23, %v2305_v12  ;;  %v7811_v58 = vpack.c.bf16 %v2944_v26, %v2943_v32  ;;  %v6332_v26 = vld [vmem:[%s8345_s0 + $0x590] ss:$8 sps:$4 sm:$0xff]   ;;  %v6334_v61 = vld [vmem:[%s8345_s0 + $0x594] ss:$8 sps:$4 sm:$0xff]  }
 0x36f   :  { %v2849_v15 = vadd.f32 %v7700_v50, %v2746_v39  ;;  %v2747_v5 = vmax.f32 %v2632_v53, %v2633_v9  ;;  %v6335_v9 = vld [vmem:[%s8345_s0 + $0x5a0] ss:$8 sps:$4 sm:$0xff]  }
 0x370   :  { %3929 = vmatmul.mubr.bf16.gmra.mrb[20].mxu1 %v7165_v45 }
 0x371   :  { %3938 = vmatprep.mubr.bf16.mxu1 %v7320_v38  ;;  %v2945_v36 = vmax.f32 %v2849_v15, 0.0  ;;  %v2850_v6 = vadd.f32 %v7700_v50, %v2747_v5  ;;  %v2309_v59 = vpop.f32.mrb[60].mxu0  ;;  %v6337_v15 = vld [vmem:[%s8345_s0 + $0x5a4] ss:$8 sps:$4 sm:$0xff]  }
 0x372   :  { %v2634_v20 = vmax.f32 %v7771_v7, %v2309_v59  ;;  %v2311_v42 = vpop.f32.mrb[61].mxu0 }
 0x373   :  { %v2946_v25 = vmax.f32 %v2850_v6, 0.0  ;;  %v2635_v35 = vmax.f32 %v7773_v17, %v2311_v42  ;;  %v2313_v23 = vpop.f32.mrb[62].mxu0  ;;  %v6340_v42 = vld [vmem:[%s8345_s0 + $0x5b4] ss:$8 sps:$4 sm:$0xff]  }
 0x374   :  { %v2636_v55 = vmax.f32 %v7778_v19, %v2313_v23  ;;  %v2315_v56 = vpop.f32.mrb[63].mxu0 }
 0x375   :  { %v2748_v29 = vmax.f32 %v2634_v20, %v2635_v35  ;;  %v2637_v21 = vmax.f32 %v7780_v13, %v2315_v56  ;;  %v7821_v45 = vpack.c.bf16 %v2946_v25, %v2945_v36  ;;  %v6338_v20 = vld [vmem:[%s8345_s0 + $0x5b0] ss:$8 sps:$4 sm:$0xff]  }
 0x377   :  { %v2851_v14 = vadd.f32 %v7700_v50, %v2748_v29  ;;  %v2749_v30 = vmax.f32 %v2636_v55, %v2637_v21 }
 0x378   :  { %3939 = vmatmul.mubr.bf16.gmra.mrb[24].mxu1 %v7188_v44  ;;  %v6326_v44 = vld [vmem:[%s8345_s0 + $0x580] ss:$8 sps:$4 sm:$0xff]  }
 0x379   :  { %3948 = vmatprep.mubr.bf16.mxu1 %v7334_v3  ;;  %v2947_v7 = vmax.f32 %v2851_v14, 0.0  ;;  %v2852_v22 = vadd.f32 %v7700_v50, %v2749_v30  ;;  %v2319_v17 = vpop.f32.mrb[64].mxu0  ;;  %2398 = vmatmul.mubr.bf16.gmra.mrb[96].mxu0 %v6326_v44 }
 0x37a   :  { %v2321_v34 = vpop.f32.mrb[65].mxu0  ;;  %5440 = vmatprep.mubr.msk.bf16.mxu0 %vm1189_vm0, %v6334_v61 }
 0x37b   :  { %v2948_v52 = vmax.f32 %v2852_v22, 0.0  ;;  %v2323_v19 = vpop.f32.mrb[66].mxu0 }
 0x37c   :  { %v2325_v33 = vpop.f32.mrb[67].mxu0 }
 0x37d   :  { %v7827_v48 = vpack.c.bf16 %v2948_v52, %v2947_v7 }
 0x380   :  { %3949 = vmatmul.mubr.bf16.gmra.mrb[28].mxu1 %v7201_v54  ;;  %v6331_v54 = vld [vmem:[%s8346_s3 + $0x264] ss:$8 sps:$4 sm:$0xff]  }
 0x381   :  { %3958 = vmatprep.mubr.bf16.mxu1 %v7409_v0  ;;  %v7831_v13 = vpop.f32.mrb[68].mxu0  ;;  %4211 = vmatprep.subr.bf16.mxu1 %v6331_v54  ;;  %v6346_v54 = vld [vmem:[%s8346_s3 + $0x270] ss:$8 sps:$4 sm:$0xff]  }
 0x382   :  { %v7839_v32 = vpop.f32.mrb[69].mxu0  ;;  %4212 = vmatpush1.bf16.msra.mxu1 %v6329_v24  ;;  %2408 = vmatmul.mubr.bf16.gmra.mrb[100].mxu0 %v6332_v26  ;;  %v6345_v24 = vld [vmem:[%s8345_s0 + $0x5c4] ss:$8 sps:$4 sm:$0xff]  }
 0x383   :  { %v7847_v46 = vpop.f32.mrb[70].mxu0  ;;  %5441 = vmatprep.mubr.msk.bf16.mxu0 %vm1189_vm0, %v6337_v15  ;;  %v6348_v15 = vld [vmem:[%s8346_s3 + $0x274] ss:$8 sps:$4 sm:$0xff]  }
 0x384   :  { %v7850_v57 = vpop.f32.mrb[71].mxu0  ;;  %4213 = vmatprep.subr.bf16.mxu1 %v6348_v15 }
 0x386   :  { %4214 = vmatpush1.bf16.msra.mxu1 %v6346_v54 }
 0x388   :  { %3959 = vmatmul.mubr.bf16.gmra.mrb[32].mxu1 %v7276_v27 }
 0x389   :  { %3968 = vmatprep.mubr.bf16.mxu1 %v7425_v8  ;;  %v7854_v49 = vpop.f32.mrb[72].mxu0 }
 0x38a   :  { %v7862_v1 = vpop.f32.mrb[73].mxu0  ;;  %2418 = vmatmul.mubr.bf16.gmra.mrb[104].mxu0 %v6335_v9 }
 0x38b   :  { %v7864_v53 = vpop.f32.mrb[74].mxu0  ;;  %5442 = vmatprep.mubr.msk.bf16.mxu0 %vm1189_vm0, %v6340_v42 }
 0x38c   :  { %v7867_v12 = vpop.f32.mrb[75].mxu0 }
 0x390   :  { %3969 = vmatmul.mubr.bf16.gmra.mrb[36].mxu1 %v7292_v62 }
 0x391   :  { %3978 = vmatprep.mubr.bf16.mxu1 %v7448_v10  ;;  %v7871_v39 = vpop.f32.mrb[76].mxu0 }
 0x392   :  { %v7879_v5 = vpop.f32.mrb[77].mxu0  ;;  %2428 = vmatmul.mubr.bf16.gmra.mrb[108].mxu0 %v6338_v20 }
 0x393   :  { %v7881_v36 = vpop.f32.mrb[78].mxu0  ;;  %5443 = vmatprep.mubr.msk.bf16.mxu0 %vm1189_vm0, %v6345_v24 }
 0x394   :  { %v7884_v6 = vpop.f32.mrb[79].mxu0 }
 0x398   :  { %3979 = vmatmul.mubr.bf16.gmra.mrb[40].mxu1 %v7320_v38 }
 0x399   :  { %3988 = vmatprep.mubr.bf16.mxu1 %v7468_v43  ;;  %v2359_v59 = vpop.f32.mrb[80].mxu0 }
 0x39a   :  { %v2638_v25 = vmax.f32 %v2319_v17, %v2359_v59  ;;  %v2361_v35 = vpop.f32.mrb[81].mxu0 }
 0x39b   :  { %v2639_v23 = vmax.f32 %v2321_v34, %v2361_v35  ;;  %v2363_v55 = vpop.f32.mrb[82].mxu0  ;;  %v6341_v34 = vld [vmem:[%s8348_s5 + $0x58] sm:$0xff]  }
 0x39c   :  { %v2640_v56 = vmax.f32 %v2323_v19, %v2363_v55  ;;  %v2365_v29 = vpop.f32.mrb[83].mxu0  ;;  %v6342_v19 = vld [vmem:[%s8348_s5 + $0x18] sm:$0xff]   ;;  %5568 = vmatprep.subr.bf16.mxu0 %v6341_v34 }
 0x39d   :  { %v2750_v21 = vmax.f32 %v2638_v25, %v2639_v23  ;;  %v2641_v14 = vmax.f32 %v2325_v33, %v2365_v29  ;;  %v6343_v33 = vld [vmem:[%s8345_s0 + $0x5c0] ss:$8 sps:$4 sm:$0xff]   ;;  %5569 = vmatpush3.bf16.msra.mxu0 %v6342_v19 }
 0x39e   :  { %2438 = vmatmul.mubr.bf16.gmra.mrb[112].mxu0 %v6343_v33 }
 0x39f   :  { %v2853_v30 = vadd.f32 %v7700_v50, %v2750_v21  ;;  %v2751_v7 = vmax.f32 %v2640_v56, %v2641_v14  ;;  %v6351_v56 = vld [vmem:[%s8345_s0 + $0x5d4] ss:$8 sps:$4 sm:$0xff]  }
 0x3a0   :  { %3989 = vmatmul.mubr.bf16.gmra.mrb[44].mxu1 %v7334_v3  ;;  %5444 = vmatprep.mubr.msk.bf16.mxu0 %vm1189_vm0, %v6351_v56  ;;  %v6384_v56 = vmov 0  }
 0x3a1   :  { %3998 = vmatprep.mubr.bf16.mxu1 %v7558_v51  ;;  %v2949_v22 = vmax.f32 %v2853_v30, 0.0  ;;  %v2854_v17 = vadd.f32 %v7700_v50, %v2751_v7  ;;  %v2369_v52 = vpop.f32.mrb[84].mxu0 }
 0x3a2   :  { %v2642_v44 = vmax.f32 %v7831_v13, %v2369_v52  ;;  %v2371_v31 = vpop.f32.mrb[85].mxu0 }
 0x3a3   :  { %v2950_v26 = vmax.f32 %v2854_v17, 0.0  ;;  %v2643_v61 = vmax.f32 %v7839_v32, %v2371_v31  ;;  %v2373_v9 = vpop.f32.mrb[86].mxu0 }
 0x3a4   :  { %v2644_v13 = vmax.f32 %v7847_v46, %v2373_v9  ;;  %v2375_v59 = vpop.f32.mrb[87].mxu0 }
 0x3a5   :  { %v2752_v20 = vmax.f32 %v2642_v44, %v2643_v61  ;;  %v2645_v42 = vmax.f32 %v7850_v57, %v2375_v59  ;;  %v7922_v25 = vpack.c.bf16 %v2950_v26, %v2949_v22  ;;  %v6349_v57 = vld [vmem:[%s8345_s0 + $0x5d0] ss:$8 sps:$4 sm:$0xff]  }
 0x3a6   :  { %2448 = vmatmul.mubr.bf16.gmra.mrb[116].mxu0 %v6349_v57  ;;  %v6359_v57 = vld [vmem:[%s8348_s5 + $0x20] sm:$0xff]  }
 0x3a7   :  { %v2855_v32 = vadd.f32 %v7700_v50, %v2752_v20  ;;  %v2753_v35 = vmax.f32 %v2644_v13, %v2645_v42 }
 0x3a8   :  { %3999 = vmatmul.mubr.bf16.gmra.mrb[48].mxu1 %v7409_v0 }
 0x3a9   :  { %4008 = vmatprep.mubr.bf16.mxu1 %v7574_v28  ;;  %v2951_v46 = vmax.f32 %v2855_v32, 0.0  ;;  %v2856_v23 = vadd.f32 %v7700_v50, %v2753_v35  ;;  %v2379_v55 = vpop.f32.mrb[88].mxu0 }
 0x3aa   :  { %v2646_v29 = vmax.f32 %v7854_v49, %v2379_v55  ;;  %v2381_v21 = vpop.f32.mrb[89].mxu0  ;;  %v6358_v55 = vld [vmem:[%s8348_s5 + $0x60] sm:$0xff]  }
 0x3ab   :  { %v2952_v14 = vmax.f32 %v2856_v23, 0.0  ;;  %v2647_v30 = vmax.f32 %v7862_v1, %v2381_v21  ;;  %v2383_v7 = vpop.f32.mrb[90].mxu0  ;;  %5570 = vmatprep.subr.bf16.mxu0 %v6358_v55 }
 0x3ac   :  { %v2648_v22 = vmax.f32 %v7864_v53, %v2383_v7  ;;  %v2385_v17 = vpop.f32.mrb[91].mxu0  ;;  %v6352_v53 = vld [vmem:[%s8345_s0 + $0x5e0] ss:$8 sps:$4 sm:$0xff]   ;;  %5571 = vmatpush3.bf16.msra.mxu0 %v6359_v57 }
 0x3ad   :  { %v2754_v52 = vmax.f32 %v2646_v29, %v2647_v30  ;;  %v2649_v34 = vmax.f32 %v7867_v12, %v2385_v17  ;;  %v7939_v19 = vpack.c.bf16 %v2952_v14, %v2951_v46  ;;  %v6354_v12 = vld [vmem:[%s8345_s0 + $0x5e4] ss:$8 sps:$4 sm:$0xff]  }
 0x3ae   :  { %5445 = vmatprep.mubr.msk.bf16.mxu0 %vm1189_vm0, %v6354_v12  ;;  %v6360_v29 = vld [vmem:[%s8348_s5 + $0x68] sm:$0xff]  }
 0x3af   :  { %v2857_v33 = vadd.f32 %v7700_v50, %v2754_v52  ;;  %v2755_v44 = vmax.f32 %v2648_v22, %v2649_v34  ;;  %2458 = vmatmul.mubr.bf16.gmra.mrb[120].mxu0 %v6352_v53  ;;  %5572 = vmatprep.subr.bf16.mxu0 %v6360_v29 }
 0x3b0   :  { %4009 = vmatmul.mubr.bf16.gmra.mrb[52].mxu1 %v7425_v8 }
 0x3b1   :  { %4018 = vmatprep.mubr.bf16.mxu1 %v7597_v41  ;;  %v2953_v49 = vmax.f32 %v2857_v33, 0.0  ;;  %v2858_v1 = vadd.f32 %v7700_v50, %v2755_v44  ;;  %v2389_v31 = vpop.f32.mrb[92].mxu0 }
 0x3b2   :  { %v2650_v24 = vmax.f32 %v7871_v39, %v2389_v31  ;;  %v2391_v54 = vpop.f32.mrb[93].mxu0 }
 0x3b3   :  { %v2954_v26 = vmax.f32 %v2858_v1, 0.0  ;;  %v2651_v61 = vmax.f32 %v7879_v5, %v2391_v54  ;;  %v2393_v9 = vpop.f32.mrb[94].mxu0 }
 0x3b4   :  { %v2652_v15 = vmax.f32 %v7881_v36, %v2393_v9  ;;  %v2395_v13 = vpop.f32.mrb[95].mxu0  ;;  %v6355_v36 = vld [vmem:[%s8345_s0 + $0x5f0] ss:$8 sps:$4 sm:$0xff]  }
 0x3b5   :  { %v2756_v59 = vmax.f32 %v2650_v24, %v2651_v61  ;;  %v2653_v20 = vmax.f32 %v7884_v6, %v2395_v13  ;;  %v7956_v42 = vpack.c.bf16 %v2954_v26, %v2953_v49  ;;  %v6357_v6 = vld [vmem:[%s8345_s0 + $0x5f4] ss:$8 sps:$4 sm:$0xff]  }
 0x3b6   :  { %5446 = vmatprep.mubr.msk.bf16.mxu0 %vm1189_vm0, %v6357_v6 }
 0x3b7   :  { %v2859_v32 = vadd.f32 %v7700_v50, %v2756_v59  ;;  %v2757_v35 = vmax.f32 %v2652_v15, %v2653_v20  ;;  %2468 = vmatmul.mubr.bf16.gmra.mrb[124].mxu0 %v6355_v36 }
 0x3b8   :  { %4019 = vmatmul.mubr.bf16.gmra.mrb[56].mxu1 %v7448_v10 }
 0x3b9   :  { %4028 = vmatprep.mubr.bf16.mxu1 %v7611_v2  ;;  %v2955_v39 = vmax.f32 %v2859_v32, 0.0  ;;  %v2860_v5 = vadd.f32 %v7700_v50, %v2757_v35 }
 0x3bb   :  { %v2956_v46 = vmax.f32 %v2860_v5, 0.0 }
 0x3bd   :  { %v7969_v23 = vpack.c.bf16 %v2956_v46, %v2955_v39 }
 0x3c0   :  { %4029 = vmatmul.mubr.bf16.gmra.mrb[60].mxu1 %v7468_v43 }
 0x3c1   :  { %4038 = vmatprep.mubr.bf16.mxu1 %v7665_v63 }
 0x3c8   :  { %4039 = vmatmul.mubr.bf16.gmra.mrb[64].mxu1 %v7558_v51 }
 0x3c9   :  { %4048 = vmatprep.mubr.bf16.mxu1 %v7671_v40 }
 0x3d0   :  { %4049 = vmatmul.mubr.bf16.gmra.mrb[68].mxu1 %v7574_v28 }
 0x3d1   :  { %4058 = vmatprep.mubr.bf16.mxu1 %v7680_v4 }
 0x3d8   :  { %4059 = vmatmul.mubr.bf16.gmra.mrb[72].mxu1 %v7597_v41 }
 0x3d9   :  { %4068 = vmatprep.mubr.bf16.mxu1 %v7687_v18 }
 0x3e0   :  { %4069 = vmatmul.mubr.bf16.gmra.mrb[76].mxu1 %v7611_v2 }
 0x3e1   :  { %4078 = vmatprep.mubr.bf16.mxu1 %v7695_v47 }
 0x3e8   :  { %4079 = vmatmul.mubr.bf16.gmra.mrb[80].mxu1 %v7665_v63 }
 0x3e9   :  { %4088 = vmatprep.mubr.bf16.mxu1 %v7706_v11 }
 0x3f0   :  { %4089 = vmatmul.mubr.bf16.gmra.mrb[84].mxu1 %v7671_v40 }
 0x3f1   :  { %4098 = vmatprep.mubr.bf16.mxu1 %v7713_v60 }
 0x3f8   :  { %4099 = vmatmul.mubr.bf16.gmra.mrb[88].mxu1 %v7680_v4 }
 0x3f9   :  { %4108 = vmatprep.mubr.bf16.mxu1 %v7719_v16 }
 0x400   :  { %4109 = vmatmul.mubr.bf16.gmra.mrb[92].mxu1 %v7687_v18 }
 0x401   :  { %4118 = vmatprep.mubr.bf16.mxu1 %v7801_v37 }
 0x408   :  { %4119 = vmatmul.mubr.bf16.gmra.mrb[96].mxu1 %v7695_v47 }
 0x409   :  { %4128 = vmatprep.mubr.bf16.mxu1 %v7811_v58 }
 0x410   :  { %4129 = vmatmul.mubr.bf16.gmra.mrb[100].mxu1 %v7706_v11 }
 0x411   :  { %4138 = vmatprep.mubr.bf16.mxu1 %v7821_v45 }
 0x418   :  { %4139 = vmatmul.mubr.bf16.gmra.mrb[104].mxu1 %v7713_v60 }
 0x419   :  { %4148 = vmatprep.mubr.bf16.mxu1 %v7827_v48 }
 0x420   :  { %4149 = vmatmul.mubr.bf16.gmra.mrb[108].mxu1 %v7719_v16 }
 0x421   :  { %4158 = vmatprep.mubr.bf16.mxu1 %v7922_v25 }
 0x428   :  { %4159 = vmatmul.mubr.bf16.gmra.mrb[112].mxu1 %v7801_v37 }
 0x429   :  { %4168 = vmatprep.mubr.bf16.mxu1 %v7939_v19 }
 0x430   :  { %4169 = vmatmul.mubr.bf16.gmra.mrb[116].mxu1 %v7811_v58 }
 0x431   :  { %4178 = vmatprep.mubr.bf16.mxu1 %v7956_v42 }
 0x438   :  { %4179 = vmatmul.mubr.bf16.gmra.mrb[120].mxu1 %v7821_v45 }
 0x439   :  { %4188 = vmatprep.mubr.bf16.mxu1 %v7969_v23 }
 0x440   :  { %4189 = vmatmul.mubr.bf16.gmra.mrb[124].mxu1 %v7827_v48 }
 0x441   :  { %4231 = vmatprep.mubr.bf16.mxu1 %v6384_v56 }
 0x448   :  { %4232 = vmatmul.mubr.bf16.vlgmr.msra.gmra.mrb[0].mxu1 %v7276_v27  ;;  %v6361_v27 = vld [vmem:[%s8348_s5 + $0x28] sm:$0xff]  }
 0x449   :  { %4241 = vmatprep.mubr.bf16.mxu1 %v6384_v56  ;;  %5573 = vmatpush3.bf16.msra.mxu0 %v6361_v27 }
 0x44c   :  { %v2399_v21 = vpop.f32.mrb[96].mxu0 }
 0x450   :  { %4242 = vmatmul.mubr.bf16.gmra.mrb[4].mxu1 %v7292_v62  ;;  %v2401_v62 = vpop.f32.mrb[97].mxu0 }
 0x451   :  { %4251 = vmatprep.mubr.bf16.mxu1 %v6384_v56 }
 0x458   :  { %4252 = vmatmul.mubr.bf16.gmra.mrb[8].mxu1 %v7320_v38  ;;  %v2403_v38 = vpop.f32.mrb[98].mxu0 }
 0x459   :  { %4261 = vmatprep.mubr.bf16.mxu1 %v6384_v56 }
 0x460   :  { %4262 = vmatmul.mubr.bf16.gmra.mrb[12].mxu1 %v7334_v3  ;;  %v2405_v3 = vpop.f32.mrb[99].mxu0 }
 0x461   :  { %4271 = vmatprep.mubr.bf16.mxu1 %v6384_v56  ;;  %v2409_v14 = vpop.f32.mrb[100].mxu0 }
 0x462   :  { %v2411_v30 = vpop.f32.mrb[101].mxu0 }
 0x463   :  { %v2413_v7 = vpop.f32.mrb[102].mxu0 }
 0x464   :  { %v2415_v22 = vpop.f32.mrb[103].mxu0 }
 0x465   :  { %v2419_v17 = vpop.f32.mrb[104].mxu0 }
 0x466   :  { %v2421_v52 = vpop.f32.mrb[105].mxu0 }
 0x467   :  { %v2423_v34 = vpop.f32.mrb[106].mxu0 }
 0x468   :  { %4272 = vmatmul.mubr.bf16.gmra.mrb[16].mxu1 %v7409_v0  ;;  %v2425_v33 = vpop.f32.mrb[107].mxu0 }
 0x469   :  { %4281 = vmatprep.mubr.bf16.mxu1 %v6384_v56  ;;  %v8029_v44 = vpop.f32.mrb[108].mxu0 }
 0x46a   :  { %v8031_v49 = vpop.f32.mrb[109].mxu0 }
 0x46b   :  { %v8033_v0 = vpop.f32.mrb[110].mxu0 }
 0x46c   :  { %v8035_v1 = vpop.f32.mrb[111].mxu0 }
 0x470   :  { %4282 = vmatmul.mubr.bf16.gmra.mrb[20].mxu1 %v7425_v8 }
 0x471   :  { %4291 = vmatprep.mubr.bf16.mxu1 %v6384_v56  ;;  %v2439_v31 = vpop.f32.mrb[112].mxu0 }
 0x472   :  { %v2654_v53 = vmax.f32 %v2399_v21, %v2439_v31  ;;  %v2441_v12 = vpop.f32.mrb[113].mxu0 }
 0x473   :  { %v2655_v8 = vmax.f32 %v2401_v62, %v2441_v12  ;;  %v2443_v24 = vpop.f32.mrb[114].mxu0 }
 0x474   :  { %v2656_v54 = vmax.f32 %v2403_v38, %v2443_v24  ;;  %v2445_v26 = vpop.f32.mrb[115].mxu0 }
 0x475   :  { %v2758_v61 = vmax.f32 %v2654_v53, %v2655_v8  ;;  %v2657_v9 = vmax.f32 %v2405_v3, %v2445_v26 }
 0x477   :  { %v2861_v15 = vadd.f32 %v7700_v50, %v2758_v61  ;;  %v2759_v13 = vmax.f32 %v2656_v54, %v2657_v9 }
 0x478   :  { %4292 = vmatmul.mubr.bf16.gmra.mrb[24].mxu1 %v7448_v10 }
 0x479   :  { %4301 = vmatprep.mubr.bf16.mxu1 %v6384_v56  ;;  %v2957_v59 = vmax.f32 %v2861_v15, 0.0  ;;  %v2862_v20 = vadd.f32 %v7700_v50, %v2759_v13  ;;  %v2449_v10 = vpop.f32.mrb[116].mxu0 }
 0x47a   :  { %v2658_v32 = vmax.f32 %v2409_v14, %v2449_v10  ;;  %v2451_v35 = vpop.f32.mrb[117].mxu0 }
 0x47b   :  { %v2958_v39 = vmax.f32 %v2862_v20, 0.0  ;;  %v2659_v5 = vmax.f32 %v2411_v30, %v2451_v35  ;;  %v2453_v36 = vpop.f32.mrb[118].mxu0 }
 0x47c   :  { %v2660_v6 = vmax.f32 %v2413_v7, %v2453_v36  ;;  %v2455_v46 = vpop.f32.mrb[119].mxu0 }
 0x47d   :  { %v2760_v55 = vmax.f32 %v2658_v32, %v2659_v5  ;;  %v2661_v57 = vmax.f32 %v2415_v22, %v2455_v46  ;;  %v8043_v29 = vpack.c.bf16 %v2958_v39, %v2957_v59 }
 0x47f   :  { %v2863_v27 = vadd.f32 %v7700_v50, %v2760_v55 }
 0x480   :  { %4302 = vmatmul.mubr.bf16.gmra.mrb[28].mxu1 %v7468_v43  ;;  %v2761_v43 = vmax.f32 %v2660_v6, %v2661_v57 }
 0x481   :  { %4311 = vmatprep.mubr.bf16.mxu1 %v6384_v56  ;;  %v2959_v21 = vmax.f32 %v2863_v27, 0.0 }
 0x482   :  { %v2864_v62 = vadd.f32 %v7700_v50, %v2761_v43  ;;  %v2459_v38 = vpop.f32.mrb[120].mxu0  ;;  %v8179_v43 = vld [vmem:[%s8348_s5 + $0xe8] sm:$0xff]  }
 0x483   :  { %v2662_v3 = vmax.f32 %v2419_v17, %v2459_v38  ;;  %v2461_v14 = vpop.f32.mrb[121].mxu0  ;;  %v8057_v17 = vld [vmem:[%s8348_s5 + $0xc0] sm:$0xff]  }
 0x484   :  { %v2960_v30 = vmax.f32 %v2864_v62, 0.0  ;;  %v2663_v7 = vmax.f32 %v2421_v52, %v2461_v14  ;;  %v2463_v31 = vpop.f32.mrb[122].mxu0  ;;  %5642 = vmatprep.subr.bf16.mxu1 %v8057_v17 }
 0x485   :  { %v2664_v53 = vmax.f32 %v2423_v34, %v2463_v31  ;;  %v2465_v22 = vpop.f32.mrb[123].mxu0 }
 0x486   :  { %v2762_v12 = vmax.f32 %v2662_v3, %v2663_v7  ;;  %v2665_v8 = vmax.f32 %v2425_v33, %v2465_v22  ;;  %v8049_v24 = vpack.c.bf16 %v2960_v30, %v2959_v21  ;;  %v8064_v33 = vld [vmem:[%s8348_s5 + $0x80] sm:$0xff]  }
 0x487   :  { %5650 = vmatpush3.bf16.msra.mxu1 %v8064_v33 }
 0x488   :  { %4312 = vmatmul.mubr.bf16.gmra.mrb[32].mxu1 %v7558_v51  ;;  %v2865_v54 = vadd.f32 %v7700_v50, %v2762_v12  ;;  %v2763_v51 = vmax.f32 %v2664_v53, %v2665_v8  ;;  %v8203_v53 = vld [vmem:[%s8349_s4] ss:$0 sm:$0xff] }
 0x489   :  { %4321 = vmatprep.mubr.bf16.mxu1 %v6384_v56 }
 0x48a   :  { %v2961_v26 = vmax.f32 %v2865_v54, 0.0  ;;  %v2866_v61 = vadd.f32 %v7700_v50, %v2763_v51  ;;  %v2469_v9 = vpop.f32.mrb[124].mxu0 }
 0x48b   :  { %v2666_v52 = vmax.f32 %v8029_v44, %v2469_v9  ;;  %v2471_v34 = vpop.f32.mrb[125].mxu0 }
 0x48c   :  { %v2667_v15 = vmax.f32 %v8031_v49, %v2471_v34  ;;  %v2473_v13 = vpop.f32.mrb[126].mxu0 }
 0x48d   :  { %v2668_v59 = vmax.f32 %v8033_v0, %v2473_v13  ;;  %v2475_v20 = vpop.f32.mrb[127].mxu0 }
 0x48e   :  { %v2764_v10 = vmax.f32 %v2666_v52, %v2667_v15  ;;  %v2669_v44 = vmax.f32 %v8035_v1, %v2475_v20 }
 0x490   :  { %4322 = vmatmul.mubr.bf16.gmra.mrb[36].mxu1 %v7574_v28  ;;  %v2962_v28 = vmax.f32 %v2866_v61, 0.0  ;;  %v2867_v35 = vadd.f32 %v7700_v50, %v2764_v10  ;;  %v2765_v39 = vmax.f32 %v2668_v59, %v2669_v44 }
 0x491   :  { %4331 = vmatprep.mubr.bf16.mxu1 %v6384_v56 }
 0x492   :  { %v8071_v32 = vpack.c.bf16 %v2962_v28, %v2961_v26  ;;  %v2963_v5 = vmax.f32 %v2867_v35, 0.0  ;;  %v2868_v49 = vadd.f32 %v7700_v50, %v2765_v39  ;;  %v8093_v50 = vld [vmem:[%s8348_s5 + $0x88] sm:$0xff]  }
 0x494   :  { %v2964_v36 = vmax.f32 %v2868_v49, 0.0 }
 0x496   :  { %v8077_v0 = vpack.c.bf16 %v2964_v36, %v2963_v5 }
 0x498   :  { %4332 = vmatmul.mubr.bf16.gmra.mrb[40].mxu1 %v7597_v41  ;;  %v8087_v41 = vld [vmem:[%s8348_s5 + $0xc8] sm:$0xff]  }
 0x499   :  { %4341 = vmatprep.mubr.bf16.mxu1 %v6384_v56  ;;  %5643 = vmatprep.subr.bf16.mxu1 %v8087_v41 }
 0x49a   :  { %5651 = vmatpush3.bf16.msra.mxu1 %v8093_v50 }
 0x4a0   :  { %4342 = vmatmul.mubr.bf16.gmra.mrb[44].mxu1 %v7611_v2  ;;  %v6366_v2 = vld [vmem:[%s8348_s5 + $0x70] sm:$0xff]  }
 0x4a1   :  { %4351 = vmatprep.mubr.bf16.mxu1 %v6384_v56  ;;  %5574 = vmatprep.subr.bf16.mxu0 %v6366_v2 }
 0x4a8   :  { %4352 = vmatmul.mubr.bf16.gmra.mrb[48].mxu1 %v7665_v63  ;;  %v6367_v63 = vld [vmem:[%s8348_s5 + $0x30] sm:$0xff]  }
 0x4a9   :  { %4361 = vmatprep.mubr.bf16.mxu1 %v6384_v56  ;;  %5575 = vmatpush3.bf16.msra.mxu0 %v6367_v63 }
 0x4b0   :  { %4362 = vmatmul.mubr.bf16.gmra.mrb[52].mxu1 %v7671_v40  ;;  %v8114_v40 = vld [vmem:[%s8348_s5 + $0xd0] sm:$0xff]  }
 0x4b1   :  { %4371 = vmatprep.mubr.bf16.mxu1 %v6384_v56  ;;  %5644 = vmatprep.subr.bf16.mxu1 %v8114_v40 }
 0x4b8   :  { %4372 = vmatmul.mubr.bf16.gmra.mrb[56].mxu1 %v7680_v4  ;;  %v8120_v4 = vld [vmem:[%s8348_s5 + $0x90] sm:$0xff]  }
 0x4b9   :  { %4381 = vmatprep.mubr.bf16.mxu1 %v6384_v56  ;;  %5652 = vmatpush3.bf16.msra.mxu1 %v8120_v4 }
 0x4c0   :  { %4382 = vmatmul.mubr.bf16.gmra.mrb[60].mxu1 %v7687_v18  ;;  %v8132_v18 = vld [vmem:[%s8348_s5 + $0xd8] sm:$0xff]  }
 0x4c1   :  { %4391 = vmatprep.mubr.bf16.mxu1 %v6384_v56  ;;  %5645 = vmatprep.subr.bf16.mxu1 %v8132_v18 }
 0x4c8   :  { %4392 = vmatmul.mubr.bf16.gmra.mrb[64].mxu1 %v7695_v47  ;;  %v8137_v47 = vld [vmem:[%s8348_s5 + $0x98] sm:$0xff]  }
 0x4c9   :  { %4401 = vmatprep.mubr.bf16.mxu1 %v6384_v56  ;;  %5653 = vmatpush3.bf16.msra.mxu1 %v8137_v47 }
 0x4d0   :  { %4402 = vmatmul.mubr.bf16.gmra.mrb[68].mxu1 %v7706_v11  ;;  %v6372_v11 = vld [vmem:[%s8348_s5 + $0x78] sm:$0xff]  }
 0x4d1   :  { %4411 = vmatprep.mubr.bf16.mxu1 %v6384_v56  ;;  %5576 = vmatprep.subr.bf16.mxu0 %v6372_v11 }
 0x4d8   :  { %4412 = vmatmul.mubr.bf16.gmra.mrb[72].mxu1 %v7713_v60  ;;  %v6373_v60 = vld [vmem:[%s8348_s5 + $0x38] sm:$0xff]  }
 0x4d9   :  { %4421 = vmatprep.mubr.bf16.mxu1 %v6384_v56  ;;  %5577 = vmatpush3.bf16.msra.mxu0 %v6373_v60 }
 0x4da   :  { %5602 = vmatprep.subr.bf16.mxu0 %v8057_v17 }
 0x4e0   :  { %4422 = vmatmul.mubr.bf16.gmra.mrb[76].mxu1 %v7719_v16  ;;  %v8161_v16 = vld [vmem:[%s8348_s5 + $0xe0] sm:$0xff]  }
 0x4e1   :  { %4431 = vmatprep.mubr.bf16.mxu1 %v6384_v56  ;;  %5646 = vmatprep.subr.bf16.mxu1 %v8161_v16 }
 0x4e8   :  { %4432 = vmatmul.mubr.bf16.gmra.mrb[80].mxu1 %v7801_v37  ;;  %v8167_v37 = vld [vmem:[%s8348_s5 + $0xa0] sm:$0xff]  }
 0x4e9   :  { %4441 = vmatprep.mubr.bf16.mxu1 %v6384_v56  ;;  %5654 = vmatpush3.bf16.msra.mxu1 %v8167_v37 }
 0x4ea   :  { %5647 = vmatprep.subr.bf16.mxu1 %v8179_v43 }
 0x4f0   :  { %4442 = vmatmul.mubr.bf16.gmra.mrb[84].mxu1 %v7811_v58 }
 0x4f1   :  { %4451 = vmatprep.mubr.bf16.mxu1 %v6384_v56 }
 0x4f8   :  { %4452 = vmatmul.mubr.bf16.gmra.mrb[88].mxu1 %v7821_v45 }
 0x4f9   :  { %4461 = vmatprep.mubr.bf16.mxu1 %v6384_v56 }
 0x500   :  { %4462 = vmatmul.mubr.bf16.gmra.mrb[92].mxu1 %v7827_v48 }
 0x501   :  { %4471 = vmatprep.mubr.bf16.mxu1 %v6384_v56 }
 0x508   :  { %4472 = vmatmul.mubr.bf16.gmra.mrb[96].mxu1 %v7922_v25 }
 0x509   :  { %4481 = vmatprep.mubr.bf16.mxu1 %v6384_v56 }
 0x510   :  { %4482 = vmatmul.mubr.bf16.gmra.mrb[100].mxu1 %v7939_v19 }
 0x511   :  { %4491 = vmatprep.mubr.bf16.mxu1 %v6384_v56 }
 0x518   :  { %4492 = vmatmul.mubr.bf16.gmra.mrb[104].mxu1 %v7956_v42 }
 0x519   :  { %4501 = vmatprep.mubr.bf16.mxu1 %v6384_v56 }
 0x51b   :  { %v4233_v58 = vpop.f32.mrb[0].mxu1 }
 0x51c   :  { %v4235_v45 = vpop.f32.mrb[1].mxu1 }
 0x51d   :  { %v4237_v48 = vpop.f32.mrb[2].mxu1 }
 0x51e   :  { %v4239_v25 = vpop.f32.mrb[3].mxu1 }
 0x520   :  { %4502 = vmatmul.mubr.bf16.gmra.mrb[108].mxu1 %v7969_v23  ;;  %v8184_v23 = vld [vmem:[%s8348_s5 + $0xa8] sm:$0xff]  }
 0x521   :  { %4511 = vmatprep.mubr.bf16.mxu1 %v6384_v56  ;;  %5655 = vmatpush3.bf16.msra.mxu1 %v8184_v23 }
 0x523   :  { %v4243_v19 = vpop.f32.mrb[4].mxu1 }
 0x524   :  { %v4245_v1 = vpop.f32.mrb[5].mxu1 }
 0x525   :  { %v4247_v6 = vpop.f32.mrb[6].mxu1 }
 0x526   :  { %v4249_v46 = vpop.f32.mrb[7].mxu1 }
 0x528   :  { %4512 = vmatmul.mubr.bf16.gmra.mrb[112].mxu1 %v8043_v29 }
 0x529   :  { %4521 = vmatprep.mubr.bf16.mxu1 %v6384_v56 }
 0x52b   :  { %v4253_v42 = vpop.f32.mrb[8].mxu1 }
 0x52c   :  { %v4255_v55 = vpop.f32.mrb[9].mxu1 }
 0x52d   :  { %v4257_v57 = vpop.f32.mrb[10].mxu1 }
 0x52e   :  { %v4259_v27 = vpop.f32.mrb[11].mxu1 }
 0x530   :  { %4522 = vmatmul.mubr.bf16.gmra.mrb[116].mxu1 %v8049_v24 }
 0x531   :  { %4531 = vmatprep.mubr.bf16.mxu1 %v6384_v56 }
 0x533   :  { %v8190_v29 = vpop.f32.mrb[12].mxu1 }
 0x534   :  { %v8192_v21 = vpop.f32.mrb[13].mxu1 }
 0x535   :  { %v8194_v62 = vpop.f32.mrb[14].mxu1 }
 0x536   :  { %v8196_v38 = vpop.f32.mrb[15].mxu1 }
 0x538   :  { %4532 = vmatmul.mubr.bf16.gmra.mrb[120].mxu1 %v8071_v32 }
 0x539   :  { %4541 = vmatprep.mubr.bf16.mxu1 %v6384_v56 }
 0x53b   :  { %v4273_v3 = vpop.f32.mrb[16].mxu1 }
 0x53c   :  { %v4552_v14 = vmax.f32 %v4233_v58, %v4273_v3  ;;  %v4275_v30 = vpop.f32.mrb[17].mxu1 }
 0x53d   :  { %v4553_v7 = vmax.f32 %v4235_v45, %v4275_v30  ;;  %v4277_v31 = vpop.f32.mrb[18].mxu1 }
 0x53e   :  { %v4554_v22 = vmax.f32 %v4237_v48, %v4277_v31  ;;  %v4279_v12 = vpop.f32.mrb[19].mxu1  ;;  %v8227_v31 = vld [vmem:[%s8348_s5 + $0xb0] sm:$0xff]  }
 0x53f   :  { %v4616_v8 = vmax.f32 %v4552_v14, %v4553_v7  ;;  %v4555_v24 = vmax.f32 %v4239_v25, %v4279_v12 }
 0x540   :  { %4542 = vmatmul.mubr.bf16.gmra.mrb[124].mxu1 %v8077_v0 }
 0x541   :  { %v4655_v54 = vadd.f32 %v8203_v53, %v4616_v8  ;;  %v4617_v51 = vmax.f32 %v4554_v22, %v4555_v24 }
 0x543   :  { %v4656_v56 = vadd.f32 %v8203_v53, %v4617_v51  ;;  %v4283_v26 = vpop.f32.mrb[20].mxu1  ;;  %v4687_v17 = vmax.f32 %v4655_v54, 0.0 }
 0x544   :  { %v4556_v61 = vmax.f32 %v4243_v19, %v4283_v26  ;;  %v4285_v9 = vpop.f32.mrb[21].mxu1 }
 0x545   :  { %v4688_v52 = vmax.f32 %v4656_v56, 0.0  ;;  %v4557_v34 = vmax.f32 %v4245_v1, %v4285_v9  ;;  %v4287_v28 = vpop.f32.mrb[22].mxu1 }
 0x546   :  { %v4558_v15 = vmax.f32 %v4247_v6, %v4287_v28  ;;  %v4289_v13 = vpop.f32.mrb[23].mxu1 }
 0x547   :  { %v8208_v59 = vpack.c.bf16 %v4688_v52, %v4687_v17  ;;  %v4618_v20 = vmax.f32 %v4556_v61, %v4557_v34  ;;  %v4559_v10 = vmax.f32 %v4249_v46, %v4289_v13 }
 0x549   :  { %v4657_v44 = vadd.f32 %v8203_v53, %v4618_v20  ;;  %v4619_v32 = vmax.f32 %v4558_v15, %v4559_v10  ;;  %v8241_v10 = vld [vmem:[%s8348_s5 + $0xf8] sm:$0xff]  }
 0x54b   :  { %v4658_v35 = vadd.f32 %v8203_v53, %v4619_v32  ;;  %v4293_v39 = vpop.f32.mrb[24].mxu1  ;;  %v4689_v36 = vmax.f32 %v4657_v44, 0.0  ;;  %v8246_v44 = vld [vmem:[%s8348_s5 + $0xb8] sm:$0xff]  }
 0x54c   :  { %v4560_v5 = vmax.f32 %v4253_v42, %v4293_v39  ;;  %v4295_v49 = vpop.f32.mrb[25].mxu1 }
 0x54d   :  { %v4690_v0 = vmax.f32 %v4658_v35, 0.0  ;;  %v4561_v2 = vmax.f32 %v4255_v55, %v4295_v49  ;;  %v4297_v63 = vpop.f32.mrb[26].mxu1 }
 0x54e   :  { %v4562_v11 = vmax.f32 %v4257_v57, %v4297_v63  ;;  %v4299_v60 = vpop.f32.mrb[27].mxu1  ;;  %v8221_v57 = vld [vmem:[%s8348_s5 + $0xf0] sm:$0xff]  }
 0x54f   :  { %v8212_v58 = vpack.c.bf16 %v4690_v0, %v4689_v36  ;;  %v4620_v45 = vmax.f32 %v4560_v5, %v4561_v2  ;;  %v4563_v48 = vmax.f32 %v4259_v27, %v4299_v60  ;;  %5648 = vmatprep.subr.bf16.mxu1 %v8221_v57 }
 0x550   :  { %5656 = vmatpush3.bf16.msra.mxu1 %v8227_v31 }
 0x551   :  { %v4659_v25 = vadd.f32 %v8203_v53, %v4620_v45  ;;  %v4621_v19 = vmax.f32 %v4562_v11, %v4563_v48  ;;  %5649 = vmatprep.subr.bf16.mxu1 %v8241_v10 }
 0x553   :  { %v4660_v1 = vadd.f32 %v8203_v53, %v4621_v19  ;;  %v4303_v6 = vpop.f32.mrb[28].mxu1  ;;  %v4691_v3 = vmax.f32 %v4659_v25, 0.0 }
 0x554   :  { %v4564_v46 = vmax.f32 %v8190_v29, %v4303_v6  ;;  %v4305_v42 = vpop.f32.mrb[29].mxu1  ;;  %5657 = vmatpush3.bf16.msra.mxu1 %v8246_v44 }
 0x555   :  { %v4692_v14 = vmax.f32 %v4660_v1, 0.0  ;;  %v4565_v55 = vmax.f32 %v8192_v21, %v4305_v42  ;;  %v4307_v30 = vpop.f32.mrb[30].mxu1 }
 0x556   :  { %v4566_v27 = vmax.f32 %v8194_v62, %v4307_v30  ;;  %v4309_v7 = vpop.f32.mrb[31].mxu1 }
 0x557   :  { %v8229_v29 = vpack.c.bf16 %v4692_v14, %v4691_v3  ;;  %v4622_v22 = vmax.f32 %v4564_v46, %v4565_v55  ;;  %v4567_v12 = vmax.f32 %v8196_v38, %v4309_v7 }
 0x559   :  { %v4661_v21 = vadd.f32 %v8203_v53, %v4622_v22  ;;  %v4623_v8 = vmax.f32 %v4566_v27, %v4567_v12 }
 0x55b   :  { %v4662_v62 = vadd.f32 %v8203_v53, %v4623_v8  ;;  %v4313_v24 = vpop.f32.mrb[32].mxu1  ;;  %v4693_v51 = vmax.f32 %v4661_v21, 0.0 }
 0x55c   :  { %v4315_v54 = vpop.f32.mrb[33].mxu1 }
 0x55d   :  { %v4694_v56 = vmax.f32 %v4662_v62, 0.0  ;;  %v4317_v26 = vpop.f32.mrb[34].mxu1 }
 0x55e   :  { %v4319_v61 = vpop.f32.mrb[35].mxu1 }
 0x55f   :  { %v8236_v9 = vpack.c.bf16 %v4694_v56, %v4693_v51 }
 0x563   :  { %v4323_v17 = vpop.f32.mrb[36].mxu1 }
 0x564   :  { %v4325_v52 = vpop.f32.mrb[37].mxu1 }
 0x565   :  { %v4327_v38 = vpop.f32.mrb[38].mxu1 }
 0x566   :  { %v4329_v34 = vpop.f32.mrb[39].mxu1 }
 0x56b   :  { %v4333_v28 = vpop.f32.mrb[40].mxu1 }
 0x56c   :  { %v4335_v15 = vpop.f32.mrb[41].mxu1 }
 0x56d   :  { %v4337_v13 = vpop.f32.mrb[42].mxu1 }
 0x56e   :  { %v4339_v20 = vpop.f32.mrb[43].mxu1 }
 0x573   :  { %v8250_v32 = vpop.f32.mrb[44].mxu1 }
 0x574   :  { %v8252_v35 = vpop.f32.mrb[45].mxu1 }
 0x575   :  { %v8254_v39 = vpop.f32.mrb[46].mxu1 }
 0x576   :  { %v8256_v5 = vpop.f32.mrb[47].mxu1 }
 0x57b   :  { %v4353_v49 = vpop.f32.mrb[48].mxu1 }
 0x57c   :  { %v4568_v36 = vmax.f32 %v4313_v24, %v4353_v49  ;;  %v4355_v0 = vpop.f32.mrb[49].mxu1 }
 0x57d   :  { %v4569_v2 = vmax.f32 %v4315_v54, %v4355_v0  ;;  %v4357_v63 = vpop.f32.mrb[50].mxu1 }
 0x57e   :  { %v4570_v11 = vmax.f32 %v4317_v26, %v4357_v63  ;;  %v4359_v60 = vpop.f32.mrb[51].mxu1 }
 0x57f   :  { %v4624_v45 = vmax.f32 %v4568_v36, %v4569_v2  ;;  %v4571_v48 = vmax.f32 %v4319_v61, %v4359_v60 }
 0x581   :  { %v4663_v25 = vadd.f32 %v8203_v53, %v4624_v45  ;;  %v4625_v19 = vmax.f32 %v4570_v11, %v4571_v48 }
 0x583   :  { %v4664_v1 = vadd.f32 %v8203_v53, %v4625_v19  ;;  %v4363_v6 = vpop.f32.mrb[52].mxu1  ;;  %v4695_v3 = vmax.f32 %v4663_v25, 0.0 }
 0x584   :  { %v4572_v46 = vmax.f32 %v4323_v17, %v4363_v6  ;;  %v4365_v42 = vpop.f32.mrb[53].mxu1 }
 0x585   :  { %v4696_v14 = vmax.f32 %v4664_v1, 0.0  ;;  %v4573_v55 = vmax.f32 %v4325_v52, %v4365_v42  ;;  %v4367_v30 = vpop.f32.mrb[54].mxu1 }
 0x586   :  { %v4574_v27 = vmax.f32 %v4327_v38, %v4367_v30  ;;  %v4369_v7 = vpop.f32.mrb[55].mxu1 }
 0x587   :  { %v4626_v22 = vmax.f32 %v4572_v46, %v4573_v55  ;;  %v4575_v12 = vmax.f32 %v4329_v34, %v4369_v7  ;;  %v4723_v21 = vpack.c.bf16 %v4696_v14, %v4695_v3 }
 0x589   :  { %v4665_v8 = vadd.f32 %v8203_v53, %v4626_v22  ;;  %v4627_v62 = vmax.f32 %v4574_v27, %v4575_v12  ;;  %5030 = vmatprep.mubr.bf16.mxu0 %v4723_v21 }
 0x58a   :  { %5031 = vmatmul.mubr.bf16.vlgmr.msra.gmra.mrb[128].mxu0 %v8208_v59 }
 0x58b   :  { %v4666_v24 = vadd.f32 %v8203_v53, %v4627_v62  ;;  %v4373_v54 = vpop.f32.mrb[56].mxu1  ;;  %5603 = vmatpush3.bf16.msra.mxu0 %v8064_v33  ;;  %v4697_v26 = vmax.f32 %v4665_v8, 0.0 }
 0x58c   :  { %v4576_v51 = vmax.f32 %v4333_v28, %v4373_v54  ;;  %v4375_v56 = vpop.f32.mrb[57].mxu1  ;;  %5604 = vmatprep.subr.bf16.mxu0 %v8087_v41 }
 0x58d   :  { %v4698_v61 = vmax.f32 %v4666_v24, 0.0  ;;  %v4577_v17 = vmax.f32 %v4335_v15, %v4375_v56  ;;  %v4377_v52 = vpop.f32.mrb[58].mxu1 }
 0x58e   :  { %v4578_v38 = vmax.f32 %v4337_v13, %v4377_v52  ;;  %v4379_v34 = vpop.f32.mrb[59].mxu1 }
 0x58f   :  { %v4628_v49 = vmax.f32 %v4576_v51, %v4577_v17  ;;  %v4579_v36 = vmax.f32 %v4339_v20, %v4379_v34  ;;  %v4724_v0 = vpack.c.bf16 %v4698_v61, %v4697_v26  ;;  %5605 = vmatpush3.bf16.msra.mxu0 %v8093_v50 }
 0x590   :  { %5606 = vmatprep.subr.bf16.mxu0 %v8114_v40 }
 0x591   :  { %v4667_v59 = vadd.f32 %v8203_v53, %v4628_v49  ;;  %v4629_v33 = vmax.f32 %v4578_v38, %v4579_v36  ;;  %5038 = vmatprep.mubr.bf16.mxu0 %v4724_v0 }
 0x592   :  { %5039 = vmatmul.mubr.bf16.gmra.mrb[132].mxu0 %v8212_v58 }
 0x593   :  { %v4668_v41 = vadd.f32 %v8203_v53, %v4629_v33  ;;  %v4383_v28 = vpop.f32.mrb[60].mxu1  ;;  %5607 = vmatpush3.bf16.msra.mxu0 %v8120_v4  ;;  %v4699_v20 = vmax.f32 %v4667_v59, 0.0 }
 0x594   :  { %v4580_v15 = vmax.f32 %v8250_v32, %v4383_v28  ;;  %v4385_v13 = vpop.f32.mrb[61].mxu1  ;;  %5608 = vmatprep.subr.bf16.mxu0 %v8132_v18 }
 0x595   :  { %v4700_v50 = vmax.f32 %v4668_v41, 0.0  ;;  %v4581_v40 = vmax.f32 %v8252_v35, %v4385_v13  ;;  %v4387_v2 = vpop.f32.mrb[62].mxu1 }
 0x596   :  { %v4582_v63 = vmax.f32 %v8254_v39, %v4387_v2  ;;  %v4389_v11 = vpop.f32.mrb[63].mxu1 }
 0x597   :  { %v4630_v60 = vmax.f32 %v4580_v15, %v4581_v40  ;;  %v4583_v58 = vmax.f32 %v8256_v5, %v4389_v11  ;;  %v4725_v45 = vpack.c.bf16 %v4700_v50, %v4699_v20  ;;  %5609 = vmatpush3.bf16.msra.mxu0 %v8137_v47 }
 0x598   :  { %5610 = vmatprep.subr.bf16.mxu0 %v8161_v16 }
 0x599   :  { %v4669_v4 = vadd.f32 %v8203_v53, %v4630_v60  ;;  %v4631_v32 = vmax.f32 %v4582_v63, %v4583_v58  ;;  %5046 = vmatprep.mubr.bf16.mxu0 %v4725_v45 }
 0x59a   :  { %5047 = vmatmul.mubr.bf16.gmra.mrb[136].mxu0 %v8229_v29 }
 0x59b   :  { %v4670_v18 = vadd.f32 %v8203_v53, %v4631_v32  ;;  %v4393_v35 = vpop.f32.mrb[64].mxu1  ;;  %5611 = vmatpush3.bf16.msra.mxu0 %v8167_v37  ;;  %v4701_v5 = vmax.f32 %v4669_v4, 0.0 }
 0x59c   :  { %v4395_v39 = vpop.f32.mrb[65].mxu1  ;;  %5612 = vmatprep.subr.bf16.mxu0 %v8179_v43 }
 0x59d   :  { %v4702_v48 = vmax.f32 %v4670_v18, 0.0  ;;  %v4397_v25 = vpop.f32.mrb[66].mxu1 }
 0x59e   :  { %v4399_v47 = vpop.f32.mrb[67].mxu1 }
 0x59f   :  { %v4726_v19 = vpack.c.bf16 %v4702_v48, %v4701_v5  ;;  %5613 = vmatpush3.bf16.msra.mxu0 %v8184_v23 }
 0x5a0   :  { %5614 = vmatprep.subr.bf16.mxu0 %v8221_v57 }
 0x5a1   :  { %5054 = vmatprep.mubr.bf16.mxu0 %v4726_v19 }
 0x5a2   :  { %5055 = vmatmul.mubr.bf16.gmra.mrb[140].mxu0 %v8236_v9 }
 0x5a3   :  { %v4403_v16 = vpop.f32.mrb[68].mxu1  ;;  %5615 = vmatpush3.bf16.msra.mxu0 %v8227_v31 }
 0x5a4   :  { %v4405_v29 = vpop.f32.mrb[69].mxu1  ;;  %5616 = vmatprep.subr.bf16.mxu0 %v8241_v10 }
 0x5a5   :  { %v4407_v37 = vpop.f32.mrb[70].mxu1 }
 0x5a6   :  { %v4409_v43 = vpop.f32.mrb[71].mxu1 }
 0x5a7   :  { %5617 = vmatpush3.bf16.msra.mxu0 %v8246_v44 }
 0x5ab   :  { %v4413_v1 = vpop.f32.mrb[72].mxu1 }
 0x5ac   :  { %v4415_v6 = vpop.f32.mrb[73].mxu1 }
 0x5ad   :  { %v4417_v46 = vpop.f32.mrb[74].mxu1 }
 0x5ae   :  { %v4419_v42 = vpop.f32.mrb[75].mxu1 }
 0x5b3   :  { %v4423_v23 = vpop.f32.mrb[76].mxu1 }
 0x5b4   :  { %v4425_v3 = vpop.f32.mrb[77].mxu1 }
 0x5b5   :  { %v4427_v57 = vpop.f32.mrb[78].mxu1 }
 0x5b6   :  { %v4429_v14 = vpop.f32.mrb[79].mxu1 }
 0x5bb   :  { %v4433_v55 = vpop.f32.mrb[80].mxu1 }
 0x5bc   :  { %v4584_v9 = vmax.f32 %v4393_v35, %v4433_v55  ;;  %v4435_v30 = vpop.f32.mrb[81].mxu1 }
 0x5bd   :  { %v4585_v27 = vmax.f32 %v4395_v39, %v4435_v30  ;;  %v4437_v31 = vpop.f32.mrb[82].mxu1 }
 0x5be   :  { %v4586_v7 = vmax.f32 %v4397_v25, %v4437_v31  ;;  %v4439_v22 = vpop.f32.mrb[83].mxu1 }
 0x5bf   :  { %v4632_v10 = vmax.f32 %v4584_v9, %v4585_v27  ;;  %v4587_v12 = vmax.f32 %v4399_v47, %v4439_v22 }
 0x5c1   :  { %v4671_v21 = vadd.f32 %v8203_v53, %v4632_v10  ;;  %v4633_v44 = vmax.f32 %v4586_v7, %v4587_v12 }
 0x5c3   :  { %v4672_v8 = vadd.f32 %v8203_v53, %v4633_v44  ;;  %v4443_v62 = vpop.f32.mrb[84].mxu1  ;;  %v4703_v51 = vmax.f32 %v4671_v21, 0.0 }
 0x5c4   :  { %v4588_v24 = vmax.f32 %v4403_v16, %v4443_v62  ;;  %v4445_v54 = vpop.f32.mrb[85].mxu1 }
 0x5c5   :  { %v4704_v56 = vmax.f32 %v4672_v8, 0.0  ;;  %v4589_v26 = vmax.f32 %v4405_v29, %v4445_v54  ;;  %v4447_v61 = vpop.f32.mrb[86].mxu1 }
 0x5c6   :  { %v4590_v17 = vmax.f32 %v4407_v37, %v4447_v61  ;;  %v4449_v52 = vpop.f32.mrb[87].mxu1 }
 0x5c7   :  { %v8291_v38 = vpack.c.bf16 %v4704_v56, %v4703_v51  ;;  %v4634_v34 = vmax.f32 %v4588_v24, %v4589_v26  ;;  %v4591_v49 = vmax.f32 %v4409_v43, %v4449_v52 }
 0x5c9   :  { %v4673_v36 = vadd.f32 %v8203_v53, %v4634_v34  ;;  %v4635_v0 = vmax.f32 %v4590_v17, %v4591_v49 }
 0x5cb   :  { %v4674_v59 = vadd.f32 %v8203_v53, %v4635_v0  ;;  %v4453_v33 = vpop.f32.mrb[88].mxu1  ;;  %v4705_v15 = vmax.f32 %v4673_v36, 0.0 }
 0x5cc   :  { %v4592_v41 = vmax.f32 %v4413_v1, %v4453_v33  ;;  %v4455_v28 = vpop.f32.mrb[89].mxu1 }
 0x5cd   :  { %v4706_v13 = vmax.f32 %v4674_v59, 0.0  ;;  %v4593_v20 = vmax.f32 %v4415_v6, %v4455_v28  ;;  %v4457_v50 = vpop.f32.mrb[90].mxu1 }
 0x5ce   :  { %v4594_v40 = vmax.f32 %v4417_v46, %v4457_v50  ;;  %v4459_v2 = vpop.f32.mrb[91].mxu1 }
 0x5cf   :  { %v8295_v63 = vpack.c.bf16 %v4706_v13, %v4705_v15  ;;  %v4636_v11 = vmax.f32 %v4592_v41, %v4593_v20  ;;  %v4595_v60 = vmax.f32 %v4419_v42, %v4459_v2 }
 0x5d1   :  { %v4675_v58 = vadd.f32 %v8203_v53, %v4636_v11  ;;  %v4637_v45 = vmax.f32 %v4594_v40, %v4595_v60 }
 0x5d3   :  { %v4676_v4 = vadd.f32 %v8203_v53, %v4637_v45  ;;  %v4463_v32 = vpop.f32.mrb[92].mxu1  ;;  %v4707_v39 = vmax.f32 %v4675_v58, 0.0 }
 0x5d4   :  { %v4596_v18 = vmax.f32 %v4423_v23, %v4463_v32  ;;  %v4465_v35 = vpop.f32.mrb[93].mxu1 }
 0x5d5   :  { %v4708_v5 = vmax.f32 %v4676_v4, 0.0  ;;  %v4597_v48 = vmax.f32 %v4425_v3, %v4465_v35  ;;  %v4467_v25 = vpop.f32.mrb[94].mxu1 }
 0x5d6   :  { %v4598_v47 = vmax.f32 %v4427_v57, %v4467_v25  ;;  %v4469_v19 = vpop.f32.mrb[95].mxu1 }
 0x5d7   :  { %v4638_v16 = vmax.f32 %v4596_v18, %v4597_v48  ;;  %v4599_v29 = vmax.f32 %v4429_v14, %v4469_v19  ;;  %v8299_v37 = vpack.c.bf16 %v4708_v5, %v4707_v39 }
 0x5d9   :  { %v4677_v43 = vadd.f32 %v8203_v53, %v4638_v16  ;;  %v4639_v1 = vmax.f32 %v4598_v47, %v4599_v29 }
 0x5db   :  { %v4678_v6 = vadd.f32 %v8203_v53, %v4639_v1  ;;  %v4473_v46 = vpop.f32.mrb[96].mxu1  ;;  %v4709_v55 = vmax.f32 %v4677_v43, 0.0 }
 0x5dc   :  { %v4475_v42 = vpop.f32.mrb[97].mxu1 }
 0x5dd   :  { %v4710_v23 = vmax.f32 %v4678_v6, 0.0  ;;  %v4477_v9 = vpop.f32.mrb[98].mxu1 }
 0x5de   :  { %v4479_v30 = vpop.f32.mrb[99].mxu1 }
 0x5df   :  { %v8303_v27 = vpack.c.bf16 %v4710_v23, %v4709_v55 }
 0x5e3   :  { %v4483_v3 = vpop.f32.mrb[100].mxu1 }
 0x5e4   :  { %v4485_v57 = vpop.f32.mrb[101].mxu1 }
 0x5e5   :  { %v4487_v31 = vpop.f32.mrb[102].mxu1 }
 0x5e6   :  { %v4489_v7 = vpop.f32.mrb[103].mxu1 }
 0x5eb   :  { %v4493_v14 = vpop.f32.mrb[104].mxu1 }
 0x5ec   :  { %v4495_v22 = vpop.f32.mrb[105].mxu1 }
 0x5ed   :  { %v4497_v10 = vpop.f32.mrb[106].mxu1 }
 0x5ee   :  { %v4499_v12 = vpop.f32.mrb[107].mxu1 }
 0x5f3   :  { %v4503_v21 = vpop.f32.mrb[108].mxu1 }
 0x5f4   :  { %v4505_v44 = vpop.f32.mrb[109].mxu1 }
 0x5f5   :  { %v4507_v8 = vpop.f32.mrb[110].mxu1 }
 0x5f6   :  { %v4509_v62 = vpop.f32.mrb[111].mxu1 }
 0x5fb   :  { %v4513_v24 = vpop.f32.mrb[112].mxu1 }
 0x5fc   :  { %v4600_v54 = vmax.f32 %v4473_v46, %v4513_v24  ;;  %v4515_v51 = vpop.f32.mrb[113].mxu1 }
 0x5fd   :  { %v4601_v56 = vmax.f32 %v4475_v42, %v4515_v51  ;;  %v4517_v26 = vpop.f32.mrb[114].mxu1 }
 0x5fe   :  { %v4602_v61 = vmax.f32 %v4477_v9, %v4517_v26  ;;  %v4519_v17 = vpop.f32.mrb[115].mxu1 }
 0x5ff   :  { %v4640_v52 = vmax.f32 %v4600_v54, %v4601_v56  ;;  %v4603_v34 = vmax.f32 %v4479_v30, %v4519_v17 }
 0x601   :  { %v4679_v49 = vadd.f32 %v8203_v53, %v4640_v52  ;;  %v4641_v36 = vmax.f32 %v4602_v61, %v4603_v34 }
 0x603   :  { %v4680_v0 = vadd.f32 %v8203_v53, %v4641_v36  ;;  %v4523_v59 = vpop.f32.mrb[116].mxu1  ;;  %v4711_v28 = vmax.f32 %v4679_v49, 0.0 }
 0x604   :  { %v4604_v33 = vmax.f32 %v4483_v3, %v4523_v59  ;;  %v4525_v41 = vpop.f32.mrb[117].mxu1 }
 0x605   :  { %v4712_v15 = vmax.f32 %v4680_v0, 0.0  ;;  %v4605_v13 = vmax.f32 %v4485_v57, %v4525_v41  ;;  %v4527_v20 = vpop.f32.mrb[118].mxu1 }
 0x606   :  { %v4606_v50 = vmax.f32 %v4487_v31, %v4527_v20  ;;  %v4529_v40 = vpop.f32.mrb[119].mxu1 }
 0x607   :  { %v4642_v2 = vmax.f32 %v4604_v33, %v4605_v13  ;;  %v4607_v11 = vmax.f32 %v4489_v7, %v4529_v40  ;;  %v4731_v60 = vpack.c.bf16 %v4712_v15, %v4711_v28  ;;  %v5529_v40 = vld [vmem:[%s8350_s6] ss:$0 sm:$0xff] }
 0x609   :  { %v4681_v58 = vadd.f32 %v8203_v53, %v4642_v2  ;;  %v4643_v45 = vmax.f32 %v4606_v50, %v4607_v11  ;;  %5095 = vmatprep.mubr.bf16.mxu0 %v4731_v60 }
 0x60a   :  { %5096 = vmatmul.mubr.bf16.vlgmr.msra.gmra.mrb[144].mxu0 %v8291_v38 }
 0x60b   :  { %v4682_v4 = vadd.f32 %v8203_v53, %v4643_v45  ;;  %v4533_v32 = vpop.f32.mrb[120].mxu1  ;;  %v4713_v39 = vmax.f32 %v4681_v58, 0.0 }
 0x60c   :  { %v4608_v18 = vmax.f32 %v4493_v14, %v4533_v32  ;;  %v4535_v35 = vpop.f32.mrb[121].mxu1 }
 0x60d   :  { %v4714_v5 = vmax.f32 %v4682_v4, 0.0  ;;  %v4609_v48 = vmax.f32 %v4495_v22, %v4535_v35  ;;  %v4537_v25 = vpop.f32.mrb[122].mxu1 }
 0x60e   :  { %v4610_v47 = vmax.f32 %v4497_v10, %v4537_v25  ;;  %v4539_v19 = vpop.f32.mrb[123].mxu1 }
 0x60f   :  { %v4644_v16 = vmax.f32 %v4608_v18, %v4609_v48  ;;  %v4611_v29 = vmax.f32 %v4499_v12, %v4539_v19  ;;  %v4732_v43 = vpack.c.bf16 %v4714_v5, %v4713_v39 }
 0x611   :  { %v4683_v1 = vadd.f32 %v8203_v53, %v4644_v16  ;;  %v4645_v6 = vmax.f32 %v4610_v47, %v4611_v29  ;;  %5103 = vmatprep.mubr.bf16.mxu1 %v4732_v43 }
 0x612   :  { %5104 = vmatmul.mubr.bf16.vlgmr.msra.gmra.mrb[128].mxu1 %v8295_v63 }
 0x613   :  { %v4684_v38 = vadd.f32 %v8203_v53, %v4645_v6  ;;  %v4543_v46 = vpop.f32.mrb[124].mxu1  ;;  %v4715_v23 = vmax.f32 %v4683_v1, 0.0 }
 0x614   :  { %v4612_v42 = vmax.f32 %v4503_v21, %v4543_v46  ;;  %v4545_v55 = vpop.f32.mrb[125].mxu1 }
 0x615   :  { %v4716_v9 = vmax.f32 %v4684_v38, 0.0  ;;  %v4613_v30 = vmax.f32 %v4505_v44, %v4545_v55  ;;  %v4547_v3 = vpop.f32.mrb[126].mxu1 }
 0x616   :  { %v4614_v57 = vmax.f32 %v4507_v8, %v4547_v3  ;;  %v4549_v31 = vpop.f32.mrb[127].mxu1 }
 0x617   :  { %v4646_v7 = vmax.f32 %v4612_v42, %v4613_v30  ;;  %v4615_v14 = vmax.f32 %v4509_v62, %v4549_v31  ;;  %v4733_v22 = vpack.c.bf16 %v4716_v9, %v4715_v23 }
 0x619   :  { %v4685_v10 = vadd.f32 %v8203_v53, %v4646_v7  ;;  %v4647_v12 = vmax.f32 %v4614_v57, %v4615_v14  ;;  %5111 = vmatprep.mubr.bf16.mxu1 %v4733_v22 }
 0x61a   :  { %5112 = vmatmul.mubr.bf16.gmra.mrb[132].mxu1 %v8299_v37 }
 0x61b   :  { %v4686_v63 = vadd.f32 %v8203_v53, %v4647_v12  ;;  %v4717_v24 = vmax.f32 %v4685_v10, 0.0 }
 0x61d   :  { %v4718_v21 = vmax.f32 %v4686_v63, 0.0 }
 0x61f   :  { %v4734_v54 = vpack.c.bf16 %v4718_v21, %v4717_v24 }
 0x621   :  { %5119 = vmatprep.mubr.bf16.mxu1 %v4734_v54 }
 0x622   :  { %5120 = vmatmul.mubr.bf16.gmra.mrb[136].mxu1 %v8303_v27 }
 0x65d   :  { %v5578_v44 = vpop.f32.mrb[128].mxu0 }
 0x65e   :  { %v5579_v8 = vpop.f32.mrb[129].mxu0 }
 0x65f   :  { %v5580_v51 = vadd.f32 %v5579_v8, %v5578_v44  ;;  %v5581_v56 = vpop.f32.mrb[130].mxu0 }
 0x660   :  { %v5582_v62 = vpop.f32.mrb[131].mxu0 }
 0x661   :  { %v5583_v26 = vadd.f32 %v5582_v62, %v5581_v56  ;;  %v5033_v60 = vadd.f32 %v5580_v51, %v5529_v40 }
 0x663   :  { %v5036_v32 = vadd.f32 %v5583_v26, %v5529_v40 }
 0x665   :  { %v5584_v61 = vpop.f32.mrb[132].mxu0 }
 0x666   :  { %v5585_v17 = vpop.f32.mrb[133].mxu0 }
 0x667   :  { %v5586_v52 = vadd.f32 %v5585_v17, %v5584_v61  ;;  %v5587_v34 = vpop.f32.mrb[134].mxu0 }
 0x668   :  { %v5588_v49 = vpop.f32.mrb[135].mxu0 }
 0x669   :  { %v5589_v37 = vadd.f32 %v5588_v49, %v5587_v34  ;;  %v5041_v25 = vadd.f32 %v5586_v52, %v5529_v40 }
 0x66b   :  { %v5044_v29 = vadd.f32 %v5589_v37, %v5529_v40 }
 0x66d   :  { %v5590_v36 = vpop.f32.mrb[136].mxu0 }
 0x66e   :  { %v5591_v53 = vpop.f32.mrb[137].mxu0 }
 0x66f   :  { %v5592_v0 = vadd.f32 %v5591_v53, %v5590_v36  ;;  %v5593_v59 = vpop.f32.mrb[138].mxu0 }
 0x670   :  { %v5594_v33 = vpop.f32.mrb[139].mxu0 }
 0x671   :  { %v5595_v41 = vadd.f32 %v5594_v33, %v5593_v59  ;;  %v5049_v42 = vadd.f32 %v5592_v0, %v5529_v40 }
 0x673   :  { %v5052_v30 = vadd.f32 %v5595_v41, %v5529_v40 }
 0x675   :  { %v5596_v28 = vpop.f32.mrb[140].mxu0 }
 0x676   :  { %v5597_v27 = vpop.f32.mrb[141].mxu0 }
 0x677   :  { %v5598_v15 = vadd.f32 %v5597_v27, %v5596_v28  ;;  %v5599_v13 = vpop.f32.mrb[142].mxu0 }
 0x678   :  { %v5600_v20 = vpop.f32.mrb[143].mxu0 }
 0x679   :  { %v5601_v50 = vadd.f32 %v5600_v20, %v5599_v13  ;;  %v5057_v22 = vadd.f32 %v5598_v15, %v5529_v40 }
 0x67b   :  { %v5060_v24 = vadd.f32 %v5601_v50, %v5529_v40 }
 0x6dd   :  { %v5618_v2 = vpop.f32.mrb[144].mxu0 }
 0x6de   :  { %v5619_v11 = vpop.f32.mrb[145].mxu0 }
 0x6df   :  { %v5620_v58 = vadd.f32 %v5619_v11, %v5618_v2  ;;  %v5621_v45 = vpop.f32.mrb[146].mxu0 }
 0x6e0   :  { %v5622_v4 = vpop.f32.mrb[147].mxu0 }
 0x6e1   :  { %v5098_v18 = vadd.f32 %v5620_v58, %v5033_v60  ;;  %v5623_v35 = vadd.f32 %v5622_v4, %v5621_v45 }
 0x6e3   :  { %5128 = vst [vmem:[%s8351_s7] sm:$0xff] %v5098_v18  ;;  %v5101_v39 = vadd.f32 %v5623_v35, %v5036_v32 }
 0x6e5   :  { %5129 = vst [vmem:[%s8351_s7 + $0x8] sm:$0xff] %v5101_v39  ;;  %v5624_v5 = vpop.f32.mrb[128].mxu1 }
 0x6e6   :  { %v5625_v48 = vpop.f32.mrb[129].mxu1 }
 0x6e7   :  { %v5626_v47 = vadd.f32 %v5625_v48, %v5624_v5  ;;  %v5627_v19 = vpop.f32.mrb[130].mxu1 }
 0x6e8   :  { %v5628_v16 = vpop.f32.mrb[131].mxu1 }
 0x6e9   :  { %v5106_v43 = vadd.f32 %v5626_v47, %v5041_v25  ;;  %v5629_v1 = vadd.f32 %v5628_v16, %v5627_v19 }
 0x6eb   :  { %5130 = vst [vmem:[%s8351_s7 + $0x10] sm:$0xff] %v5106_v43  ;;  %v5109_v6 = vadd.f32 %v5629_v1, %v5044_v29 }
 0x6ed   :  { %5131 = vst [vmem:[%s8351_s7 + $0x18] sm:$0xff] %v5109_v6  ;;  %v5630_v38 = vpop.f32.mrb[132].mxu1 }
 0x6ee   :  { %v5631_v46 = vpop.f32.mrb[133].mxu1 }
 0x6ef   :  { %v5632_v55 = vadd.f32 %v5631_v46, %v5630_v38  ;;  %v5633_v23 = vpop.f32.mrb[134].mxu1 }
 0x6f0   :  { %v5634_v9 = vpop.f32.mrb[135].mxu1 }
 0x6f1   :  { %v5114_v3 = vadd.f32 %v5632_v55, %v5049_v42  ;;  %v5635_v57 = vadd.f32 %v5634_v9, %v5633_v23 }
 0x6f3   :  { %5132 = vst [vmem:[%s8351_s7 + $0x20] sm:$0xff] %v5114_v3  ;;  %v5117_v31 = vadd.f32 %v5635_v57, %v5052_v30 }
 0x6f5   :  { %5133 = vst [vmem:[%s8351_s7 + $0x28] sm:$0xff] %v5117_v31  ;;  %v5636_v7 = vpop.f32.mrb[136].mxu1 }
 0x6f6   :  { %v5637_v14 = vpop.f32.mrb[137].mxu1 }
 0x6f7   :  { %v5638_v10 = vadd.f32 %v5637_v14, %v5636_v7  ;;  %v5639_v12 = vpop.f32.mrb[138].mxu1 }
 0x6f8   :  { %v5640_v63 = vpop.f32.mrb[139].mxu1 }
 0x6f9   :  { %v5122_v21 = vadd.f32 %v5638_v10, %v5057_v22  ;;  %v5641_v54 = vadd.f32 %v5640_v63, %v5639_v12 }
 0x6fb   :  { %5134 = vst [vmem:[%s8351_s7 + $0x30] sm:$0xff] %v5122_v21  ;;  %v5125_v44 = vadd.f32 %v5641_v54, %v5060_v24 }
 0x6fd   :  { %5135 = vst [vmem:[%s8351_s7 + $0x38] sm:$0xff] %v5125_v44 }

</bundles_post_ra>
